<compile_context>
chip_gen: v6e
topology: v6e:2x2x1
jax: 0.10.0
libtpu: 0.0.40
codegen_flags: <defaults>
</compile_context>

<pallas_src>
import functools

import jax
import jax.numpy as jnp
from jax.experimental import pallas as pl
from jax.experimental.pallas import tpu as pltpu


def _round_up(n, m):
    return ((n + m - 1) // m) * m


def mlp_kernel(x_ref,
               w1_ref, b1_ref,
               w2_ref, b2_ref,
               w3_ref, b3_ref,
               w4_ref, b4_ref,
               w5_ref, b5_ref,
               o_ref):
    # x arrives f32; cast to bf16 in-kernel (VPU, hidden under MXU).
    # fc1..fc4: bf16 operands into the MXU, f32 accumulate, bias+ReLU in f32.
    x = x_ref[...].astype(jnp.bfloat16)
    h = jnp.dot(x, w1_ref[...], preferred_element_type=jnp.float32)
    h = jnp.maximum(h + b1_ref[...], 0.0)

    h = jnp.dot(h.astype(jnp.bfloat16), w2_ref[...],
                preferred_element_type=jnp.float32)
    h = jnp.maximum(h + b2_ref[...], 0.0)

    # dropout1: identity at inference time (p=0.1 only active in training).
    # TODO(synk): training-mode dropout (stochastic mask via pltpu.prng_*) not implemented.

    h = jnp.dot(h.astype(jnp.bfloat16), w3_ref[...],
                preferred_element_type=jnp.float32)
    h = jnp.maximum(h + b3_ref[...], 0.0)

    h = jnp.dot(h.astype(jnp.bfloat16), w4_ref[...],
                preferred_element_type=jnp.float32)
    h = jnp.maximum(h + b4_ref[...], 0.0)

    # fc5 (output width 1): VPU multiply + lane reduction (avoids a width-1
    # MXU matmul), result written as a lane-dense (1, tm) row.
    out = jnp.sum(h * w5_ref[...], axis=-1)            # (tm,)
    o_ref[...] = (out.reshape(1, -1) + b5_ref[...]).astype(o_ref.dtype)


def _choose_tiling(B, tm):
    """Pick (tile, padded_batch). Keeps the lane-dense (1, tm) output block legal
    (tm multiple of 128) and guarantees >=2 grid steps for B > 128 so v7x's
    second TensorCore gets work (grid=1 is optimal on the 1-TC v5e/v6e only
    for tiny batches, where the extra padding of a forced split isn't worth it)."""
    tm = max(128, _round_up(tm, 128))
    if B <= 128:
        return 128, 128
    half = _round_up(-(-B // 2), 128)   # ceil(B/2) rounded up to 128
    tm_eff = min(tm, half)
    Bp = _round_up(B, tm_eff)
    return tm_eff, Bp


def prepare_params(params):
    """One-time weight prep (do at model-load time, NOT per forward call):
    bf16 fc1..fc4 weights (MXU-native, half the DMA bytes), f32 biases,
    fc5 weight as a (1, 128) f32 lane vector, fc5 bias as (1, 1) f32."""
    (w1, b1), (w2, b2), (w3, b3), (w4, b4), (w5, b5) = (
        params["fc1"], params["fc2"], params["fc3"], params["fc4"], params["fc5"])
    return (w1.astype(jnp.bfloat16), b1.astype(jnp.float32),
            w2.astype(jnp.bfloat16), b2.astype(jnp.float32),
            w3.astype(jnp.bfloat16), b3.astype(jnp.float32),
            w4.astype(jnp.bfloat16), b4.astype(jnp.float32),
            w5.reshape(1, -1).astype(jnp.float32),      # (1, 128)
            b5.reshape(1, 1).astype(jnp.float32))        # (1, 1)


@functools.partial(jax.jit, static_argnames=("tm",))
def heuristic_model_forward(x, prepared, *, tm=1024):
    """x: [B, input_dim] float32. prepared: output of prepare_params()."""
    B, D = x.shape
    w1b, b1, w2b, b2, w3b, b3, w4b, b4, w5_row, b5_s = prepared

    tm_eff, Bp = _choose_tiling(B, tm)
    xp = x if Bp == B else jnp.pad(x, ((0, Bp - B), (0, 0)))

    def resident(arr):
        # Block-index-constant: stays in VMEM across all grid steps.
        # (Default buffer count kept; pl.Buffered(1) deferred — <0.6 MiB at stake.)
        return pl.BlockSpec(arr.shape, lambda i: (0, 0))

    grid = (Bp // tm_eff,)
    out = pl.pallas_call(
        mlp_kernel,
        out_shape=jax.ShapeDtypeStruct((1, Bp), jnp.float32),
        grid_spec=pltpu.PrefetchScalarGridSpec(
            num_scalar_prefetch=0,
            grid=grid,
            in_specs=[
                pl.BlockSpec((tm_eff, D), lambda i: (i, 0)),
                resident(w1b), resident(b1),
                resident(w2b), resident(b2),
                resident(w3b), resident(b3),
                resident(w4b), resident(b4),
                resident(w5_row), resident(b5_s),
            ],
            out_specs=pl.BlockSpec((1, tm_eff), lambda i: (0, i)),
        ),
        compiler_params=pltpu.CompilerParams(
            dimension_semantics=("parallel",),
            # Documented headroom: safe up to tm~4096 incl. double-buffered x.
            vmem_limit_bytes=32 * 1024 * 1024),
    )(xp, w1b, b1, w2b, b2, w3b, b3, w4b, b4, w5_row, b5_s)

    # Back to the module's (B, 1) layout (drops any padded rows).
    return out[0, :B].reshape(B, 1)


def init_params(key, input_dim):
    """Deterministic init mimicking nn.Linear shapes (stored as [in, out])."""
    dims = [(input_dim, 128), (128, 256), (256, 256), (256, 128), (128, 1)]
    names = ["fc1", "fc2", "fc3", "fc4", "fc5"]
    params = {}
    for name, (din, dout) in zip(names, dims):
        key, kw, kb = jax.random.split(key, 3)
        bound = 1.0 / (din ** 0.5)  # PyTorch default uniform(-1/sqrt(fan_in), ...)
        w = jax.random.uniform(kw, (din, dout), jnp.float32, -bound, bound)
        b = jax.random.uniform(kb, (1, dout), jnp.float32, -bound, bound)
        params[name] = (w, b)
    return params


def reference_forward(x, params):
    """Mirrors the kernel's numerics: bf16 MXU inputs, f32 accumulate, f32 fc5."""
    def mm(a, w):
        return jnp.dot(a.astype(jnp.bfloat16), w.astype(jnp.bfloat16),
                       preferred_element_type=jnp.float32)
    h = x
    for name in ["fc1", "fc2", "fc3", "fc4"]:
        w, b = params[name]
        h = jnp.maximum(mm(h, w) + b, 0.0)
    w5, b5 = params["fc5"]
    return jnp.dot(h, w5, precision=jax.lax.Precision.HIGHEST) + b5


if __name__ == "__main__":
    key = jax.random.PRNGKey(0)
    input_dim = 32
    batch = 512  # -> 2 parallel tiles of 256 (keeps v7x's 2nd TensorCore busy)

    kx, kp = jax.random.split(key)
    x = jax.random.normal(kx, (batch, input_dim), jnp.float32)
    params = init_params(kp, input_dim)
    prepared = prepare_params(params)   # one-time weight prep (load time)

    out = heuristic_model_forward(x, prepared)
    out = jax.block_until_ready(out)

    ref = reference_forward(x, params)
    assert out.shape == (batch, 1)
    assert jnp.allclose(out, ref, atol=1e-2, rtol=1e-2), "mismatch vs reference"

    print("KERNEL_OK")
</pallas_src>

<mosaic_0001>
module attributes {stable_mosaic.version = 11 : i64} {
  func.func @mlp_kernel(%arg0: i32, %arg1: memref<256x32xf32, #tpu.memory_space<vmem>>, %arg2: memref<32x128xbf16, #tpu.memory_space<vmem>>, %arg3: memref<1x128xf32, #tpu.memory_space<vmem>>, %arg4: memref<128x256xbf16, #tpu.memory_space<vmem>>, %arg5: memref<1x256xf32, #tpu.memory_space<vmem>>, %arg6: memref<256x256xbf16, #tpu.memory_space<vmem>>, %arg7: memref<1x256xf32, #tpu.memory_space<vmem>>, %arg8: memref<256x128xbf16, #tpu.memory_space<vmem>>, %arg9: memref<1x128xf32, #tpu.memory_space<vmem>>, %arg10: memref<1x128xf32, #tpu.memory_space<vmem>>, %arg11: memref<1x1xf32, #tpu.memory_space<vmem>>, %arg12: memref<1x256xf32, #tpu.memory_space<vmem>>) attributes {dimension_semantics = [#tpu.dimension_semantics<parallel>], iteration_bounds = array<i64: 2>, scalar_prefetch = 0 : i64, scratch_operands = 0 : i64, tpu.core_type = #tpu.core_type<tc>, window_params = [{transform_indices = @transform_0, window_bounds = array<i64: 256, 32>}, {pipeline_mode = #tpu.pipeline_mode<synchronous>, transform_indices = @transform_1, window_bounds = array<i64: 32, 128>}, {pipeline_mode = #tpu.pipeline_mode<synchronous>, transform_indices = @transform_2, window_bounds = array<i64: 1, 128>}, {pipeline_mode = #tpu.pipeline_mode<synchronous>, transform_indices = @transform_3, window_bounds = array<i64: 128, 256>}, {pipeline_mode = #tpu.pipeline_mode<synchronous>, transform_indices = @transform_4, window_bounds = array<i64: 1, 256>}, {pipeline_mode = #tpu.pipeline_mode<synchronous>, transform_indices = @transform_5, window_bounds = array<i64: 256, 256>}, {pipeline_mode = #tpu.pipeline_mode<synchronous>, transform_indices = @transform_6, window_bounds = array<i64: 1, 256>}, {pipeline_mode = #tpu.pipeline_mode<synchronous>, transform_indices = @transform_7, window_bounds = array<i64: 256, 128>}, {pipeline_mode = #tpu.pipeline_mode<synchronous>, transform_indices = @transform_8, window_bounds = array<i64: 1, 128>}, {pipeline_mode = #tpu.pipeline_mode<synchronous>, transform_indices = @transform_9, window_bounds = array<i64: 1, 128>}, {pipeline_mode = #tpu.pipeline_mode<synchronous>, transform_indices = @transform_10, window_bounds = array<i64: 1, 1>}, {transform_indices = @transform_11, window_bounds = array<i64: 1, 256>}]} {
    %c0 = arith.constant 0 : index
    %c0_0 = arith.constant 0 : index
    %0 = vector.load %arg1[%c0, %c0_0] : memref<256x32xf32, #tpu.memory_space<vmem>>, vector<256x32xf32>
    %1 = arith.truncf %0 : vector<256x32xf32> to vector<256x32xbf16>
    %c0_1 = arith.constant 0 : index
    %c0_2 = arith.constant 0 : index
    %2 = vector.load %arg2[%c0_1, %c0_2] : memref<32x128xbf16, #tpu.memory_space<vmem>>, vector<32x128xbf16>
    %cst = arith.constant dense<0.000000e+00> : vector<256x128xf32>
    %3 = tpu.matmul %1, %2, %cst {dimension_numbers = #tpu.dot_dimension_numbers<[1], [0], [0], [1], [0, 0, 1, 1], [], []>} : vector<256x32xbf16>, vector<32x128xbf16>, vector<256x128xf32> -> vector<256x128xf32>
    %c0_3 = arith.constant 0 : index
    %c0_4 = arith.constant 0 : index
    %4 = vector.load %arg3[%c0_3, %c0_4] : memref<1x128xf32, #tpu.memory_space<vmem>>, vector<1x128xf32>
    %5 = vector.broadcast %4 : vector<1x128xf32> to vector<256x128xf32>
    %6 = arith.addf %3, %5 : vector<256x128xf32>
    %cst_5 = arith.constant 0.000000e+00 : f32
    %7 = vector.broadcast %cst_5 : f32 to vector<256x128xf32>
    %8 = arith.maximumf %6, %7 : vector<256x128xf32>
    %9 = arith.truncf %8 : vector<256x128xf32> to vector<256x128xbf16>
    %c0_6 = arith.constant 0 : index
    %c0_7 = arith.constant 0 : index
    %10 = vector.load %arg4[%c0_6, %c0_7] : memref<128x256xbf16, #tpu.memory_space<vmem>>, vector<128x256xbf16>
    %cst_8 = arith.constant dense<0.000000e+00> : vector<256x256xf32>
    %11 = tpu.matmul %9, %10, %cst_8 {dimension_numbers = #tpu.dot_dimension_numbers<[1], [0], [0], [1], [0, 0, 1, 1], [], []>} : vector<256x128xbf16>, vector<128x256xbf16>, vector<256x256xf32> -> vector<256x256xf32>
    %c0_9 = arith.constant 0 : index
    %c0_10 = arith.constant 0 : index
    %12 = vector.load %arg5[%c0_9, %c0_10] : memref<1x256xf32, #tpu.memory_space<vmem>>, vector<1x256xf32>
    %13 = vector.broadcast %12 : vector<1x256xf32> to vector<256x256xf32>
    %14 = arith.addf %11, %13 : vector<256x256xf32>
    %cst_11 = arith.constant 0.000000e+00 : f32
    %15 = vector.broadcast %cst_11 : f32 to vector<256x256xf32>
    %16 = arith.maximumf %14, %15 : vector<256x256xf32>
    %17 = arith.truncf %16 : vector<256x256xf32> to vector<256x256xbf16>
    %c0_12 = arith.constant 0 : index
    %c0_13 = arith.constant 0 : index
    %18 = vector.load %arg6[%c0_12, %c0_13] : memref<256x256xbf16, #tpu.memory_space<vmem>>, vector<256x256xbf16>
    %cst_14 = arith.constant dense<0.000000e+00> : vector<256x256xf32>
    %19 = tpu.matmul %17, %18, %cst_14 {dimension_numbers = #tpu.dot_dimension_numbers<[1], [0], [0], [1], [0, 0, 1, 1], [], []>} : vector<256x256xbf16>, vector<256x256xbf16>, vector<256x256xf32> -> vector<256x256xf32>
    %c0_15 = arith.constant 0 : index
    %c0_16 = arith.constant 0 : index
    %20 = vector.load %arg7[%c0_15, %c0_16] : memref<1x256xf32, #tpu.memory_space<vmem>>, vector<1x256xf32>
    %21 = vector.broadcast %20 : vector<1x256xf32> to vector<256x256xf32>
    %22 = arith.addf %19, %21 : vector<256x256xf32>
    %cst_17 = arith.constant 0.000000e+00 : f32
    %23 = vector.broadcast %cst_17 : f32 to vector<256x256xf32>
    %24 = arith.maximumf %22, %23 : vector<256x256xf32>
    %25 = arith.truncf %24 : vector<256x256xf32> to vector<256x256xbf16>
    %c0_18 = arith.constant 0 : index
    %c0_19 = arith.constant 0 : index
    %26 = vector.load %arg8[%c0_18, %c0_19] : memref<256x128xbf16, #tpu.memory_space<vmem>>, vector<256x128xbf16>
    %cst_20 = arith.constant dense<0.000000e+00> : vector<256x128xf32>
    %27 = tpu.matmul %25, %26, %cst_20 {dimension_numbers = #tpu.dot_dimension_numbers<[1], [0], [0], [1], [0, 0, 1, 1], [], []>} : vector<256x256xbf16>, vector<256x128xbf16>, vector<256x128xf32> -> vector<256x128xf32>
    %c0_21 = arith.constant 0 : index
    %c0_22 = arith.constant 0 : index
    %28 = vector.load %arg9[%c0_21, %c0_22] : memref<1x128xf32, #tpu.memory_space<vmem>>, vector<1x128xf32>
    %29 = vector.broadcast %28 : vector<1x128xf32> to vector<256x128xf32>
    %30 = arith.addf %27, %29 : vector<256x128xf32>
    %cst_23 = arith.constant 0.000000e+00 : f32
    %31 = vector.broadcast %cst_23 : f32 to vector<256x128xf32>
    %32 = arith.maximumf %30, %31 : vector<256x128xf32>
    %c0_24 = arith.constant 0 : index
    %c0_25 = arith.constant 0 : index
    %33 = vector.load %arg10[%c0_24, %c0_25] : memref<1x128xf32, #tpu.memory_space<vmem>>, vector<1x128xf32>
    %34 = vector.broadcast %33 : vector<1x128xf32> to vector<256x128xf32>
    %35 = arith.mulf %32, %34 : vector<256x128xf32>
    %cst_26 = arith.constant dense<0.000000e+00> : vector<256xf32>
    %36 = vector.multi_reduction <add>, %35, %cst_26 [1] : vector<256x128xf32> to vector<256xf32>
    %37 = vector.shape_cast %36 : vector<256xf32> to vector<1x256xf32>
    %c0_27 = arith.constant 0 : index
    %c0_28 = arith.constant 0 : index
    %38 = vector.load %arg11[%c0_27, %c0_28] : memref<1x1xf32, #tpu.memory_space<vmem>>, vector<1x1xf32>
    %39 = vector.broadcast %38 : vector<1x1xf32> to vector<1x256xf32>
    %40 = arith.addf %37, %39 : vector<1x256xf32>
    %c0_29 = arith.constant 0 : index
    %c0_30 = arith.constant 0 : index
    %41 = vector.load %arg12[%c0_29, %c0_30] : memref<1x256xf32, #tpu.memory_space<vmem>>, vector<1x256xf32>
    tpu.vector_store %arg12[%c0_29, %c0_30], %40 {strides = array<i32>} : memref<1x256xf32, #tpu.memory_space<vmem>>, vector<1x256xf32>,
    return
  }
  func.func @transform_0(%arg0: i32) -> (i32, i32) {
    %c0_i32 = arith.constant 0 : i32
    %c0_i32_0 = arith.constant 0 : i32
    return %arg0, %c0_i32 : i32, i32
  }
  func.func @transform_1(%arg0: i32) -> (i32, i32) {
    %c0_i32 = arith.constant 0 : i32
    %c0_i32_0 = arith.constant 0 : i32
    %c0_i32_1 = arith.constant 0 : i32
    return %c0_i32, %c0_i32_0 : i32, i32
  }
  func.func @transform_2(%arg0: i32) -> (i32, i32) {
    %c0_i32 = arith.constant 0 : i32
    %c0_i32_0 = arith.constant 0 : i32
    %c0_i32_1 = arith.constant 0 : i32
    return %c0_i32, %c0_i32_0 : i32, i32
  }
  func.func @transform_3(%arg0: i32) -> (i32, i32) {
    %c0_i32 = arith.constant 0 : i32
    %c0_i32_0 = arith.constant 0 : i32
    %c0_i32_1 = arith.constant 0 : i32
    return %c0_i32, %c0_i32_0 : i32, i32
  }
  func.func @transform_4(%arg0: i32) -> (i32, i32) {
    %c0_i32 = arith.constant 0 : i32
    %c0_i32_0 = arith.constant 0 : i32
    %c0_i32_1 = arith.constant 0 : i32
    return %c0_i32, %c0_i32_0 : i32, i32
  }
  func.func @transform_5(%arg0: i32) -> (i32, i32) {
    %c0_i32 = arith.constant 0 : i32
    %c0_i32_0 = arith.constant 0 : i32
    %c0_i32_1 = arith.constant 0 : i32
    return %c0_i32, %c0_i32_0 : i32, i32
  }
  func.func @transform_6(%arg0: i32) -> (i32, i32) {
    %c0_i32 = arith.constant 0 : i32
    %c0_i32_0 = arith.constant 0 : i32
    %c0_i32_1 = arith.constant 0 : i32
    return %c0_i32, %c0_i32_0 : i32, i32
  }
  func.func @transform_7(%arg0: i32) -> (i32, i32) {
    %c0_i32 = arith.constant 0 : i32
    %c0_i32_0 = arith.constant 0 : i32
    %c0_i32_1 = arith.constant 0 : i32
    return %c0_i32, %c0_i32_0 : i32, i32
  }
  func.func @transform_8(%arg0: i32) -> (i32, i32) {
    %c0_i32 = arith.constant 0 : i32
    %c0_i32_0 = arith.constant 0 : i32
    %c0_i32_1 = arith.constant 0 : i32
    return %c0_i32, %c0_i32_0 : i32, i32
  }
  func.func @transform_9(%arg0: i32) -> (i32, i32) {
    %c0_i32 = arith.constant 0 : i32
    %c0_i32_0 = arith.constant 0 : i32
    %c0_i32_1 = arith.constant 0 : i32
    return %c0_i32, %c0_i32_0 : i32, i32
  }
  func.func @transform_10(%arg0: i32) -> (i32, i32) {
    %c0_i32 = arith.constant 0 : i32
    %c0_i32_0 = arith.constant 0 : i32
    %c0_i32_1 = arith.constant 0 : i32
    return %c0_i32, %c0_i32_0 : i32, i32
  }
  func.func @transform_11(%arg0: i32) -> (i32, i32) {
    %c0_i32 = arith.constant 0 : i32
    %c0_i32_0 = arith.constant 0 : i32
    return %c0_i32, %arg0 : i32, i32
  }
}

</mosaic_0001>

<bundles_post_ra>
// kernel: heuristic_model_forward.1
= control target key start
LH: loop header
LB: loop body
LE: loop exit
PB: predicated region body
PF: predicated region fallthrough
CT: control target
= control target key end

     0   :  { %s7160_s0 = inlined_call_operand.vmem [shape: f32[512,32], index: 0, kind: input, shape index: {}]   ;;  %s7161_s1 = inlined_call_operand.vmem [shape: bf16[32,128], index: 1, kind: input, shape index: {}]   ;;  %s7162_s2 = inlined_call_operand.vmem [shape: f32[1,128], index: 2, kind: input, shape index: {}]   ;;  %s7163_s3 = inlined_call_operand.vmem [shape: bf16[128,256], index: 3, kind: input, shape index: {}]   ;;  %s7164_s4 = inlined_call_operand.vmem [shape: f32[1,256], index: 4, kind: input, shape index: {}]   ;;  %s7165_s5 = inlined_call_operand.vmem [shape: bf16[256,256], index: 5, kind: input, shape index: {}]   ;;  %s7166_s6 = inlined_call_operand.vmem [shape: f32[1,256], index: 6, kind: input, shape index: {}]   ;;  %s7167_s7 = inlined_call_operand.vmem [shape: bf16[256,128], index: 7, kind: input, shape index: {}]   ;;  %s7168_s8 = inlined_call_operand.vmem [shape: f32[1,128], index: 8, kind: input, shape index: {}]   ;;  %s7169_s9 = inlined_call_operand.vmem [shape: f32[1,128], index: 9, kind: input, shape index: {}]   ;;  %s7170_s10 = inlined_call_operand.<no memory space> [shape: f32[1,1], index: 10, kind: input, shape index: {}]   ;;  %s7171_s11 = inlined_call_operand.hbm [shape: f32[1,512], index: 11, kind: output, shape index: {}]  }
   0x1   :  { %7172 = sst [smem:[#allocation6_spill]] %s7160_s0  ;;  %v16_v0 = vstv %s7170_s10 }
   0x2   :  { %17 = vst [vmem:[#allocation2] sm:$0x1] %v16_v0 }
   0x3   :  { %18 = vsyncpa [#allocation4], 0 }
   0x4   :  { %20 = vsyncpa [#allocation4 + $0x1], 0  ;;  %s5629_s19 = smov 0   ;;  %s5631_s20 = smov 0  }
   0x5   :  { %s5633_s21 = smov 0   ;;  %s5635_s22 = smov 0  }
   0x6 LB: > { %s5087_s10 = sadd.s32 4294967295, %s5561_s22   ;;  %s5088_s23 = sadd.s32 4294967294, %s5561_s22   ;;  %s5561_s22 = sphi %s5635_s22, %s7179_s22   ;;  %s5557_s21 = sphi %s5633_s21, %s7178_s21   ;;  %s5553_s20 = sphi %s5631_s20, %s7177_s20   ;;  %s5549_s19 = sphi %s5629_s19, %s7176_s19  }
   0x7   : > { %s5652_s24 = sadd.s32 1, %s5561_s22   ;;  %s269_s25 = sadd.s32 1, %s5557_s21 }
   0x8   : > { %s266_s26 = ssub.s32 %s5561_s22, %s5652_s24  ;;  %p279_p0 = scmp.ne.s32.totalorder %s5557_s21, %s5553_s20 }
   0x9   : > { %p267_p1 = scmp.eq.s32.totalorder %s266_s26, 0  ;;  %p280_p2 = scmp.eq.s32.totalorder %s5087_s10, 1 }
   0xa   : > { %p285_p3 = scmp.ne.s32.totalorder %s5553_s20, %s5549_s19  ;;  %p286_p4 = scmp.eq.s32.totalorder %s5088_s23, 1 }
   0xb   : > { %s5662_s27 = scalar_select %p267_p1, %s5557_s21, %s269_s25  }
   0xc   : > { %p5664_p5 = por %p280_p2, %p279_p0  ;;  %p5668_p6 = por %p286_p4, %p285_p3 }
   0xd   : > { %p5091_p7 = scmp.ge.s32.totalorder %s5561_s22, 1  ;;  %p343_p8 = scmp.lt.s32.totalorder %s5561_s22, 3 }
   0xf   : > { %p344_p9 = pnand %p5091_p7, %p343_p8 }
  0x10   : > { %s5677_s13 = sshll.u32 (!%p344_p9), %s5087_s10, 5  ;;  %s7175_s0 = sld [smem:[#allocation6_spill]] (!%p344_p9) }
  0x11   : > { %347 = sbr.rel (%p344_p9) target bundleno = 1416 (0x588), region = 64  ;;  %p384_p10 = scmp.lt.s32.totalorder (!%p344_p9), %s5677_s13, 63 }
  0x12   : > { %s5565_s15 = smov (!%p344_p9), [#allocation3]  }
  0x13   : > { %s5505_s16 = sshll.u32 (!%p344_p9), %s5565_s15, 4  ;;  %s5506_s16 = int_to_ptr.vmem [resolvable:$false] %s5505_s16 }
  0x16   : > { %v5411_v1 = vld [vmem:[%s7161_s1 + $0x8] sm:$0xff]   ;;  %v5412_v2 = vld [vmem:[%s7161_s1] sm:$0xff]   ;;  %v5413_v3 = vld [vmem:[%s7163_s3 + $0x74] ss:$8 sps:$4 sm:$0xff]   ;;  %s385_s18 = scalar_select %p384_p10, %s5677_s13, 63  ;;  %vm462_vm0 = vcmask 261120  }
  0x17   : > { %5316 = vmatprep.subr.bf16.mxu0 %v5411_v1  ;;  %v5415_v4 = vld [vmem:[%s7163_s3 + $0x70] ss:$8 sps:$4 sm:$0xff]   ;;  %828 = vmatprep.subr.bf16.mxu1 %v5413_v3  ;;  %v5416_v5 = vld [vmem:[%s7163_s3 + $0x64] ss:$8 sps:$4 sm:$0xff]   ;;  %v5418_v6 = vld [vmem:[%s7163_s3 + $0x60] ss:$8 sps:$4 sm:$0xff]  }
  0x18   : > { %5317 = vmatpush3.bf16.msra.mxu0 %v5411_v1  ;;  %s5094_s30 = sshll.u32 %s385_s18, 3  ;;  %829 = vmatpush1.bf16.msra.mxu1 %v5415_v4  ;;  %v5419_v7 = vld [vmem:[%s7163_s3 + $0x54] ss:$8 sps:$4 sm:$0xff]   ;;  %v5421_v17 = vld [vmem:[%s7163_s3 + $0x50] ss:$8 sps:$4 sm:$0xff]   ;;  %v5563_v3 = vmov 0  }
  0x19   : > { %5318 = vmatprep.subr.bf16.mxu0 %v5412_v2  ;;  %s5699_s17 = scalar_lea.vmem %s7175_s0, %s5094_s30  ;;  %830 = vmatprep.subr.bf16.mxu1 %v5416_v5  ;;  %v5422_v18 = vld [vmem:[%s7163_s3 + $0x44] ss:$8 sps:$4 sm:$0xff]   ;;  %v5424_v25 = vld [vmem:[%s7163_s3 + $0x40] ss:$8 sps:$4 sm:$0xff]   ;;  %v5425_v28 = vld [vmem:[%s7163_s3 + $0x34] ss:$8 sps:$4 sm:$0xff]   ;;  %s5027_s30 = scalar_lea.hbm %s7171_s11, %s5677_s13 }
  0x1a   : > { %v391_v8 = vld [vmem:[%s5699_s17] sm:$0xff]  ;;  %v392_v9 = vld [vmem:[%s5699_s17 + $0x8] sm:$0xff]  ;;  %v393_v10 = vld [vmem:[%s5699_s17 + $0x10] sm:$0xff]  ;;  %860 = vmatprep.mubr.bf16.mxu1 %v5563_v3  ;;  %5409 = vset.pattern.permute.xlu0 %v5563_v3  ;;  %vm4814_vm1 = vcmask 130112   ;;  %vm4821_vm2 = vcmask 195712   ;;  %vm4828_vm3 = vcmask 261312  }
  0x1b   : > { %v423_v11 = vpack.c.bf16 %v392_v9, %v391_v8  ;;  %v394_v12 = vld [vmem:[%s5699_s17 + $0x18] sm:$0xff]  ;;  %v395_v13 = vld [vmem:[%s5699_s17 + $0x20] sm:$0xff]  ;;  %v396_v14 = vld [vmem:[%s5699_s17 + $0x28] sm:$0xff]  ;;  %5410 = vset.pattern.permute.xlu1 %v5563_v3  ;;  %vm4835_vm4 = vcmask 326912   ;;  %vm4842_vm5 = vcmask 392512   ;;  %vm4849_vm6 = vcmask 458112  }
  0x1c   : > { %5319 = vmatpush3.bf16.msra.mxu0 %v5412_v2  ;;  %v424_v15 = vpack.c.bf16 %v394_v12, %v393_v10  ;;  %v425_v16 = vpack.c.bf16 %v396_v14, %v395_v13  ;;  %831 = vmatpush1.bf16.msra.mxu1 %v5418_v6  ;;  %v397_v19 = vld [vmem:[%s5699_s17 + $0x30] sm:$0xff]  ;;  %v398_v20 = vld [vmem:[%s5699_s17 + $0x38] sm:$0xff]  ;;  %v399_v21 = vld [vmem:[%s5699_s17 + $0x40] sm:$0xff]  ;;  %vm4856_vm7 = vcmask 523712   ;;  %vm4863_vm8 = vcmask 589312  }
  0x1d   : > { %5320 = vmatprep.mubr.msk.bf16.mxu0 %vm462_vm0, %v423_v11  ;;  %832 = vmatprep.subr.bf16.mxu1 %v5419_v7  ;;  %v400_v22 = vld [vmem:[%s5699_s17 + $0x48] sm:$0xff]  ;;  %v426_v23 = vpack.c.bf16 %v398_v20, %v397_v19  ;;  %v401_v26 = vld [vmem:[%s5699_s17 + $0x50] sm:$0xff]  ;;  %v402_v27 = vld [vmem:[%s5699_s17 + $0x58] sm:$0xff]  ;;  %vm4870_vm9 = vcmask 654912   ;;  %vm4877_vm10 = vcmask 720512   ;;  %vm4884_vm11 = vcmask 786112  }
  0x1e   : > { %v427_v24 = vpack.c.bf16 %v400_v22, %v399_v21  ;;  %v403_v29 = vld [vmem:[%s5699_s17 + $0x60] sm:$0xff]  ;;  %v404_v30 = vld [vmem:[%s5699_s17 + $0x68] sm:$0xff]  ;;  %v5427_v31 = vld [vmem:[%s7163_s3 + $0x30] ss:$8 sps:$4 sm:$0xff]   ;;  %v428_v32 = vpack.c.bf16 %v402_v27, %v401_v26  ;;  %vm4891_vm12 = vcmask 851712   ;;  %vm4898_vm13 = vcmask 917312  }
  0x1f   : > { %5321 = vmatmul.mubr.msk.bf16.vlgmr.msra.gmra.mxu0 %vm462_vm0, %v424_v15  ;;  %v429_v33 = vpack.c.bf16 %v404_v30, %v403_v29  ;;  %v405_v34 = vld [vmem:[%s5699_s17 + $0x70] sm:$0xff]  ;;  %v406_v35 = vld [vmem:[%s5699_s17 + $0x78] sm:$0xff]  ;;  %v407_v36 = vld [vmem:[%s5699_s17 + $0x80] sm:$0xff]  ;;  %vm4905_vm14 = vcmask 982912   ;;  %vm4912_vm15 = vcmask 1048512  }
  0x20   : > { %5324 = vmatprep.mubr.msk.bf16.mxu0 %vm462_vm0, %v425_v16  ;;  %833 = vmatpush1.bf16.msra.mxu1 %v5421_v17  ;;  %v408_v37 = vld [vmem:[%s5699_s17 + $0x88] sm:$0xff]  ;;  %v430_v38 = vpack.c.bf16 %v406_v35, %v405_v34  ;;  %v409_v40 = vld [vmem:[%s5699_s17 + $0x90] sm:$0xff]  ;;  %v410_v41 = vld [vmem:[%s5699_s17 + $0x98] sm:$0xff] }
  0x21   : > { %834 = vmatprep.subr.bf16.mxu1 %v5422_v18  ;;  %v431_v39 = vpack.c.bf16 %v408_v37, %v407_v36  ;;  %v411_v42 = vld [vmem:[%s5699_s17 + $0xa0] sm:$0xff]  ;;  %v412_v43 = vld [vmem:[%s5699_s17 + $0xa8] sm:$0xff]  ;;  %v432_v44 = vpack.c.bf16 %v410_v41, %v409_v40  ;;  %v413_v46 = vld [vmem:[%s5699_s17 + $0xb0] sm:$0xff] }
  0x22   : > { %v433_v45 = vpack.c.bf16 %v412_v43, %v411_v42  ;;  %v414_v47 = vld [vmem:[%s5699_s17 + $0xb8] sm:$0xff]  ;;  %v415_v48 = vld [vmem:[%s5699_s17 + $0xc0] sm:$0xff]  ;;  %v416_v49 = vld [vmem:[%s5699_s17 + $0xc8] sm:$0xff] }
  0x23   : > { %v434_v50 = vpack.c.bf16 %v414_v47, %v413_v46  ;;  %v435_v51 = vpack.c.bf16 %v416_v49, %v415_v48  ;;  %v417_v52 = vld [vmem:[%s5699_s17 + $0xd0] sm:$0xff]  ;;  %v418_v53 = vld [vmem:[%s5699_s17 + $0xd8] sm:$0xff]  ;;  %v419_v54 = vld [vmem:[%s5699_s17 + $0xe0] sm:$0xff] }
  0x24   : > { %835 = vmatpush1.bf16.msra.mxu1 %v5424_v25  ;;  %v420_v55 = vld [vmem:[%s5699_s17 + $0xe8] sm:$0xff]  ;;  %v436_v56 = vpack.c.bf16 %v418_v53, %v417_v52  ;;  %v421_v58 = vld [vmem:[%s5699_s17 + $0xf0] sm:$0xff]  ;;  %v422_v59 = vld [vmem:[%s5699_s17 + $0xf8] sm:$0xff]  ;;  %s380_s17 = sand.u32 1, %s5553_s20  }
  0x25   : > { %836 = vmatprep.subr.bf16.mxu1 %v5425_v28  ;;  %v437_v57 = vpack.c.bf16 %v420_v55, %v419_v54  ;;  %v438_v60 = vpack.c.bf16 %v422_v59, %v421_v58  ;;  %v5428_v61 = vld [vmem:[%s7163_s3 + $0x24] ss:$8 sps:$4 sm:$0xff]   ;;  %v5430_v62 = vld [vmem:[%s7163_s3 + $0x20] ss:$8 sps:$4 sm:$0xff]   ;;  %v5431_v63 = vld [vmem:[%s7163_s3 + $0x14] ss:$8 sps:$4 sm:$0xff]  }
  0x26   : > { %v5433_v0 = vld [vmem:[%s7163_s3 + $0x10] ss:$8 sps:$4 sm:$0xff]   ;;  %v5434_v1 = vld [vmem:[%s7163_s3 + $0x4] ss:$8 sps:$4 sm:$0xff]   ;;  %v5436_v2 = vld [vmem:[%s7163_s3] ss:$8 sps:$4 sm:$0xff]  }
  0x27   : > { %5325 = vmatmul.mubr.msk.bf16.gmra.mxu0 %vm462_vm0, %v426_v23  ;;  %v5791_v6 = vld [vmem:[%s7162_s2] ss:$0 sm:$0xff]  ;;  %v5437_v9 = vld [vmem:[%s7165_s5 + $0x70] ss:$8 sps:$4 sm:$0xff]   ;;  %v5439_v10 = vld [vmem:[%s7165_s5 + $0x74] ss:$8 sps:$4 sm:$0xff]  }
  0x28   : > { %5328 = vmatprep.mubr.msk.bf16.mxu0 %vm462_vm0, %v427_v24  ;;  %837 = vmatpush1.bf16.msra.mxu1 %v5427_v31  ;;  %v5442_v12 = vld [vmem:[%s7165_s5 + $0x64] ss:$8 sps:$4 sm:$0xff]   ;;  %v5440_v15 = vld [vmem:[%s7165_s5 + $0x60] ss:$8 sps:$4 sm:$0xff]   ;;  %v5445_v18 = vld [vmem:[%s7165_s5 + $0x54] ss:$8 sps:$4 sm:$0xff]  }
  0x29   : > { %838 = vmatprep.subr.bf16.mxu1 %v5428_v61  ;;  %1321 = vmatprep.subr.bf16.mxu0 %v5439_v10  ;;  %v5443_v23 = vld [vmem:[%s7165_s5 + $0x50] ss:$8 sps:$4 sm:$0xff]   ;;  %v5448_v25 = vld [vmem:[%s7165_s5 + $0x44] ss:$8 sps:$4 sm:$0xff]   ;;  %v5446_v28 = vld [vmem:[%s7165_s5 + $0x40] ss:$8 sps:$4 sm:$0xff]  }
  0x2a   : > { %1322 = vmatpush1.bf16.msra.mxu0 %v5437_v9  ;;  %v5451_v30 = vld [vmem:[%s7165_s5 + $0x34] ss:$8 sps:$4 sm:$0xff]   ;;  %v5449_v35 = vld [vmem:[%s7165_s5 + $0x30] ss:$8 sps:$4 sm:$0xff]   ;;  %v5454_v36 = vld [vmem:[%s7165_s5 + $0x24] ss:$8 sps:$4 sm:$0xff]  }
  0x2b   : > { %1323 = vmatprep.subr.bf16.mxu0 %v5442_v12  ;;  %v5452_v40 = vld [vmem:[%s7165_s5 + $0x20] ss:$8 sps:$4 sm:$0xff]   ;;  %v5457_v41 = vld [vmem:[%s7165_s5 + $0x14] ss:$8 sps:$4 sm:$0xff]   ;;  %v5455_v46 = vld [vmem:[%s7165_s5 + $0x10] ss:$8 sps:$4 sm:$0xff]  }
  0x2c   : > { %839 = vmatpush1.bf16.msra.mxu1 %v5430_v62  ;;  %v5460_v47 = vld [vmem:[%s7165_s5 + $0x4] ss:$8 sps:$4 sm:$0xff]   ;;  %v5463_v52 = vld [vmem:[%s7165_s5 + $0xf4] ss:$8 sps:$4 sm:$0xff]   ;;  %v5464_v62 = vld [vmem:[%s7165_s5 + $0xe0] ss:$8 sps:$4 sm:$0xff]  }
  0x2d   : > { %840 = vmatprep.subr.bf16.mxu1 %v5431_v63  ;;  %v5466_v58 = vld [vmem:[%s7165_s5 + $0xe4] ss:$8 sps:$4 sm:$0xff]   ;;  %v5469_v63 = vld [vmem:[%s7165_s5 + $0xd4] ss:$8 sps:$4 sm:$0xff]   ;;  %s5092_s23 = sshll.u32 %s380_s17, 1  ;;  %s5015_s12 = scalar_lea.sflag [#allocation4], %s380_s17 }
  0x2e   : > { %1324 = vmatpush1.bf16.msra.mxu0 %v5440_v15  ;;  %v5475_v12 = vld [vmem:[%s7165_s5 + $0xb4] ss:$8 sps:$4 sm:$0xff]   ;;  %s382_s25 = scalar_lea.vmem [#allocation3], %s5092_s23  ;;  %s5507_s23 = scalar_lea.vmem %s5506_s16, 64 }
  0x2f   : > { %5329 = vmatmul.mubr.msk.bf16.gmra.mxu0 %vm462_vm0, %v428_v32  ;;  %1325 = vmatprep.subr.bf16.mxu0 %v5445_v18  ;;  %s5029_s18 = sshll.u32 %s382_s25, 4  ;;  %s5030_s18 = int_to_ptr.vmem [resolvable:$true] %s5029_s18 }
  0x30   : > { %5332 = vmatprep.mubr.msk.bf16.mxu0 %vm462_vm0, %v429_v33  ;;  %841 = vmatpush1.bf16.msra.mxu1 %v5433_v0  ;;  %s5501_s14 = scalar_lea.vmem %s5030_s18, 32  ;;  %p5508_p0 = scmp.lt.s32.totalorder %s5030_s18, %s5506_s16 }
  0x31   : > { %842 = vmatprep.subr.bf16.mxu1 %v5434_v1  ;;  %p5502_p11 = scmp.ne.s32.totalorder %s5030_s18, %s5501_s14  ;;  %p5509_p1 = scmp.lt.s32.totalorder %s5507_s23, %s5501_s14 }
  0x32   : > { %1326 = vmatpush1.bf16.msra.mxu0 %v5443_v23 }
  0x33   : > { %1327 = vmatprep.subr.bf16.mxu0 %v5448_v25  ;;  %p5503_p12 = pnand %p5502_p11, %p5664_p5  ;;  %p5510_p2 = por %p5509_p1, %p5508_p0 }
  0x34   : > { %843 = vmatpush1.bf16.msra.mxu1 %v5436_v2 }
  0x35   : > { %p5504_p13 = pneg %p5503_p12 }
  0x36   : > { %1328 = vmatpush1.bf16.msra.mxu0 %v5446_v28 }
  0x37   : > { %5333 = vmatmul.mubr.msk.bf16.gmra.mxu0 %vm462_vm0, %v430_v38  ;;  %1329 = vmatprep.subr.bf16.mxu0 %v5451_v30  ;;  %p5511_p3 = pnand %p5510_p2, %p5504_p13 }
  0x38   : > { %5336 = vmatprep.mubr.msk.bf16.mxu0 %vm462_vm0, %v431_v39 }
  0x3a   : > { %1330 = vmatpush1.bf16.msra.mxu0 %v5449_v35 }
  0x3b   : > { %1331 = vmatprep.subr.bf16.mxu0 %v5454_v36 }
  0x3e   : > { %1332 = vmatpush1.bf16.msra.mxu0 %v5452_v40  ;;  %v5476_v40 = vld [vmem:[%s7165_s5 + $0xa0] ss:$8 sps:$4 sm:$0xff]  }
  0x3f   : > { %5337 = vmatmul.mubr.msk.bf16.gmra.mxu0 %vm462_vm0, %v432_v44  ;;  %1333 = vmatprep.subr.bf16.mxu0 %v5457_v41 }
  0x40   : > { %5340 = vmatprep.mubr.msk.bf16.mxu0 %vm462_vm0, %v433_v45 }
  0x42   : > { %1334 = vmatpush1.bf16.msra.mxu0 %v5455_v46  ;;  %v5479_v46 = vld [vmem:[%s7165_s5 + $0x90] ss:$8 sps:$4 sm:$0xff]  }
  0x43   : > { %1335 = vmatprep.subr.bf16.mxu0 %v5460_v47 }
  0x47   : > { %5341 = vmatmul.mubr.msk.bf16.gmra.mxu0 %vm462_vm0, %v434_v50 }
  0x48   : > { %5344 = vmatprep.mubr.msk.bf16.mxu0 %vm462_vm0, %v435_v51  ;;  %v5458_v51 = vld [vmem:[%s7165_s5] ss:$8 sps:$4 sm:$0xff]  }
  0x49   : > { %1336 = vmatpush1.bf16.msra.mxu0 %v5458_v51 }
  0x4a   : > { %1337 = vmatprep.subr.bf16.mxu0 %v5463_v52  ;;  %v5482_v52 = vld [vmem:[%s7165_s5 + $0x80] ss:$8 sps:$4 sm:$0xff]  }
  0x4f   : > { %5345 = vmatmul.mubr.msk.bf16.gmra.mxu0 %vm462_vm0, %v436_v56 }
  0x50   : > { %5348 = vmatprep.mubr.msk.bf16.mxu0 %vm462_vm0, %v437_v57  ;;  %v5461_v57 = vld [vmem:[%s7165_s5 + $0xf0] ss:$8 sps:$4 sm:$0xff]  }
  0x51   : > { %1338 = vmatpush2.bf16.msra.mxu0 %v5461_v57 }
  0x52   : > { %1339 = vmatprep.subr.bf16.mxu0 %v5466_v58 }
  0x55   : > { %1340 = vmatpush2.bf16.msra.mxu0 %v5464_v62 }
  0x56   : > { %1341 = vmatprep.subr.bf16.mxu0 %v5469_v63 }
  0x57   : > { %5349 = vmatmul.mubr.msk.bf16.gmra.mxu0 %vm462_vm0, %v438_v60 }
  0xdf   : > { %v5322_v4 = vpop.f32.mrf.mxu0 }
  0xe0   : > { %v554_v24 = vadd.f32 %v5322_v4, %v5791_v6 }
  0xe1   : > { %v545_v5 = vpop.f32.mrf.mxu0 }
  0xe2   : > { %v546_v8 = vadd.f32 %v5791_v6, %v545_v5  ;;  %v674_v29 = vmax.f32 %v554_v24, 0.0  ;;  %v5467_v5 = vld [vmem:[%s7165_s5 + $0xd0] ss:$8 sps:$4 sm:$0xff]  }
  0xe3   : > { %v5323_v7 = vpop.f32.mrf.mxu0  ;;  %1342 = vmatpush2.bf16.msra.mxu0 %v5467_v5 }
  0xe4   : > { %v672_v16 = vmax.f32 %v546_v8, 0.0  ;;  %v557_v20 = vadd.f32 %v5323_v7, %v5791_v6  ;;  %v5472_v7 = vld [vmem:[%s7165_s5 + $0xc4] ss:$8 sps:$4 sm:$0xff]  }
  0xe5   : > { %v548_v11 = vpop.f32.mrf.mxu0  ;;  %1343 = vmatprep.subr.bf16.mxu0 %v5472_v7 }
  0xe6   : > { %v549_v13 = vadd.f32 %v5791_v6, %v548_v11  ;;  %v675_v26 = vmax.f32 %v557_v20, 0.0  ;;  %v5470_v11 = vld [vmem:[%s7165_s5 + $0xc0] ss:$8 sps:$4 sm:$0xff]  }
  0xe7   : > { %v5326_v14 = vpop.f32.mrf.mxu0  ;;  %1344 = vmatpush2.bf16.msra.mxu0 %v5470_v11 }
  0xe8   : > { %v673_v17 = vmax.f32 %v549_v13, 0.0  ;;  %v705_v31 = vpack.c.bf16 %v675_v26, %v674_v29  ;;  %v570_v42 = vadd.f32 %v5326_v14, %v5791_v6  ;;  %1345 = vmatprep.subr.bf16.mxu0 %v5475_v12 }
  0xe9   : > { %v561_v19 = vpop.f32.mrf.mxu0 }
  0xea   : > { %v704_v21 = vpack.c.bf16 %v673_v17, %v672_v16  ;;  %v562_v32 = vadd.f32 %v5791_v6, %v561_v19  ;;  %v678_v48 = vmax.f32 %v570_v42, 0.0  ;;  %v5473_v17 = vld [vmem:[%s7165_s5 + $0xb0] ss:$8 sps:$4 sm:$0xff]  }
  0xeb   : > { %v5327_v22 = vpop.f32.mrf.mxu0  ;;  %1346 = vmatpush2.bf16.msra.mxu0 %v5473_v17 }
  0xec   : > { %861 = vmatmul.mubr.bf16.vlgmr.msra.gmra.mxu1 %v704_v21  ;;  %v676_v37 = vmax.f32 %v562_v32, 0.0  ;;  %v573_v43 = vadd.f32 %v5327_v22, %v5791_v6 }
  0xed   : > { %870 = vmatprep.mubr.bf16.mxu1 %v5563_v3  ;;  %v564_v27 = vpop.f32.mrf.mxu0 }
  0xee   : > { %v565_v33 = vadd.f32 %v5791_v6, %v564_v27  ;;  %v679_v49 = vmax.f32 %v573_v43, 0.0 }
  0xef   : > { %v5330_v34 = vpop.f32.mrf.mxu0 }
  0xf0   : > { %v677_v38 = vmax.f32 %v565_v33, 0.0  ;;  %v707_v53 = vpack.c.bf16 %v679_v49, %v678_v48  ;;  %v586_v0 = vadd.f32 %v5330_v34, %v5791_v6 }
  0xf1   : > { %v577_v39 = vpop.f32.mrf.mxu0 }
  0xf2   : > { %v706_v44 = vpack.c.bf16 %v677_v38, %v676_v37  ;;  %v578_v54 = vadd.f32 %v5791_v6, %v577_v39  ;;  %v682_v8 = vmax.f32 %v586_v0, 0.0  ;;  %v5478_v39 = vld [vmem:[%s7165_s5 + $0xa4] ss:$8 sps:$4 sm:$0xff]  }
  0xf3   : > { %v5331_v45 = vpop.f32.mrf.mxu0  ;;  %1347 = vmatprep.subr.bf16.mxu0 %v5478_v39  ;;  %v5487_v39 = vld [vmem:[%s7167_s7 + $0x70] sm:$0xff]  }
  0xf4   : > { %871 = vmatmul.mubr.bf16.gmra.mxu1 %v705_v31  ;;  %v680_v59 = vmax.f32 %v578_v54, 0.0  ;;  %v589_v1 = vadd.f32 %v5331_v45, %v5791_v6  ;;  %1348 = vmatpush2.bf16.msra.mxu0 %v5476_v40 }
  0xf5   : > { %880 = vmatprep.mubr.bf16.mxu1 %v5563_v3  ;;  %v580_v50 = vpop.f32.mrf.mxu0 }
  0xf6   : > { %v581_v55 = vadd.f32 %v5791_v6, %v580_v50  ;;  %v683_v9 = vmax.f32 %v589_v1, 0.0  ;;  %v5484_v50 = vld [vmem:[%s7165_s5 + $0x84] ss:$8 sps:$4 sm:$0xff]  }
  0xf7   : > { %v5334_v56 = vpop.f32.mrf.mxu0 }
  0xf8   : > { %v681_v60 = vmax.f32 %v581_v55, 0.0  ;;  %v709_v13 = vpack.c.bf16 %v683_v9, %v682_v8  ;;  %v602_v21 = vadd.f32 %v5334_v56, %v5791_v6 }
  0xf9   : > { %v593_v61 = vpop.f32.mrf.mxu0 }
  0xfa   : > { %v708_v2 = vpack.c.bf16 %v681_v60, %v680_v59  ;;  %v594_v14 = vadd.f32 %v5791_v6, %v593_v61  ;;  %v686_v25 = vmax.f32 %v602_v21, 0.0 }
  0xfb   : > { %v5335_v4 = vpop.f32.mrf.mxu0 }
  0xfc   : > { %881 = vmatmul.mubr.bf16.gmra.mxu1 %v706_v44  ;;  %v684_v18 = vmax.f32 %v594_v14, 0.0  ;;  %v605_v22 = vadd.f32 %v5335_v4, %v5791_v6  ;;  %v5481_v44 = vld [vmem:[%s7165_s5 + $0x94] ss:$8 sps:$4 sm:$0xff]  }
  0xfd   : > { %890 = vmatprep.mubr.bf16.mxu1 %v5563_v3  ;;  %v596_v10 = vpop.f32.mrf.mxu0  ;;  %1349 = vmatprep.subr.bf16.mxu0 %v5481_v44  ;;  %v5489_v44 = vld [vmem:[%s7167_s7 + $0x68] sm:$0xff]  }
  0xfe   : > { %v597_v15 = vadd.f32 %v5791_v6, %v596_v10  ;;  %v687_v26 = vmax.f32 %v605_v22, 0.0  ;;  %1350 = vmatpush2.bf16.msra.mxu0 %v5479_v46 }
  0xff   : > { %v5338_v16 = vpop.f32.mrf.mxu0  ;;  %1351 = vmatprep.subr.bf16.mxu0 %v5484_v50  ;;  %v5490_v50 = vld [vmem:[%s7167_s7 + $0x28] sm:$0xff]  }
 0x100   : > { %v685_v19 = vmax.f32 %v597_v15, 0.0  ;;  %v711_v28 = vpack.c.bf16 %v687_v26, %v686_v25  ;;  %v618_v35 = vadd.f32 %v5338_v16, %v5791_v6  ;;  %v738_v25 = vlaneseq }
 0x101   : > { %v609_v20 = vpop.f32.mrf.mxu0 }
 0x102   : > { %v710_v23 = vpack.c.bf16 %v685_v19, %v684_v18  ;;  %v610_v29 = vadd.f32 %v5791_v6, %v609_v20  ;;  %v690_v41 = vmax.f32 %v618_v35, 0.0  ;;  %1352 = vmatpush2.bf16.msra.mxu0 %v5482_v52  ;;  %v5937_v26 = vshrl.u32 %v738_v25, 7 }
 0x103   : > { %v5339_v24 = vpop.f32.mrf.mxu0  ;;  %vm5011_vm0 = vcmp.lt.s32.totalorder %v738_v25, 256 }
 0x104   : > { %891 = vmatmul.mubr.bf16.gmra.mxu1 %v707_v53  ;;  %v688_v32 = vmax.f32 %v610_v29, 0.0  ;;  %v621_v36 = vadd.f32 %v5339_v24, %v5791_v6  ;;  %v736_v29 = vld [vmem:[%s7164_s4] sm:$0x3] }
 0x105   : > { %900 = vmatprep.mubr.bf16.mxu1 %v5563_v3  ;;  %v612_v27 = vpop.f32.mrf.mxu0 }
 0x106   : > { %v613_v30 = vadd.f32 %v5791_v6, %v612_v27  ;;  %v691_v42 = vmax.f32 %v621_v36, 0.0  ;;  %v5485_v27 = vld [vmem:[%s7167_s7 + $0x78] sm:$0xff]  }
 0x107   : > { %v5342_v31 = vpop.f32.mrf.mxu0  ;;  %5204 = vmatprep.subr.bf16.mxu0 %v5485_v27  ;;  %5352 = vmatprep.subr.bf16.mxu1 %v5485_v27 }
 0x108   : > { %v689_v33 = vmax.f32 %v613_v30, 0.0  ;;  %v713_v47 = vpack.c.bf16 %v691_v42, %v690_v41  ;;  %v634_v56 = vadd.f32 %v5342_v31, %v5791_v6  ;;  %v5488_v41 = vld [vmem:[%s7167_s7 + $0x30] sm:$0xff]  }
 0x109   : > { %v625_v34 = vpop.f32.mrf.mxu0 }
 0x10a   : > { %v712_v37 = vpack.c.bf16 %v689_v33, %v688_v32  ;;  %v626_v48 = vadd.f32 %v5791_v6, %v625_v34  ;;  %v694_v60 = vmax.f32 %v634_v56, 0.0 }
 0x10b   : > { %v5343_v38 = vpop.f32.mrf.mxu0 }
 0x10c   : > { %901 = vmatmul.mubr.bf16.gmra.mxu1 %v708_v2  ;;  %v692_v53 = vmax.f32 %v626_v48, 0.0  ;;  %v637_v57 = vadd.f32 %v5343_v38, %v5791_v6 }
 0x10d   : > { %910 = vmatprep.mubr.bf16.mxu1 %v5563_v3  ;;  %v628_v43 = vpop.f32.mrf.mxu0 }
 0x10e   : > { %v629_v49 = vadd.f32 %v5791_v6, %v628_v43  ;;  %v695_v61 = vmax.f32 %v637_v57, 0.0 }
 0x10f   : > { %v5346_v45 = vpop.f32.mrf.mxu0 }
 0x110   : > { %v693_v54 = vmax.f32 %v629_v49, 0.0  ;;  %v715_v1 = vpack.c.bf16 %v695_v61, %v694_v60  ;;  %v650_v7 = vadd.f32 %v5346_v45, %v5791_v6 }
 0x111   : > { %v641_v51 = vpop.f32.mrf.mxu0 }
 0x112   : > { %v714_v58 = vpack.c.bf16 %v693_v54, %v692_v53  ;;  %v642_v62 = vadd.f32 %v5791_v6, %v641_v51  ;;  %v698_v11 = vmax.f32 %v650_v7, 0.0  ;;  %v5491_v53 = vld [vmem:[%s7167_s7 + $0x60] sm:$0xff]  }
 0x113   : > { %v5347_v55 = vpop.f32.mrf.mxu0 }
 0x114   : > { %911 = vmatmul.mubr.bf16.gmra.mxu1 %v709_v13  ;;  %v696_v2 = vmax.f32 %v642_v62, 0.0  ;;  %v653_v8 = vadd.f32 %v5347_v55, %v5791_v6  ;;  %v5493_v62 = vld [vmem:[%s7167_s7 + $0x58] sm:$0xff]  }
 0x115   : > { %920 = vmatprep.mubr.bf16.mxu1 %v5563_v3  ;;  %v644_v59 = vpop.f32.mrf.mxu0 }
 0x116   : > { %v645_v63 = vadd.f32 %v5791_v6, %v644_v59  ;;  %v699_v12 = vmax.f32 %v653_v8, 0.0  ;;  %v5492_v59 = vld [vmem:[%s7167_s7 + $0x20] sm:$0xff]  }
 0x117   : > { %v5350_v0 = vpop.f32.mrf.mxu0 }
 0x118   : > { %v697_v4 = vmax.f32 %v645_v63, 0.0  ;;  %v717_v14 = vpack.c.bf16 %v699_v12, %v698_v11  ;;  %v666_v19 = vadd.f32 %v5350_v0, %v5791_v6 }
 0x119   : > { %v657_v5 = vpop.f32.mrf.mxu0 }
 0x11a   : > { %v716_v9 = vpack.c.bf16 %v697_v4, %v696_v2  ;;  %v658_v15 = vadd.f32 %v5791_v6, %v657_v5  ;;  %v702_v22 = vmax.f32 %v666_v19, 0.0  ;;  %v5494_v5 = vld [vmem:[%s7167_s7 + $0x18] sm:$0xff]  }
 0x11b   : > { %v5351_v10 = vpop.f32.mrf.mxu0 }
 0x11c   : > { %921 = vmatmul.mubr.bf16.gmra.mxu1 %v710_v23  ;;  %v700_v17 = vmax.f32 %v658_v15, 0.0  ;;  %v669_v20 = vadd.f32 %v5351_v10, %v5791_v6  ;;  %v5496_v15 = vld [vmem:[%s7167_s7 + $0x10] sm:$0xff]  }
 0x11d   : > { %930 = vmatprep.mubr.bf16.mxu1 %v5563_v3  ;;  %v660_v13 = vpop.f32.mrf.mxu0 }
 0x11e   : > { %v661_v16 = vadd.f32 %v5791_v6, %v660_v13  ;;  %v703_v23 = vmax.f32 %v669_v20, 0.0  ;;  %v5486_v6 = vld [vmem:[%s7167_s7 + $0x38] sm:$0xff]  }
 0x11f   : > { %5360 = vmatpush3.bf16.msra.mxu1 %v5486_v6 }
 0x120   : > { %v701_v18 = vmax.f32 %v661_v16, 0.0  ;;  %v719_v24 = vpack.c.bf16 %v703_v23, %v702_v22  ;;  %5353 = vmatprep.subr.bf16.mxu1 %v5487_v39 }
 0x122   : > { %v718_v21 = vpack.c.bf16 %v701_v18, %v700_v17 }
 0x123   : > { %5361 = vmatpush3.bf16.msra.mxu1 %v5488_v41 }
 0x124   : > { %931 = vmatmul.mubr.bf16.gmra.mxu1 %v711_v28  ;;  %v5946_v28 = vsub.s32 1, %v5937_v26  ;;  %5354 = vmatprep.subr.bf16.mxu1 %v5489_v44 }
 0x125   : > { %940 = vmatprep.mubr.bf16.mxu1 %v5563_v3 }
 0x126   : > { %v5955_v31 = vrot.slane %v736_v29, %v5946_v28 }
 0x127   : > { %5362 = vmatpush3.bf16.msra.mxu1 %v5490_v50 }
 0x128   : > { %5355 = vmatprep.subr.bf16.mxu1 %v5491_v53 }
 0x12b   : > { %5363 = vmatpush3.bf16.msra.mxu1 %v5492_v59 }
 0x12c   : > { %941 = vmatmul.mubr.bf16.gmra.mxu1 %v712_v37  ;;  %5356 = vmatprep.subr.bf16.mxu1 %v5493_v62 }
 0x12d   : > { %950 = vmatprep.mubr.bf16.mxu1 %v5563_v3 }
 0x12f   : > { %5364 = vmatpush3.bf16.msra.mxu1 %v5494_v5 }
 0x134   : > { %951 = vmatmul.mubr.bf16.gmra.mxu1 %v713_v47 }
 0x135   : > { %960 = vmatprep.mubr.bf16.mxu1 %v5563_v3 }
 0x13c   : > { %961 = vmatmul.mubr.bf16.gmra.mxu1 %v714_v58 }
 0x13d   : > { %970 = vmatprep.mubr.bf16.mxu1 %v5563_v3 }
 0x144   : > { %971 = vmatmul.mubr.bf16.gmra.mxu1 %v715_v1 }
 0x145   : > { %980 = vmatprep.mubr.bf16.mxu1 %v5563_v3 }
 0x14c   : > { %981 = vmatmul.mubr.bf16.gmra.mxu1 %v716_v9  ;;  %v5495_v9 = vld [vmem:[%s7167_s7 + $0x50] sm:$0xff]  }
 0x14d   : > { %990 = vmatprep.mubr.bf16.mxu1 %v5563_v3  ;;  %5357 = vmatprep.subr.bf16.mxu1 %v5495_v9 }
 0x14e   : > { %5365 = vmatpush3.bf16.msra.mxu1 %v5496_v15 }
 0x154   : > { %991 = vmatmul.mubr.bf16.gmra.mxu1 %v717_v14 }
 0x155   : > { %1000 = vmatprep.mubr.bf16.mxu1 %v5563_v3 }
 0x15c   : > { %1001 = vmatmul.mubr.bf16.gmra.mxu1 %v718_v21 }
 0x15d   : > { %1010 = vmatprep.mubr.bf16.mxu1 %v5563_v3  ;;  %v5949_v3 = vsub.s32 0, %v5937_v26 }
 0x15f   : > { %v5958_v32 = vrot.slane %v736_v29, %v5949_v3 }
 0x164   : > { %1011 = vmatmul.mubr.bf16.gmra.mxu1 %v719_v24 }
 0x1ac   : > { %v862_v30 = vpop.f32.mrf.mxu1 }
 0x1ad   : > { %v863_v37 = vadd.f32 %v862_v30, %v5958_v32 }
 0x1ae   : > { %v864_v33 = vpop.f32.mrf.mxu1 }
 0x1af   : > { %v865_v35 = vadd.f32 %v864_v33, %v5955_v31  ;;  %v1021_v47 = vmax.f32 %v863_v37, 0.0 }
 0x1b0   : > { %v866_v34 = vpop.f32.mrf.mxu1 }
 0x1b1   : > { %v867_v36 = vadd.f32 %v866_v34, %v5958_v32  ;;  %v1022_v45 = vmax.f32 %v865_v35, 0.0 }
 0x1b2   : > { %v868_v38 = vpop.f32.mrf.mxu1 }
 0x1b3   : > { %v869_v40 = vadd.f32 %v868_v38, %v5955_v31  ;;  %v1023_v42 = vmax.f32 %v867_v36, 0.0 }
 0x1b4   : > { %v872_v43 = vpop.f32.mrf.mxu1 }
 0x1b5   : > { %v1024_v46 = vmax.f32 %v869_v40, 0.0  ;;  %v1085_v51 = vpack.c.bf16 %v1023_v42, %v1021_v47  ;;  %v873_v56 = vadd.f32 %v872_v43, %v5958_v32 }
 0x1b6   : > { %v874_v48 = vpop.f32.mrf.mxu1 }
 0x1b7   : > { %v1086_v49 = vpack.c.bf16 %v1024_v46, %v1022_v45  ;;  %v875_v54 = vadd.f32 %v874_v48, %v5955_v31  ;;  %v1025_v1 = vmax.f32 %v873_v56, 0.0 }
 0x1b8   : > { %v876_v52 = vpop.f32.mrf.mxu1 }
 0x1b9   : > { %v877_v55 = vadd.f32 %v876_v52, %v5958_v32  ;;  %1353 = vmatprep.mubr.bf16.mxu0 %v1086_v49  ;;  %v1026_v63 = vmax.f32 %v875_v54, 0.0 }
 0x1ba   : > { %v878_v57 = vpop.f32.mrf.mxu1  ;;  %1354 = vmatmul.mubr.bf16.vlgmr.msra.gmra.mxu0 %v1085_v51 }
 0x1bb   : > { %v879_v58 = vadd.f32 %v878_v57, %v5955_v31  ;;  %5205 = vmatpush3.bf16.msra.mxu0 %v5486_v6  ;;  %v1027_v60 = vmax.f32 %v877_v55, 0.0 }
 0x1bc   : > { %v882_v61 = vpop.f32.mrf.mxu1  ;;  %5206 = vmatprep.subr.bf16.mxu0 %v5487_v39 }
 0x1bd   : > { %v1028_v0 = vmax.f32 %v879_v58, 0.0  ;;  %v1087_v7 = vpack.c.bf16 %v1027_v60, %v1025_v1  ;;  %v883_v12 = vadd.f32 %v882_v61, %v5958_v32 }
 0x1be   : > { %v884_v2 = vpop.f32.mrf.mxu1 }
 0x1bf   : > { %v1088_v4 = vpack.c.bf16 %v1028_v0, %v1026_v63  ;;  %5207 = vmatpush3.bf16.msra.mxu0 %v5488_v41  ;;  %v885_v10 = vadd.f32 %v884_v2, %v5955_v31  ;;  %v1029_v20 = vmax.f32 %v883_v12, 0.0 }
 0x1c0   : > { %v886_v8 = vpop.f32.mrf.mxu1  ;;  %5208 = vmatprep.subr.bf16.mxu0 %v5489_v44 }
 0x1c1   : > { %v887_v11 = vadd.f32 %v886_v8, %v5958_v32  ;;  %1363 = vmatprep.mubr.bf16.mxu0 %v1088_v4  ;;  %v1030_v18 = vmax.f32 %v885_v10, 0.0 }
 0x1c2   : > { %v888_v13 = vpop.f32.mrf.mxu1  ;;  %1364 = vmatmul.mubr.bf16.gmra.mxu0 %v1087_v7 }
 0x1c3   : > { %v889_v14 = vadd.f32 %v888_v13, %v5955_v31  ;;  %5209 = vmatpush3.bf16.msra.mxu0 %v5490_v50  ;;  %v1031_v16 = vmax.f32 %v887_v11, 0.0 }
 0x1c4   : > { %v892_v17 = vpop.f32.mrf.mxu1  ;;  %5210 = vmatprep.subr.bf16.mxu0 %v5491_v53 }
 0x1c5   : > { %v1032_v19 = vmax.f32 %v889_v14, 0.0  ;;  %v1089_v23 = vpack.c.bf16 %v1031_v16, %v1029_v20  ;;  %v893_v29 = vadd.f32 %v892_v17, %v5958_v32 }
 0x1c6   : > { %v894_v21 = vpop.f32.mrf.mxu1 }
 0x1c7   : > { %v1090_v22 = vpack.c.bf16 %v1032_v19, %v1030_v18  ;;  %5211 = vmatpush3.bf16.msra.mxu0 %v5492_v59  ;;  %v895_v27 = vadd.f32 %v894_v21, %v5955_v31  ;;  %v1033_v38 = vmax.f32 %v893_v29, 0.0 }
 0x1c8   : > { %v896_v24 = vpop.f32.mrf.mxu1  ;;  %5212 = vmatprep.subr.bf16.mxu0 %v5493_v62 }
 0x1c9   : > { %v897_v6 = vadd.f32 %v896_v24, %v5958_v32  ;;  %1373 = vmatprep.mubr.bf16.mxu0 %v1090_v22  ;;  %v1034_v36 = vmax.f32 %v895_v27, 0.0 }
 0x1ca   : > { %v898_v30 = vpop.f32.mrf.mxu1  ;;  %1374 = vmatmul.mubr.bf16.gmra.mxu0 %v1089_v23 }
 0x1cb   : > { %v899_v33 = vadd.f32 %v898_v30, %v5955_v31  ;;  %5213 = vmatpush3.bf16.msra.mxu0 %v5494_v5  ;;  %v1035_v34 = vmax.f32 %v897_v6, 0.0 }
 0x1cc   : > { %v902_v35 = vpop.f32.mrf.mxu1  ;;  %5214 = vmatprep.subr.bf16.mxu0 %v5495_v9 }
 0x1cd   : > { %v1036_v37 = vmax.f32 %v899_v33, 0.0  ;;  %v1091_v41 = vpack.c.bf16 %v1035_v34, %v1033_v38  ;;  %v903_v45 = vadd.f32 %v902_v35, %v5958_v32 }
 0x1ce   : > { %v904_v39 = vpop.f32.mrf.mxu1 }
 0x1cf   : > { %v1092_v40 = vpack.c.bf16 %v1036_v37, %v1034_v36  ;;  %5215 = vmatpush3.bf16.msra.mxu0 %v5496_v15  ;;  %v905_v43 = vadd.f32 %v904_v39, %v5955_v31  ;;  %v1037_v52 = vmax.f32 %v903_v45, 0.0 }
 0x1d0   : > { %v906_v42 = vpop.f32.mrf.mxu1 }
 0x1d1   : > { %v907_v44 = vadd.f32 %v906_v42, %v5958_v32  ;;  %1383 = vmatprep.mubr.bf16.mxu0 %v1092_v40  ;;  %v1038_v50 = vmax.f32 %v905_v43, 0.0 }
 0x1d2   : > { %v908_v46 = vpop.f32.mrf.mxu1  ;;  %1384 = vmatmul.mubr.bf16.gmra.mxu0 %v1091_v41 }
 0x1d3   : > { %v909_v47 = vadd.f32 %v908_v46, %v5955_v31  ;;  %v1039_v48 = vmax.f32 %v907_v44, 0.0 }
 0x1d4   : > { %v912_v49 = vpop.f32.mrf.mxu1 }
 0x1d5   : > { %v1040_v51 = vmax.f32 %v909_v47, 0.0  ;;  %v1093_v55 = vpack.c.bf16 %v1039_v48, %v1037_v52  ;;  %v913_v59 = vadd.f32 %v912_v49, %v5958_v32 }
 0x1d6   : > { %v914_v53 = vpop.f32.mrf.mxu1 }
 0x1d7   : > { %v1094_v54 = vpack.c.bf16 %v1040_v51, %v1038_v50  ;;  %v915_v57 = vadd.f32 %v914_v53, %v5955_v31  ;;  %v1041_v2 = vmax.f32 %v913_v59, 0.0 }
 0x1d8   : > { %v916_v56 = vpop.f32.mrf.mxu1 }
 0x1d9   : > { %v917_v58 = vadd.f32 %v916_v56, %v5958_v32  ;;  %1393 = vmatprep.mubr.bf16.mxu0 %v1094_v54  ;;  %v1042_v0 = vmax.f32 %v915_v57, 0.0 }
 0x1da   : > { %v918_v60 = vpop.f32.mrf.mxu1  ;;  %1394 = vmatmul.mubr.bf16.gmra.mxu0 %v1093_v55 }
 0x1db   : > { %v919_v61 = vadd.f32 %v918_v60, %v5955_v31  ;;  %v1043_v62 = vmax.f32 %v917_v58, 0.0 }
 0x1dc   : > { %v922_v63 = vpop.f32.mrf.mxu1 }
 0x1dd   : > { %v1044_v1 = vmax.f32 %v919_v61, 0.0  ;;  %v1095_v7 = vpack.c.bf16 %v1043_v62, %v1041_v2  ;;  %v923_v11 = vadd.f32 %v922_v63, %v5958_v32  ;;  %v5497_v2 = vld [vmem:[%s7167_s7 + $0x48] sm:$0xff]  }
 0x1de   : > { %v924_v4 = vpop.f32.mrf.mxu1  ;;  %5216 = vmatprep.subr.bf16.mxu0 %v5497_v2  ;;  %5358 = vmatprep.subr.bf16.mxu1 %v5497_v2 }
 0x1df   : > { %v1096_v5 = vpack.c.bf16 %v1044_v1, %v1042_v0  ;;  %v925_v9 = vadd.f32 %v924_v4, %v5955_v31  ;;  %v1045_v18 = vmax.f32 %v923_v11, 0.0 }
 0x1e0   : > { %v926_v8 = vpop.f32.mrf.mxu1 }
 0x1e1   : > { %v927_v10 = vadd.f32 %v926_v8, %v5958_v32  ;;  %1403 = vmatprep.mubr.bf16.mxu0 %v1096_v5  ;;  %v1046_v16 = vmax.f32 %v925_v9, 0.0  ;;  %v5498_v5 = vld [vmem:[%s7167_s7 + $0x8] sm:$0xff]  }
 0x1e2   : > { %v928_v12 = vpop.f32.mrf.mxu1  ;;  %1404 = vmatmul.mubr.bf16.gmra.mxu0 %v1095_v7  ;;  %5366 = vmatpush3.bf16.msra.mxu1 %v5498_v5 }
 0x1e3   : > { %v929_v13 = vadd.f32 %v928_v12, %v5955_v31  ;;  %v1047_v14 = vmax.f32 %v927_v10, 0.0  ;;  %5217 = vmatpush3.bf16.msra.mxu0 %v5498_v5 }
 0x1e4   : > { %v932_v15 = vpop.f32.mrf.mxu1 }
 0x1e5   : > { %v1048_v17 = vmax.f32 %v929_v13, 0.0  ;;  %v1097_v21 = vpack.c.bf16 %v1047_v14, %v1045_v18  ;;  %v933_v27 = vadd.f32 %v932_v15, %v5958_v32  ;;  %v5499_v13 = vld [vmem:[%s7167_s7 + $0x40] sm:$0xff]  }
 0x1e6   : > { %v934_v19 = vpop.f32.mrf.mxu1  ;;  %v5500_v15 = vld [vmem:[%s7167_s7] sm:$0xff]   ;;  %5218 = vmatprep.subr.bf16.mxu0 %v5499_v13  ;;  %5359 = vmatprep.subr.bf16.mxu1 %v5499_v13 }
 0x1e7   : > { %v1098_v20 = vpack.c.bf16 %v1048_v17, %v1046_v16  ;;  %v935_v23 = vadd.f32 %v934_v19, %v5955_v31  ;;  %v1049_v36 = vmax.f32 %v933_v27, 0.0  ;;  %5219 = vmatpush3.bf16.msra.mxu0 %v5500_v15  ;;  %5367 = vmatpush3.bf16.msra.mxu1 %v5500_v15 }
 0x1e8   : > { %v936_v22 = vpop.f32.mrf.mxu1 }
 0x1e9   : > { %v937_v24 = vadd.f32 %v936_v22, %v5958_v32  ;;  %1413 = vmatprep.mubr.bf16.mxu0 %v1098_v20  ;;  %v1050_v34 = vmax.f32 %v935_v23, 0.0 }
 0x1ea   : > { %v938_v6 = vpop.f32.mrf.mxu1  ;;  %1414 = vmatmul.mubr.bf16.gmra.mxu0 %v1097_v21 }
 0x1eb   : > { %v939_v29 = vadd.f32 %v938_v6, %v5955_v31  ;;  %v1051_v30 = vmax.f32 %v937_v24, 0.0 }
 0x1ec   : > { %v942_v33 = vpop.f32.mrf.mxu1 }
 0x1ed   : > { %v1052_v35 = vmax.f32 %v939_v29, 0.0  ;;  %v1099_v39 = vpack.c.bf16 %v1051_v30, %v1049_v36  ;;  %v943_v43 = vadd.f32 %v942_v33, %v5958_v32 }
 0x1ee   : > { %v944_v37 = vpop.f32.mrf.mxu1 }
 0x1ef   : > { %v1100_v38 = vpack.c.bf16 %v1052_v35, %v1050_v34  ;;  %v945_v41 = vadd.f32 %v944_v37, %v5955_v31  ;;  %v1053_v50 = vmax.f32 %v943_v43, 0.0 }
 0x1f0   : > { %v946_v40 = vpop.f32.mrf.mxu1 }
 0x1f1   : > { %v947_v42 = vadd.f32 %v946_v40, %v5958_v32  ;;  %1423 = vmatprep.mubr.bf16.mxu0 %v1100_v38  ;;  %v1054_v48 = vmax.f32 %v945_v41, 0.0 }
 0x1f2   : > { %v948_v44 = vpop.f32.mrf.mxu1  ;;  %1424 = vmatmul.mubr.bf16.gmra.mxu0 %v1099_v39 }
 0x1f3   : > { %v949_v45 = vadd.f32 %v948_v44, %v5955_v31  ;;  %v1055_v46 = vmax.f32 %v947_v42, 0.0 }
 0x1f4   : > { %v952_v47 = vpop.f32.mrf.mxu1 }
 0x1f5   : > { %v1056_v49 = vmax.f32 %v949_v45, 0.0  ;;  %v1101_v53 = vpack.c.bf16 %v1055_v46, %v1053_v50  ;;  %v953_v57 = vadd.f32 %v952_v47, %v5958_v32 }
 0x1f6   : > { %v954_v51 = vpop.f32.mrf.mxu1 }
 0x1f7   : > { %v1102_v52 = vpack.c.bf16 %v1056_v49, %v1054_v48  ;;  %v955_v55 = vadd.f32 %v954_v51, %v5955_v31  ;;  %v1057_v0 = vmax.f32 %v953_v57, 0.0 }
 0x1f8   : > { %v956_v54 = vpop.f32.mrf.mxu1 }
 0x1f9   : > { %v957_v56 = vadd.f32 %v956_v54, %v5958_v32  ;;  %1433 = vmatprep.mubr.bf16.mxu0 %v1102_v52  ;;  %v1058_v62 = vmax.f32 %v955_v55, 0.0 }
 0x1fa   : > { %v958_v58 = vpop.f32.mrf.mxu1  ;;  %1434 = vmatmul.mubr.bf16.gmra.mxu0 %v1101_v53 }
 0x1fb   : > { %v959_v59 = vadd.f32 %v958_v58, %v5955_v31  ;;  %v1059_v60 = vmax.f32 %v957_v56, 0.0 }
 0x1fc   : > { %v962_v61 = vpop.f32.mrf.mxu1 }
 0x1fd   : > { %v1060_v63 = vmax.f32 %v959_v59, 0.0  ;;  %v1103_v7 = vpack.c.bf16 %v1059_v60, %v1057_v0  ;;  %v963_v11 = vadd.f32 %v962_v61, %v5958_v32 }
 0x1fe   : > { %v964_v1 = vpop.f32.mrf.mxu1 }
 0x1ff   : > { %v1104_v4 = vpack.c.bf16 %v1060_v63, %v1058_v62  ;;  %v965_v9 = vadd.f32 %v964_v1, %v5955_v31  ;;  %v1061_v20 = vmax.f32 %v963_v11, 0.0 }
 0x200   : > { %v966_v8 = vpop.f32.mrf.mxu1 }
 0x201   : > { %v967_v10 = vadd.f32 %v966_v8, %v5958_v32  ;;  %1443 = vmatprep.mubr.bf16.mxu0 %v1104_v4  ;;  %v1062_v18 = vmax.f32 %v965_v9, 0.0 }
 0x202   : > { %v968_v12 = vpop.f32.mrf.mxu1  ;;  %1444 = vmatmul.mubr.bf16.gmra.mxu0 %v1103_v7 }
 0x203   : > { %v969_v14 = vadd.f32 %v968_v12, %v5955_v31  ;;  %v1063_v16 = vmax.f32 %v967_v10, 0.0 }
 0x204   : > { %v972_v17 = vpop.f32.mrf.mxu1 }
 0x205   : > { %v1064_v19 = vmax.f32 %v969_v14, 0.0  ;;  %v1105_v23 = vpack.c.bf16 %v1063_v16, %v1061_v20  ;;  %v973_v29 = vadd.f32 %v972_v17, %v5958_v32 }
 0x206   : > { %v974_v21 = vpop.f32.mrf.mxu1 }
 0x207   : > { %v1106_v22 = vpack.c.bf16 %v1064_v19, %v1062_v18  ;;  %v975_v27 = vadd.f32 %v974_v21, %v5955_v31  ;;  %v1065_v38 = vmax.f32 %v973_v29, 0.0 }
 0x208   : > { %v976_v24 = vpop.f32.mrf.mxu1 }
 0x209   : > { %v977_v6 = vadd.f32 %v976_v24, %v5958_v32  ;;  %1453 = vmatprep.mubr.bf16.mxu0 %v1106_v22  ;;  %v1066_v36 = vmax.f32 %v975_v27, 0.0 }
 0x20a   : > { %v978_v30 = vpop.f32.mrf.mxu1  ;;  %1454 = vmatmul.mubr.bf16.gmra.mxu0 %v1105_v23 }
 0x20b   : > { %v979_v33 = vadd.f32 %v978_v30, %v5955_v31  ;;  %v1067_v34 = vmax.f32 %v977_v6, 0.0 }
 0x20c   : > { %v982_v35 = vpop.f32.mrf.mxu1 }
 0x20d   : > { %v1068_v37 = vmax.f32 %v979_v33, 0.0  ;;  %v983_v39 = vadd.f32 %v982_v35, %v5958_v32  ;;  %v1107_v43 = vpack.c.bf16 %v1067_v34, %v1065_v38  ;;  %v1149_v38 = vld [vmem:[%s7166_s6] sm:$0x3] }
 0x20e   : > { %v984_v40 = vpop.f32.mrf.mxu1 }
 0x20f   : > { %v1108_v41 = vpack.c.bf16 %v1068_v37, %v1066_v36  ;;  %v985_v42 = vadd.f32 %v984_v40, %v5955_v31  ;;  %v1069_v46 = vmax.f32 %v983_v39, 0.0  ;;  %v6073_v40 = vrot.slane %v1149_v38, %v5949_v3 }
 0x210   : > { %v986_v44 = vpop.f32.mrf.mxu1 }
 0x211   : > { %v987_v45 = vadd.f32 %v986_v44, %v5958_v32  ;;  %1463 = vmatprep.mubr.bf16.mxu0 %v1108_v41  ;;  %v1070_v48 = vmax.f32 %v985_v42, 0.0 }
 0x212   : > { %v988_v47 = vpop.f32.mrf.mxu1  ;;  %1464 = vmatmul.mubr.bf16.gmra.mxu0 %v1107_v43 }
 0x213   : > { %v1071_v49 = vmax.f32 %v987_v45, 0.0  ;;  %v989_v50 = vadd.f32 %v988_v47, %v5955_v31 }
 0x214   : > { %v992_v51 = vpop.f32.mrf.mxu1 }
 0x215   : > { %v1072_v52 = vmax.f32 %v989_v50, 0.0  ;;  %v1109_v53 = vpack.c.bf16 %v1071_v49, %v1069_v46  ;;  %v993_v54 = vadd.f32 %v992_v51, %v5958_v32 }
 0x216   : > { %v994_v55 = vpop.f32.mrf.mxu1 }
 0x217   : > { %v1110_v56 = vpack.c.bf16 %v1072_v52, %v1070_v48  ;;  %v995_v57 = vadd.f32 %v994_v55, %v5955_v31  ;;  %v1073_v60 = vmax.f32 %v993_v54, 0.0 }
 0x218   : > { %v996_v58 = vpop.f32.mrf.mxu1 }
 0x219   : > { %v997_v59 = vadd.f32 %v996_v58, %v5958_v32  ;;  %1473 = vmatprep.mubr.bf16.mxu0 %v1110_v56  ;;  %v1074_v62 = vmax.f32 %v995_v57, 0.0 }
 0x21a   : > { %v998_v61 = vpop.f32.mrf.mxu1  ;;  %1474 = vmatmul.mubr.bf16.gmra.mxu0 %v1109_v53 }
 0x21b   : > { %v1075_v63 = vmax.f32 %v997_v59, 0.0  ;;  %v999_v0 = vadd.f32 %v998_v61, %v5955_v31 }
 0x21c   : > { %v1002_v1 = vpop.f32.mrf.mxu1 }
 0x21d   : > { %v1076_v2 = vmax.f32 %v999_v0, 0.0  ;;  %v1111_v4 = vpack.c.bf16 %v1075_v63, %v1073_v60  ;;  %v1003_v5 = vadd.f32 %v1002_v1, %v5958_v32 }
 0x21e   : > { %v1004_v7 = vpop.f32.mrf.mxu1 }
 0x21f   : > { %v1112_v8 = vpack.c.bf16 %v1076_v2, %v1074_v62  ;;  %v1005_v9 = vadd.f32 %v1004_v7, %v5955_v31  ;;  %v1077_v12 = vmax.f32 %v1003_v5, 0.0 }
 0x220   : > { %v1006_v10 = vpop.f32.mrf.mxu1 }
 0x221   : > { %v1007_v11 = vadd.f32 %v1006_v10, %v5958_v32  ;;  %1483 = vmatprep.mubr.bf16.mxu0 %v1112_v8  ;;  %v1078_v14 = vmax.f32 %v1005_v9, 0.0 }
 0x222   : > { %v1008_v13 = vpop.f32.mrf.mxu1  ;;  %1484 = vmatmul.mubr.bf16.gmra.mxu0 %v1111_v4 }
 0x223   : > { %v1079_v15 = vmax.f32 %v1007_v11, 0.0  ;;  %v1009_v16 = vadd.f32 %v1008_v13, %v5955_v31 }
 0x224   : > { %v1012_v17 = vpop.f32.mrf.mxu1 }
 0x225   : > { %v1080_v18 = vmax.f32 %v1009_v16, 0.0  ;;  %v1113_v19 = vpack.c.bf16 %v1079_v15, %v1077_v12  ;;  %v1013_v20 = vadd.f32 %v1012_v17, %v5958_v32 }
 0x226   : > { %v1014_v21 = vpop.f32.mrf.mxu1 }
 0x227   : > { %v1114_v22 = vpack.c.bf16 %v1080_v18, %v1078_v14  ;;  %v1015_v23 = vadd.f32 %v1014_v21, %v5955_v31  ;;  %v1081_v6 = vmax.f32 %v1013_v20, 0.0 }
 0x228   : > { %v1016_v24 = vpop.f32.mrf.mxu1 }
 0x229   : > { %v1017_v27 = vadd.f32 %v1016_v24, %v5958_v32  ;;  %1493 = vmatprep.mubr.bf16.mxu0 %v1114_v22  ;;  %v1082_v30 = vmax.f32 %v1015_v23, 0.0  ;;  %v6070_v32 = vrot.slane %v1149_v38, %v5946_v28 }
 0x22a   : > { %v1018_v29 = vpop.f32.mrf.mxu1  ;;  %1494 = vmatmul.mubr.bf16.gmra.mxu0 %v1113_v19 }
 0x22b   : > { %v1083_v33 = vmax.f32 %v1017_v27, 0.0  ;;  %v1019_v34 = vadd.f32 %v1018_v29, %v5955_v31 }
 0x22d   : > { %v1084_v35 = vmax.f32 %v1019_v34, 0.0  ;;  %v1115_v36 = vpack.c.bf16 %v1083_v33, %v1081_v6 }
 0x22f   : > { %v1116_v37 = vpack.c.bf16 %v1084_v35, %v1082_v30 }
 0x231   : > { %1503 = vmatprep.mubr.bf16.mxu0 %v1116_v37 }
 0x232   : > { %1504 = vmatmul.mubr.bf16.gmra.mxu0 %v1115_v36 }
 0x27a   : > { %v1355_v39 = vpop.f32.mrf.mxu0 }
 0x27b   : > { %v1356_v44 = vadd.f32 %v1355_v39, %v6073_v40 }
 0x27c   : > { %v1357_v41 = vpop.f32.mrf.mxu0 }
 0x27d   : > { %v1358_v31 = vadd.f32 %v1357_v41, %v6070_v32  ;;  %v1514_v51 = vmax.f32 %v1356_v44, 0.0 }
 0x27e   : > { %v1359_v42 = vpop.f32.mrf.mxu0 }
 0x27f   : > { %v1360_v43 = vadd.f32 %v1359_v42, %v6073_v40  ;;  %v1515_v49 = vmax.f32 %v1358_v31, 0.0 }
 0x280   : > { %v1361_v45 = vpop.f32.mrf.mxu0 }
 0x281   : > { %v1362_v46 = vadd.f32 %v1361_v45, %v6070_v32  ;;  %v1516_v47 = vmax.f32 %v1360_v43, 0.0 }
 0x282   : > { %v1365_v48 = vpop.f32.mrf.mxu0 }
 0x283   : > { %v1517_v50 = vmax.f32 %v1362_v46, 0.0  ;;  %v1578_v54 = vpack.c.bf16 %v1516_v47, %v1514_v51  ;;  %v1366_v58 = vadd.f32 %v1365_v48, %v6073_v40 }
 0x284   : > { %v1367_v52 = vpop.f32.mrf.mxu0 }
 0x285   : > { %v1579_v53 = vpack.c.bf16 %v1517_v50, %v1515_v49  ;;  %v1368_v56 = vadd.f32 %v1367_v52, %v6070_v32  ;;  %v1518_v1 = vmax.f32 %v1366_v58, 0.0 }
 0x286   : > { %v1369_v55 = vpop.f32.mrf.mxu0 }
 0x287   : > { %v1370_v57 = vadd.f32 %v1369_v55, %v6073_v40  ;;  %1777 = vmatprep.mubr.bf16.mxu0 %v1579_v53  ;;  %v1519_v63 = vmax.f32 %v1368_v56, 0.0 }
 0x288   : > { %v1371_v59 = vpop.f32.mrf.mxu0  ;;  %1778 = vmatmul.mubr.bf16.vlgmr.msra.gmra.mxu0 %v1578_v54 }
 0x289   : > { %v1372_v60 = vadd.f32 %v1371_v59, %v6070_v32  ;;  %v1520_v61 = vmax.f32 %v1370_v57, 0.0 }
 0x28a   : > { %v1375_v62 = vpop.f32.mrf.mxu0 }
 0x28b   : > { %v1521_v0 = vmax.f32 %v1372_v60, 0.0  ;;  %v1580_v5 = vpack.c.bf16 %v1520_v61, %v1518_v1  ;;  %v1376_v10 = vadd.f32 %v1375_v62, %v6073_v40 }
 0x28c   : > { %v1377_v2 = vpop.f32.mrf.mxu0 }
 0x28d   : > { %v1581_v4 = vpack.c.bf16 %v1521_v0, %v1519_v63  ;;  %v1378_v8 = vadd.f32 %v1377_v2, %v6070_v32  ;;  %v1522_v17 = vmax.f32 %v1376_v10, 0.0 }
 0x28e   : > { %v1379_v7 = vpop.f32.mrf.mxu0 }
 0x28f   : > { %v1380_v9 = vadd.f32 %v1379_v7, %v6073_v40  ;;  %1785 = vmatprep.mubr.bf16.mxu0 %v1581_v4  ;;  %v1523_v15 = vmax.f32 %v1378_v8, 0.0 }
 0x290   : > { %v1381_v11 = vpop.f32.mrf.mxu0  ;;  %1786 = vmatmul.mubr.bf16.gmra.mxu0 %v1580_v5 }
 0x291   : > { %v1382_v12 = vadd.f32 %v1381_v11, %v6070_v32  ;;  %v1524_v13 = vmax.f32 %v1380_v9, 0.0 }
 0x292   : > { %v1385_v14 = vpop.f32.mrf.mxu0 }
 0x293   : > { %v1525_v16 = vmax.f32 %v1382_v12, 0.0  ;;  %v1582_v20 = vpack.c.bf16 %v1524_v13, %v1522_v17  ;;  %v1386_v24 = vadd.f32 %v1385_v14, %v6073_v40 }
 0x294   : > { %v1387_v18 = vpop.f32.mrf.mxu0 }
 0x295   : > { %v1583_v19 = vpack.c.bf16 %v1525_v16, %v1523_v15  ;;  %v1388_v22 = vadd.f32 %v1387_v18, %v6070_v32  ;;  %v1526_v35 = vmax.f32 %v1386_v24, 0.0 }
 0x296   : > { %v1389_v21 = vpop.f32.mrf.mxu0 }
 0x297   : > { %v1390_v23 = vadd.f32 %v1389_v21, %v6073_v40  ;;  %1793 = vmatprep.mubr.bf16.mxu0 %v1583_v19  ;;  %v1527_v33 = vmax.f32 %v1388_v22, 0.0 }
 0x298   : > { %v1391_v27 = vpop.f32.mrf.mxu0  ;;  %1794 = vmatmul.mubr.bf16.gmra.mxu0 %v1582_v20 }
 0x299   : > { %v1392_v6 = vadd.f32 %v1391_v27, %v6070_v32  ;;  %v1528_v29 = vmax.f32 %v1390_v23, 0.0 }
 0x29a   : > { %v1395_v30 = vpop.f32.mrf.mxu0 }
 0x29b   : > { %v1529_v34 = vmax.f32 %v1392_v6, 0.0  ;;  %v1584_v38 = vpack.c.bf16 %v1528_v29, %v1526_v35  ;;  %v1396_v31 = vadd.f32 %v1395_v30, %v6073_v40 }
 0x29c   : > { %v1397_v36 = vpop.f32.mrf.mxu0 }
 0x29d   : > { %v1585_v37 = vpack.c.bf16 %v1529_v34, %v1527_v33  ;;  %v1398_v41 = vadd.f32 %v1397_v36, %v6070_v32  ;;  %v1530_v49 = vmax.f32 %v1396_v31, 0.0 }
 0x29e   : > { %v1399_v39 = vpop.f32.mrf.mxu0 }
 0x29f   : > { %v1400_v42 = vadd.f32 %v1399_v39, %v6073_v40  ;;  %1801 = vmatprep.mubr.bf16.mxu0 %v1585_v37  ;;  %v1531_v47 = vmax.f32 %v1398_v41, 0.0 }
 0x2a0   : > { %v1401_v43 = vpop.f32.mrf.mxu0  ;;  %1802 = vmatmul.mubr.bf16.gmra.mxu0 %v1584_v38 }
 0x2a1   : > { %v1402_v44 = vadd.f32 %v1401_v43, %v6070_v32  ;;  %v1532_v45 = vmax.f32 %v1400_v42, 0.0 }
 0x2a2   : > { %v1405_v46 = vpop.f32.mrf.mxu0 }
 0x2a3   : > { %v1533_v48 = vmax.f32 %v1402_v44, 0.0  ;;  %v1586_v52 = vpack.c.bf16 %v1532_v45, %v1530_v49  ;;  %v1406_v56 = vadd.f32 %v1405_v46, %v6073_v40 }
 0x2a4   : > { %v1407_v50 = vpop.f32.mrf.mxu0 }
 0x2a5   : > { %v1587_v51 = vpack.c.bf16 %v1533_v48, %v1531_v47  ;;  %v1408_v54 = vadd.f32 %v1407_v50, %v6070_v32  ;;  %v1534_v63 = vmax.f32 %v1406_v56, 0.0 }
 0x2a6   : > { %v1409_v53 = vpop.f32.mrf.mxu0 }
 0x2a7   : > { %v1410_v55 = vadd.f32 %v1409_v53, %v6073_v40  ;;  %1809 = vmatprep.mubr.bf16.mxu0 %v1587_v51  ;;  %v1535_v61 = vmax.f32 %v1408_v54, 0.0 }
 0x2a8   : > { %v1411_v57 = vpop.f32.mrf.mxu0  ;;  %1810 = vmatmul.mubr.bf16.gmra.mxu0 %v1586_v52 }
 0x2a9   : > { %v1412_v58 = vadd.f32 %v1411_v57, %v6070_v32  ;;  %v1536_v59 = vmax.f32 %v1410_v55, 0.0 }
 0x2aa   : > { %v1415_v60 = vpop.f32.mrf.mxu0 }
 0x2ab   : > { %v1537_v62 = vmax.f32 %v1412_v58, 0.0  ;;  %v1588_v2 = vpack.c.bf16 %v1536_v59, %v1534_v63  ;;  %v1416_v8 = vadd.f32 %v1415_v60, %v6073_v40 }
 0x2ac   : > { %v1417_v0 = vpop.f32.mrf.mxu0 }
 0x2ad   : > { %v1589_v1 = vpack.c.bf16 %v1537_v62, %v1535_v61  ;;  %v1418_v5 = vadd.f32 %v1417_v0, %v6070_v32  ;;  %v1538_v15 = vmax.f32 %v1416_v8, 0.0 }
 0x2ae   : > { %v1419_v4 = vpop.f32.mrf.mxu0 }
 0x2af   : > { %v1420_v7 = vadd.f32 %v1419_v4, %v6073_v40  ;;  %1817 = vmatprep.mubr.bf16.mxu1 %v1589_v1  ;;  %v1539_v13 = vmax.f32 %v1418_v5, 0.0 }
 0x2b0   : > { %v1421_v9 = vpop.f32.mrf.mxu0  ;;  %1818 = vmatmul.mubr.bf16.vlgmr.msra.gmra.mxu1 %v1588_v2 }
 0x2b1   : > { %v1422_v10 = vadd.f32 %v1421_v9, %v6070_v32  ;;  %v1540_v11 = vmax.f32 %v1420_v7, 0.0 }
 0x2b2   : > { %v1425_v12 = vpop.f32.mrf.mxu0 }
 0x2b3   : > { %v1541_v14 = vmax.f32 %v1422_v10, 0.0  ;;  %v1590_v18 = vpack.c.bf16 %v1540_v11, %v1538_v15  ;;  %v1426_v22 = vadd.f32 %v1425_v12, %v6073_v40 }
 0x2b4   : > { %v1427_v16 = vpop.f32.mrf.mxu0 }
 0x2b5   : > { %v1591_v17 = vpack.c.bf16 %v1541_v14, %v1539_v13  ;;  %v1428_v20 = vadd.f32 %v1427_v16, %v6070_v32  ;;  %v1542_v33 = vmax.f32 %v1426_v22, 0.0 }
 0x2b6   : > { %v1429_v19 = vpop.f32.mrf.mxu0 }
 0x2b7   : > { %v1430_v21 = vadd.f32 %v1429_v19, %v6073_v40  ;;  %1825 = vmatprep.mubr.bf16.mxu1 %v1591_v17  ;;  %v1543_v29 = vmax.f32 %v1428_v20, 0.0 }
 0x2b8   : > { %v1431_v23 = vpop.f32.mrf.mxu0  ;;  %1826 = vmatmul.mubr.bf16.gmra.mxu1 %v1590_v18 }
 0x2b9   : > { %v1432_v24 = vadd.f32 %v1431_v23, %v6070_v32  ;;  %v1544_v27 = vmax.f32 %v1430_v21, 0.0 }
 0x2ba   : > { %v1435_v6 = vpop.f32.mrf.mxu0 }
 0x2bb   : > { %v1545_v30 = vmax.f32 %v1432_v24, 0.0  ;;  %v1592_v36 = vpack.c.bf16 %v1544_v27, %v1542_v33  ;;  %v1436_v41 = vadd.f32 %v1435_v6, %v6073_v40 }
 0x2bc   : > { %v1437_v34 = vpop.f32.mrf.mxu0 }
 0x2bd   : > { %v1593_v35 = vpack.c.bf16 %v1545_v30, %v1543_v29  ;;  %v1438_v38 = vadd.f32 %v1437_v34, %v6070_v32  ;;  %v1546_v47 = vmax.f32 %v1436_v41, 0.0 }
 0x2be   : > { %v1439_v37 = vpop.f32.mrf.mxu0 }
 0x2bf   : > { %v1440_v39 = vadd.f32 %v1439_v37, %v6073_v40  ;;  %1833 = vmatprep.mubr.bf16.mxu1 %v1593_v35  ;;  %v1547_v45 = vmax.f32 %v1438_v38, 0.0 }
 0x2c0   : > { %v1441_v42 = vpop.f32.mrf.mxu0  ;;  %1834 = vmatmul.mubr.bf16.gmra.mxu1 %v1592_v36 }
 0x2c1   : > { %v1442_v31 = vadd.f32 %v1441_v42, %v6070_v32  ;;  %v1548_v43 = vmax.f32 %v1440_v39, 0.0 }
 0x2c2   : > { %v1445_v44 = vpop.f32.mrf.mxu0 }
 0x2c3   : > { %v1549_v46 = vmax.f32 %v1442_v31, 0.0  ;;  %v1594_v50 = vpack.c.bf16 %v1548_v43, %v1546_v47  ;;  %v1446_v54 = vadd.f32 %v1445_v44, %v6073_v40 }
 0x2c4   : > { %v1447_v48 = vpop.f32.mrf.mxu0 }
 0x2c5   : > { %v1595_v49 = vpack.c.bf16 %v1549_v46, %v1547_v45  ;;  %v1448_v52 = vadd.f32 %v1447_v48, %v6070_v32  ;;  %v1550_v61 = vmax.f32 %v1446_v54, 0.0 }
 0x2c6   : > { %v1449_v51 = vpop.f32.mrf.mxu0 }
 0x2c7   : > { %v1450_v53 = vadd.f32 %v1449_v51, %v6073_v40  ;;  %1841 = vmatprep.mubr.bf16.mxu1 %v1595_v49  ;;  %v1551_v59 = vmax.f32 %v1448_v52, 0.0 }
 0x2c8   : > { %v1451_v55 = vpop.f32.mrf.mxu0  ;;  %1842 = vmatmul.mubr.bf16.gmra.mxu1 %v1594_v50 }
 0x2c9   : > { %v1452_v56 = vadd.f32 %v1451_v55, %v6070_v32  ;;  %v1552_v57 = vmax.f32 %v1450_v53, 0.0 }
 0x2ca   : > { %v1455_v58 = vpop.f32.mrf.mxu0 }
 0x2cb   : > { %v1553_v60 = vmax.f32 %v1452_v56, 0.0  ;;  %v1596_v0 = vpack.c.bf16 %v1552_v57, %v1550_v61  ;;  %v1456_v5 = vadd.f32 %v1455_v58, %v6073_v40 }
 0x2cc   : > { %v1457_v62 = vpop.f32.mrf.mxu0 }
 0x2cd   : > { %v1597_v63 = vpack.c.bf16 %v1553_v60, %v1551_v59  ;;  %v1458_v2 = vadd.f32 %v1457_v62, %v6070_v32  ;;  %v1554_v13 = vmax.f32 %v1456_v5, 0.0 }
 0x2ce   : > { %v1459_v1 = vpop.f32.mrf.mxu0 }
 0x2cf   : > { %v1460_v4 = vadd.f32 %v1459_v1, %v6073_v40  ;;  %1849 = vmatprep.mubr.bf16.mxu1 %v1597_v63  ;;  %v1555_v11 = vmax.f32 %v1458_v2, 0.0 }
 0x2d0   : > { %v1461_v7 = vpop.f32.mrf.mxu0  ;;  %1850 = vmatmul.mubr.bf16.gmra.mxu1 %v1596_v0 }
 0x2d1   : > { %v1462_v8 = vadd.f32 %v1461_v7, %v6070_v32  ;;  %v1556_v9 = vmax.f32 %v1460_v4, 0.0 }
 0x2d2   : > { %v1465_v10 = vpop.f32.mrf.mxu0 }
 0x2d3   : > { %v1557_v12 = vmax.f32 %v1462_v8, 0.0  ;;  %v1598_v16 = vpack.c.bf16 %v1556_v9, %v1554_v13  ;;  %v1466_v20 = vadd.f32 %v1465_v10, %v6073_v40 }
 0x2d4   : > { %v1467_v14 = vpop.f32.mrf.mxu0 }
 0x2d5   : > { %v1599_v15 = vpack.c.bf16 %v1557_v12, %v1555_v11  ;;  %v1468_v18 = vadd.f32 %v1467_v14, %v6070_v32  ;;  %v1558_v29 = vmax.f32 %v1466_v20, 0.0 }
 0x2d6   : > { %v1469_v17 = vpop.f32.mrf.mxu0 }
 0x2d7   : > { %v1470_v19 = vadd.f32 %v1469_v17, %v6073_v40  ;;  %1857 = vmatprep.mubr.bf16.mxu1 %v1599_v15  ;;  %v1559_v27 = vmax.f32 %v1468_v18, 0.0 }
 0x2d8   : > { %v1471_v21 = vpop.f32.mrf.mxu0  ;;  %1858 = vmatmul.mubr.bf16.gmra.mxu1 %v1598_v16 }
 0x2d9   : > { %v1472_v22 = vadd.f32 %v1471_v21, %v6070_v32  ;;  %v1560_v23 = vmax.f32 %v1470_v19, 0.0 }
 0x2da   : > { %v1475_v24 = vpop.f32.mrf.mxu0 }
 0x2db   : > { %v1561_v6 = vmax.f32 %v1472_v22, 0.0  ;;  %v1476_v30 = vadd.f32 %v1475_v24, %v6073_v40  ;;  %v1600_v36 = vpack.c.bf16 %v1560_v23, %v1558_v29 }
 0x2dc   : > { %v1477_v33 = vpop.f32.mrf.mxu0 }
 0x2dd   : > { %v1601_v34 = vpack.c.bf16 %v1561_v6, %v1559_v27  ;;  %v1478_v35 = vadd.f32 %v1477_v33, %v6070_v32  ;;  %v1562_v39 = vmax.f32 %v1476_v30, 0.0  ;;  %v6142_v33 = vld [vmem:[%s7168_s8] ss:$0 sm:$0xff] }
 0x2de   : > { %v1479_v37 = vpop.f32.mrf.mxu0 }
 0x2df   : > { %v1480_v38 = vadd.f32 %v1479_v37, %v6073_v40  ;;  %1865 = vmatprep.mubr.bf16.mxu1 %v1601_v34  ;;  %v1563_v42 = vmax.f32 %v1478_v35, 0.0 }
 0x2e0   : > { %v1481_v41 = vpop.f32.mrf.mxu0  ;;  %1866 = vmatmul.mubr.bf16.gmra.mxu1 %v1600_v36 }
 0x2e1   : > { %v1564_v31 = vmax.f32 %v1480_v38, 0.0  ;;  %v1482_v43 = vadd.f32 %v1481_v41, %v6070_v32 }
 0x2e2   : > { %v1485_v44 = vpop.f32.mrf.mxu0 }
 0x2e3   : > { %v1565_v45 = vmax.f32 %v1482_v43, 0.0  ;;  %v1602_v46 = vpack.c.bf16 %v1564_v31, %v1562_v39  ;;  %v1486_v47 = vadd.f32 %v1485_v44, %v6073_v40 }
 0x2e4   : > { %v1487_v48 = vpop.f32.mrf.mxu0 }
 0x2e5   : > { %v1603_v49 = vpack.c.bf16 %v1565_v45, %v1563_v42  ;;  %v1488_v50 = vadd.f32 %v1487_v48, %v6070_v32  ;;  %v1566_v53 = vmax.f32 %v1486_v47, 0.0 }
 0x2e6   : > { %v1489_v51 = vpop.f32.mrf.mxu0 }
 0x2e7   : > { %v1490_v52 = vadd.f32 %v1489_v51, %v6073_v40  ;;  %1873 = vmatprep.mubr.bf16.mxu1 %v1603_v49  ;;  %v1567_v55 = vmax.f32 %v1488_v50, 0.0 }
 0x2e8   : > { %v1491_v54 = vpop.f32.mrf.mxu0  ;;  %1874 = vmatmul.mubr.bf16.gmra.mxu1 %v1602_v46 }
 0x2e9   : > { %v1568_v56 = vmax.f32 %v1490_v52, 0.0  ;;  %v1492_v57 = vadd.f32 %v1491_v54, %v6070_v32 }
 0x2ea   : > { %v1495_v58 = vpop.f32.mrf.mxu0 }
 0x2eb   : > { %v1569_v59 = vmax.f32 %v1492_v57, 0.0  ;;  %v1604_v60 = vpack.c.bf16 %v1568_v56, %v1566_v53  ;;  %v1496_v61 = vadd.f32 %v1495_v58, %v6073_v40 }
 0x2ec   : > { %v1497_v62 = vpop.f32.mrf.mxu0 }
 0x2ed   : > { %v1605_v63 = vpack.c.bf16 %v1569_v59, %v1567_v55  ;;  %v1498_v0 = vadd.f32 %v1497_v62, %v6070_v32  ;;  %v1570_v4 = vmax.f32 %v1496_v61, 0.0 }
 0x2ee   : > { %v1499_v1 = vpop.f32.mrf.mxu0 }
 0x2ef   : > { %v1500_v2 = vadd.f32 %v1499_v1, %v6073_v40  ;;  %1881 = vmatprep.mubr.bf16.mxu1 %v1605_v63  ;;  %v1571_v7 = vmax.f32 %v1498_v0, 0.0 }
 0x2f0   : > { %v1501_v5 = vpop.f32.mrf.mxu0  ;;  %1882 = vmatmul.mubr.bf16.gmra.mxu1 %v1604_v60 }
 0x2f1   : > { %v1572_v8 = vmax.f32 %v1500_v2, 0.0  ;;  %v1502_v9 = vadd.f32 %v1501_v5, %v6070_v32 }
 0x2f2   : > { %v1505_v10 = vpop.f32.mrf.mxu0 }
 0x2f3   : > { %v1573_v11 = vmax.f32 %v1502_v9, 0.0  ;;  %v1606_v12 = vpack.c.bf16 %v1572_v8, %v1570_v4  ;;  %v1506_v13 = vadd.f32 %v1505_v10, %v6073_v40 }
 0x2f4   : > { %v1507_v14 = vpop.f32.mrf.mxu0 }
 0x2f5   : > { %v1607_v15 = vpack.c.bf16 %v1573_v11, %v1571_v7  ;;  %v1508_v16 = vadd.f32 %v1507_v14, %v6070_v32  ;;  %v1574_v19 = vmax.f32 %v1506_v13, 0.0 }
 0x2f6   : > { %v1509_v17 = vpop.f32.mrf.mxu0 }
 0x2f7   : > { %v1510_v18 = vadd.f32 %v1509_v17, %v6073_v40  ;;  %1889 = vmatprep.mubr.bf16.mxu1 %v1607_v15  ;;  %v1575_v21 = vmax.f32 %v1508_v16, 0.0 }
 0x2f8   : > { %v1511_v20 = vpop.f32.mrf.mxu0  ;;  %1890 = vmatmul.mubr.bf16.gmra.mxu1 %v1606_v12 }
 0x2f9   : > { %v1576_v22 = vmax.f32 %v1510_v18, 0.0  ;;  %v1512_v23 = vadd.f32 %v1511_v20, %v6070_v32  ;;  %v6148_v32 = vld [vmem:[%s7169_s9] ss:$0 sm:$0xff] }
 0x2fb   : > { %v1577_v24 = vmax.f32 %v1512_v23, 0.0  ;;  %v1608_v27 = vpack.c.bf16 %v1576_v22, %v1574_v19 }
 0x2fd   : > { %v1609_v6 = vpack.c.bf16 %v1577_v24, %v1575_v21 }
 0x2ff   : > { %1897 = vmatprep.mubr.bf16.mxu1 %v1609_v6 }
 0x300   : > { %1898 = vmatmul.mubr.bf16.gmra.mxu1 %v1608_v27 }
 0x348   : > { %v5220_v29 = vpop.f32.mrf.mxu0 }
 0x34a   : > { %v5221_v30 = vpop.f32.mrf.mxu0 }
 0x34b   : > { %v5222_v40 = vadd.f32 %v5221_v30, %v5220_v29 }
 0x34c   : > { %v5223_v34 = vpop.f32.mrf.mxu0 }
 0x34d   : > { %v1780_v35 = vadd.f32 %v5222_v40, %v6142_v33 }
 0x34e   : > { %v5224_v36 = vpop.f32.mrf.mxu0 }
 0x34f   : > { %v5225_v37 = vadd.f32 %v5224_v36, %v5223_v34  ;;  %v1906_v38 = vmax.f32 %v1780_v35, 0.0 }
 0x350   : > { %v5226_v39 = vpop.f32.mrf.mxu0 }
 0x351   : > { %v1783_v41 = vadd.f32 %v5225_v37, %v6142_v33  ;;  %v1945_v42 = vmul.f32 %v6148_v32, %v1906_v38 }
 0x352   : > { %v5227_v31 = vpop.f32.mrf.mxu0 }
 0x353   : > { %v1907_v43 = vmax.f32 %v1783_v41, 0.0  ;;  %v5228_v44 = vadd.f32 %v5227_v31, %v5226_v39  ;;  %1977 = vadd.xlane.f32.xlu0 %v1945_v42 }
 0x354   : > { %v5229_v45 = vpop.f32.mrf.mxu0 }
 0x355   : > { %v1946_v46 = vmul.f32 %v6148_v32, %v1907_v43  ;;  %v1788_v47 = vadd.f32 %v5228_v44, %v6142_v33 }
 0x356   : > { %v5230_v48 = vpop.f32.mrf.mxu0 }
 0x357   : > { %v5231_v49 = vadd.f32 %v5230_v48, %v5229_v45  ;;  %1979 = vadd.xlane.f32.xlu0 %v1946_v46  ;;  %v1908_v50 = vmax.f32 %v1788_v47, 0.0 }
 0x358   : > { %v5232_v51 = vpop.f32.mrf.mxu0 }
 0x359   : > { %v1791_v52 = vadd.f32 %v5231_v49, %v6142_v33  ;;  %v1947_v53 = vmul.f32 %v6148_v32, %v1908_v50 }
 0x35a   : > { %v5233_v54 = vpop.f32.mrf.mxu0 }
 0x35b   : > { %v1909_v55 = vmax.f32 %v1791_v52, 0.0  ;;  %v5234_v56 = vadd.f32 %v5233_v54, %v5232_v51  ;;  %1981 = vadd.xlane.f32.xlu1 %v1947_v53 }
 0x35c   : > { %v5235_v57 = vpop.f32.mrf.mxu0 }
 0x35d   : > { %v1796_v58 = vadd.f32 %v5234_v56, %v6142_v33  ;;  %v1948_v59 = vmul.f32 %v6148_v32, %v1909_v55 }
 0x35e   : > { %v5236_v60 = vpop.f32.mrf.mxu0 }
 0x35f   : > { %v1910_v61 = vmax.f32 %v1796_v58, 0.0  ;;  %v5237_v62 = vadd.f32 %v5236_v60, %v5235_v57  ;;  %1983 = vadd.xlane.f32.xlu1 %v1948_v59 }
 0x360   : > { %v5238_v63 = vpop.f32.mrf.mxu0 }
 0x361   : > { %v1799_v0 = vadd.f32 %v5237_v62, %v6142_v33  ;;  %v1949_v1 = vmul.f32 %v6148_v32, %v1910_v61 }
 0x362   : > { %v5239_v2 = vpop.f32.mrf.mxu0 }
 0x363   : > { %v1911_v4 = vmax.f32 %v1799_v0, 0.0  ;;  %v5240_v5 = vadd.f32 %v5239_v2, %v5238_v63  ;;  %1985 = vadd.xlane.f32.xlu0 %v1949_v1 }
 0x364   : > { %v5241_v7 = vpop.f32.mrf.mxu0 }
 0x365   : > { %v1804_v8 = vadd.f32 %v5240_v5, %v6142_v33  ;;  %v1950_v9 = vmul.f32 %v6148_v32, %v1911_v4 }
 0x366   : > { %v5242_v10 = vpop.f32.mrf.mxu0 }
 0x367   : > { %v1912_v11 = vmax.f32 %v1804_v8, 0.0  ;;  %v5243_v12 = vadd.f32 %v5242_v10, %v5241_v7  ;;  %1987 = vadd.xlane.f32.xlu1 %v1950_v9 }
 0x368   : > { %v5244_v13 = vpop.f32.mrf.mxu0 }
 0x369   : > { %v1807_v14 = vadd.f32 %v5243_v12, %v6142_v33  ;;  %v1951_v15 = vmul.f32 %v6148_v32, %v1912_v11 }
 0x36a   : > { %v5245_v16 = vpop.f32.mrf.mxu0 }
 0x36b   : > { %v1913_v17 = vmax.f32 %v1807_v14, 0.0  ;;  %v5246_v18 = vadd.f32 %v5245_v16, %v5244_v13  ;;  %1989 = vadd.xlane.f32.xlu0 %v1951_v15 }
 0x36c   : > { %v5247_v19 = vpop.f32.mrf.mxu0 }
 0x36d   : > { %v1812_v20 = vadd.f32 %v5246_v18, %v6142_v33  ;;  %v1952_v21 = vmul.f32 %v6148_v32, %v1913_v17 }
 0x36e   : > { %v5248_v22 = vpop.f32.mrf.mxu0 }
 0x36f   : > { %v1914_v23 = vmax.f32 %v1812_v20, 0.0  ;;  %v5249_v24 = vadd.f32 %v5248_v22, %v5247_v19  ;;  %1991 = vadd.xlane.f32.xlu1 %v1952_v21 }
 0x370   : > { %v5250_v27 = vpop.f32.mrf.mxu1 }
 0x371   : > { %v1815_v6 = vadd.f32 %v5249_v24, %v6142_v33  ;;  %v1953_v29 = vmul.f32 %v6148_v32, %v1914_v23 }
 0x372   : > { %v5251_v30 = vpop.f32.mrf.mxu1 }
 0x373   : > { %v1915_v40 = vmax.f32 %v1815_v6, 0.0  ;;  %v5252_v34 = vadd.f32 %v5251_v30, %v5250_v27  ;;  %1993 = vadd.xlane.f32.xlu0 %v1953_v29 }
 0x374   : > { %v5253_v35 = vpop.f32.mrf.mxu1 }
 0x375   : > { %v1820_v36 = vadd.f32 %v5252_v34, %v6142_v33  ;;  %v1954_v37 = vmul.f32 %v6148_v32, %v1915_v40 }
 0x376   : > { %v5254_v38 = vpop.f32.mrf.mxu1 }
 0x377   : > { %v1916_v39 = vmax.f32 %v1820_v36, 0.0  ;;  %v5255_v41 = vadd.f32 %v5254_v38, %v5253_v35  ;;  %1995 = vadd.xlane.f32.xlu1 %v1954_v37 }
 0x378   : > { %v5256_v42 = vpop.f32.mrf.mxu1 }
 0x379   : > { %v1823_v31 = vadd.f32 %v5255_v41, %v6142_v33  ;;  %v1955_v43 = vmul.f32 %v6148_v32, %v1916_v39 }
 0x37a   : > { %v5257_v44 = vpop.f32.mrf.mxu1 }
 0x37b   : > { %v1917_v45 = vmax.f32 %v1823_v31, 0.0  ;;  %v5258_v46 = vadd.f32 %v5257_v44, %v5256_v42  ;;  %1997 = vadd.xlane.f32.xlu0 %v1955_v43 }
 0x37c   : > { %v5259_v47 = vpop.f32.mrf.mxu1 }
 0x37d   : > { %v1828_v48 = vadd.f32 %v5258_v46, %v6142_v33  ;;  %v1956_v49 = vmul.f32 %v6148_v32, %v1917_v45 }
 0x37e   : > { %v5260_v50 = vpop.f32.mrf.mxu1 }
 0x37f   : > { %v1918_v51 = vmax.f32 %v1828_v48, 0.0  ;;  %v5261_v52 = vadd.f32 %v5260_v50, %v5259_v47  ;;  %1999 = vadd.xlane.f32.xlu1 %v1956_v49 }
 0x380   : > { %v5262_v53 = vpop.f32.mrf.mxu1 }
 0x381   : > { %v1831_v54 = vadd.f32 %v5261_v52, %v6142_v33  ;;  %v1957_v55 = vmul.f32 %v6148_v32, %v1918_v51 }
 0x382   : > { %v5263_v56 = vpop.f32.mrf.mxu1 }
 0x383   : > { %v1919_v57 = vmax.f32 %v1831_v54, 0.0  ;;  %v5264_v58 = vadd.f32 %v5263_v56, %v5262_v53  ;;  %2001 = vadd.xlane.f32.xlu0 %v1957_v55 }
 0x384   : > { %v5265_v59 = vpop.f32.mrf.mxu1 }
 0x385   : > { %v1836_v60 = vadd.f32 %v5264_v58, %v6142_v33  ;;  %v1958_v61 = vmul.f32 %v6148_v32, %v1919_v57 }
 0x386   : > { %v5266_v62 = vpop.f32.mrf.mxu1 }
 0x387   : > { %v1920_v63 = vmax.f32 %v1836_v60, 0.0  ;;  %v5267_v0 = vadd.f32 %v5266_v62, %v5265_v59  ;;  %2003 = vadd.xlane.f32.xlu1 %v1958_v61 }
 0x388   : > { %v5268_v1 = vpop.f32.mrf.mxu1 }
 0x389   : > { %v1839_v2 = vadd.f32 %v5267_v0, %v6142_v33  ;;  %v1959_v4 = vmul.f32 %v6148_v32, %v1920_v63 }
 0x38a   : > { %v5269_v5 = vpop.f32.mrf.mxu1 }
 0x38b   : > { %v1921_v7 = vmax.f32 %v1839_v2, 0.0  ;;  %v5270_v8 = vadd.f32 %v5269_v5, %v5268_v1  ;;  %2005 = vadd.xlane.f32.xlu0 %v1959_v4 }
 0x38c   : > { %v5271_v9 = vpop.f32.mrf.mxu1 }
 0x38d   : > { %v1844_v10 = vadd.f32 %v5270_v8, %v6142_v33  ;;  %v1960_v11 = vmul.f32 %v6148_v32, %v1921_v7 }
 0x38e   : > { %v5272_v12 = vpop.f32.mrf.mxu1 }
 0x38f   : > { %v1922_v13 = vmax.f32 %v1844_v10, 0.0  ;;  %v5273_v14 = vadd.f32 %v5272_v12, %v5271_v9  ;;  %2007 = vadd.xlane.f32.xlu1 %v1960_v11 }
 0x390   : > { %v5274_v15 = vpop.f32.mrf.mxu1 }
 0x391   : > { %v1847_v16 = vadd.f32 %v5273_v14, %v6142_v33  ;;  %v1961_v17 = vmul.f32 %v6148_v32, %v1922_v13 }
 0x392   : > { %v5275_v18 = vpop.f32.mrf.mxu1 }
 0x393   : > { %v1923_v19 = vmax.f32 %v1847_v16, 0.0  ;;  %v5276_v20 = vadd.f32 %v5275_v18, %v5274_v15  ;;  %2009 = vadd.xlane.f32.xlu0 %v1961_v17 }
 0x394   : > { %v5277_v21 = vpop.f32.mrf.mxu1 }
 0x395   : > { %v1852_v22 = vadd.f32 %v5276_v20, %v6142_v33  ;;  %v1962_v23 = vmul.f32 %v6148_v32, %v1923_v19 }
 0x396   : > { %v5278_v24 = vpop.f32.mrf.mxu1 }
 0x397   : > { %v1924_v27 = vmax.f32 %v1852_v22, 0.0  ;;  %v5279_v6 = vadd.f32 %v5278_v24, %v5277_v21  ;;  %2011 = vadd.xlane.f32.xlu1 %v1962_v23 }
 0x398   : > { %v5280_v29 = vpop.f32.mrf.mxu1 }
 0x399   : > { %v1855_v30 = vadd.f32 %v5279_v6, %v6142_v33  ;;  %v1963_v40 = vmul.f32 %v6148_v32, %v1924_v27 }
 0x39a   : > { %v5281_v34 = vpop.f32.mrf.mxu1 }
 0x39b   : > { %v1925_v35 = vmax.f32 %v1855_v30, 0.0  ;;  %v5282_v36 = vadd.f32 %v5281_v34, %v5280_v29  ;;  %2013 = vadd.xlane.f32.xlu0 %v1963_v40  ;;  %v2041_v29 = vld [vmem:[#allocation2] sm:$0x1] }
 0x39c   : > { %v5283_v37 = vpop.f32.mrf.mxu1 }
 0x39d   : > { %v1860_v38 = vadd.f32 %v5282_v36, %v6142_v33  ;;  %v1964_v39 = vmul.f32 %v6148_v32, %v1925_v35 }
 0x39e   : > { %v5284_v41 = vpop.f32.mrf.mxu1 }
 0x39f   : > { %v1926_v42 = vmax.f32 %v1860_v38, 0.0  ;;  %v5285_v31 = vadd.f32 %v5284_v41, %v5283_v37  ;;  %2015 = vadd.xlane.f32.xlu1 %v1964_v39 }
 0x3a0   : > { %v5286_v43 = vpop.f32.mrf.mxu1 }
 0x3a1   : > { %v1863_v44 = vadd.f32 %v5285_v31, %v6142_v33  ;;  %v1965_v45 = vmul.f32 %v6148_v32, %v1926_v42 }
 0x3a2   : > { %v5287_v46 = vpop.f32.mrf.mxu1 }
 0x3a3   : > { %v1927_v47 = vmax.f32 %v1863_v44, 0.0  ;;  %v5288_v48 = vadd.f32 %v5287_v46, %v5286_v43  ;;  %2017 = vadd.xlane.f32.xlu0 %v1965_v45 }
 0x3a4   : > { %v5289_v49 = vpop.f32.mrf.mxu1 }
 0x3a5   : > { %v1868_v50 = vadd.f32 %v5288_v48, %v6142_v33  ;;  %v1966_v51 = vmul.f32 %v6148_v32, %v1927_v47 }
 0x3a6   : > { %v5290_v52 = vpop.f32.mrf.mxu1 }
 0x3a7   : > { %v1928_v53 = vmax.f32 %v1868_v50, 0.0  ;;  %v5291_v54 = vadd.f32 %v5290_v52, %v5289_v49  ;;  %2019 = vadd.xlane.f32.xlu1 %v1966_v51 }
 0x3a8   : > { %v5292_v55 = vpop.f32.mrf.mxu1 }
 0x3a9   : > { %v1871_v56 = vadd.f32 %v5291_v54, %v6142_v33  ;;  %v1967_v57 = vmul.f32 %v6148_v32, %v1928_v53 }
 0x3aa   : > { %v5293_v58 = vpop.f32.mrf.mxu1 }
 0x3ab   : > { %v1929_v59 = vmax.f32 %v1871_v56, 0.0  ;;  %v5294_v60 = vadd.f32 %v5293_v58, %v5292_v55  ;;  %2021 = vadd.xlane.f32.xlu0 %v1967_v57 }
 0x3ac   : > { %v5295_v61 = vpop.f32.mrf.mxu1 }
 0x3ad   : > { %v1876_v62 = vadd.f32 %v5294_v60, %v6142_v33  ;;  %v1968_v63 = vmul.f32 %v6148_v32, %v1929_v59 }
 0x3ae   : > { %v5296_v0 = vpop.f32.mrf.mxu1 }
 0x3af   : > { %v1930_v1 = vmax.f32 %v1876_v62, 0.0  ;;  %v5297_v2 = vadd.f32 %v5296_v0, %v5295_v61  ;;  %2023 = vadd.xlane.f32.xlu1 %v1968_v63 }
 0x3b0   : > { %v5298_v4 = vpop.f32.mrf.mxu1 }
 0x3b1   : > { %v1879_v5 = vadd.f32 %v5297_v2, %v6142_v33  ;;  %v1969_v7 = vmul.f32 %v6148_v32, %v1930_v1 }
 0x3b2   : > { %v5299_v8 = vpop.f32.mrf.mxu1 }
 0x3b3   : > { %v1931_v9 = vmax.f32 %v1879_v5, 0.0  ;;  %v5300_v10 = vadd.f32 %v5299_v8, %v5298_v4  ;;  %2025 = vadd.xlane.f32.xlu1 %v1969_v7  ;;  %v5564_v8 = vmov 1966171168  }
 0x3b4   : > { %v5301_v11 = vpop.f32.mrf.mxu1 }
 0x3b5   : > { %v1884_v12 = vadd.f32 %v5300_v10, %v6142_v33  ;;  %v1970_v13 = vmul.f32 %v6148_v32, %v1931_v9  ;;  %v3144_v9 = vunpack.c.l.s4 %v5564_v8 }
 0x3b6   : > { %v5302_v14 = vpop.f32.mrf.mxu1 }
 0x3b7   : > { %v1932_v15 = vmax.f32 %v1884_v12, 0.0  ;;  %v5303_v16 = vadd.f32 %v5302_v14, %v5301_v11  ;;  %2027 = vadd.xlane.f32.xlu1 %v1970_v13  ;;  %v3145_v12 = vunpack.c.0.s8 %v3144_v9 }
 0x3b8   : > { %v5304_v17 = vpop.f32.mrf.mxu1 }
 0x3b9   : > { %v1887_v18 = vadd.f32 %v5303_v16, %v6142_v33  ;;  %v1971_v19 = vmul.f32 %v6148_v32, %v1932_v15  ;;  %v6217_v16 = vsub.s32 2, %v5937_v26 }
 0x3ba   : > { %v5305_v20 = vpop.f32.mrf.mxu1 }
 0x3bb   : > { %v1933_v21 = vmax.f32 %v1887_v18, 0.0  ;;  %v5306_v22 = vadd.f32 %v5305_v20, %v5304_v17  ;;  %2029 = vadd.xlane.f32.xlu1 %v1971_v19  ;;  %v6220_v17 = vsub.s32 3, %v5937_v26  ;;  %v6223_v18 = vsub.s32 4, %v5937_v26 }
 0x3bc   : > { %v5307_v23 = vpop.f32.mrf.mxu1  ;;  %v6226_v19 = vsub.s32 5, %v5937_v26  ;;  %v6229_v20 = vsub.s32 6, %v5937_v26 }
 0x3bd   : > { %v1892_v24 = vadd.f32 %v5306_v22, %v6142_v33  ;;  %v1972_v27 = vmul.f32 %v6148_v32, %v1933_v21  ;;  %v6232_v21 = vsub.s32 7, %v5937_v26  ;;  %v6235_v22 = vsub.s32 %v3145_v12, %v5937_v26 }
 0x3be   : > { %v5308_v6 = vpop.f32.mrf.mxu1 }
 0x3bf   : > { %v1934_v30 = vmax.f32 %v1892_v24, 0.0  ;;  %v5309_v40 = vadd.f32 %v5308_v6, %v5307_v23  ;;  %2031 = vadd.xlane.f32.xlu1 %v1972_v27 }
 0x3c0   : > { %v5310_v34 = vpop.f32.mrf.mxu1 }
 0x3c1   : > { %v1895_v35 = vadd.f32 %v5309_v40, %v6142_v33  ;;  %2044 = vperm.xlu0 %5409, %v2041_v29   ;;  %v1973_v36 = vmul.f32 %v6148_v32, %v1934_v30 }
 0x3c2   : > { %v5311_v37 = vpop.f32.mrf.mxu1 }
 0x3c3   : > { %v1935_v38 = vmax.f32 %v1895_v35, 0.0  ;;  %v5312_v39 = vadd.f32 %v5311_v37, %v5310_v34  ;;  %2033 = vadd.xlane.f32.xlu1 %v1973_v36 }
 0x3c4   : > { %v5313_v41 = vpop.f32.mrf.mxu1 }
 0x3c5   : > { %v1900_v42 = vadd.f32 %v5312_v39, %v6142_v33  ;;  %v1974_v31 = vmul.f32 %v6148_v32, %v1935_v38 }
 0x3c6   : > { %v5314_v43 = vpop.f32.mrf.mxu1 }
 0x3c7   : > { %v1936_v44 = vmax.f32 %v1900_v42, 0.0  ;;  %v5315_v45 = vadd.f32 %v5314_v43, %v5313_v41  ;;  %2035 = vadd.xlane.f32.xlu1 %v1974_v31 }
 0x3c9   : > { %v1903_v46 = vadd.f32 %v5315_v45, %v6142_v33  ;;  %v1975_v47 = vmul.f32 %v6148_v32, %v1936_v44 }
 0x3cb   : > { %v1937_v48 = vmax.f32 %v1903_v46, 0.0  ;;  %2037 = vadd.xlane.f32.xlu1 %v1975_v47 }
 0x3cd   : > { %v1976_v49 = vmul.f32 %v6148_v32, %v1937_v48 }
 0x3cf   : > { %2039 = vadd.xlane.f32.xlu1 %v1976_v49 }
 0x3dc   : > { %v1978_v50 = vpop.xlane.xlu0 %1977 }
 0x3e0   : > { %v1980_v52 = vpop.xlane.xlu0 %1979 }
 0x3e4   : > { %v1982_v51 = vpop.xlane.xlu1 %1981 }
 0x3e8   : > { %v1984_v53 = vpop.xlane.xlu1 %1983 }
 0x3ec   : > { %v1986_v54 = vpop.xlane.xlu0 %1985 }
 0x3f0   : > { %v1988_v55 = vpop.xlane.xlu1 %1987 }
 0x3f4   : > { %v1990_v56 = vpop.xlane.xlu0 %1989 }
 0x3f8   : > { %v1992_v57 = vpop.xlane.xlu1 %1991 }
 0x3fc   : > { %v1994_v58 = vpop.xlane.xlu0 %1993 }
 0x400   : > { %v1996_v59 = vpop.xlane.xlu1 %1995 }
 0x404   : > { %v1998_v60 = vpop.xlane.xlu0 %1997 }
 0x408   : > { %v2000_v61 = vpop.xlane.xlu1 %1999 }
 0x40c   : > { %v2002_v33 = vpop.xlane.xlu0 %2001 }
 0x410   : > { %v2004_v62 = vpop.xlane.xlu1 %2003 }
 0x414   : > { %v2006_v63 = vpop.xlane.xlu0 %2005 }
 0x418   : > { %v2008_v0 = vpop.xlane.xlu1 %2007 }
 0x41c   : > { %v2010_v1 = vpop.xlane.xlu0 %2009 }
 0x420   : > { %v2012_v2 = vpop.xlane.xlu1 %2011 }
 0x424   : > { %v2014_v32 = vpop.xlane.xlu0 %2013 }
 0x428   : > { %v2016_v4 = vpop.xlane.xlu1 %2015 }
 0x42c   : > { %v2018_v5 = vpop.xlane.xlu0 %2017 }
 0x430   : > { %v2020_v7 = vpop.xlane.xlu1 %2019 }
 0x434   : > { %v2022_v10 = vpop.xlane.xlu0 %2021 }
 0x438   : > { %v2024_v11 = vpop.xlane.xlu1 %2023 }
 0x43c   : > { %v2026_v13 = vpop.xlane.xlu1 %2025  ;;  %v2045_v14 = vpop.permute.xlu0 %2044 }
 0x43d   : > { %v6214_v15 = vrot.slane %v2045_v14, %v5949_v3 }
 0x43f   : > { %v6238_v23 = vadd.f32 %v6214_v15, %v1978_v50  ;;  %v2052_v24 = vadd.f32 %v6214_v15, %v1980_v52  ;;  %v6242_v27 = vadd.f32 %v6214_v15, %v1982_v51  ;;  %v6245_v6 = vadd.f32 %v6214_v15, %v1984_v53 }
 0x440   : > { %v6248_v29 = vadd.f32 %v6214_v15, %v1986_v54  ;;  %v6251_v30 = vadd.f32 %v6214_v15, %v1988_v55  ;;  %v6254_v40 = vadd.f32 %v6214_v15, %v1990_v56  ;;  %v6257_v34 = vadd.f32 %v6214_v15, %v1992_v57  ;;  %v2028_v35 = vpop.xlane.xlu1 %2027 }
 0x441   : > { %v6260_v36 = vadd.f32 %v6214_v15, %v1994_v58  ;;  %v6263_v37 = vadd.f32 %v6214_v15, %v1996_v59  ;;  %v6266_v38 = vadd.f32 %v6214_v15, %v1998_v60  ;;  %v6269_v39 = vadd.f32 %v6214_v15, %v2000_v61 }
 0x442   : > { %v6272_v41 = vadd.f32 %v6214_v15, %v2002_v33  ;;  %v6275_v42 = vadd.f32 %v6214_v15, %v2004_v62  ;;  %v6278_v31 = vadd.f32 %v6214_v15, %v2006_v63  ;;  %v6281_v43 = vadd.f32 %v6214_v15, %v2008_v0 }
 0x443   : > { %v6284_v44 = vadd.f32 %v6214_v15, %v2010_v1  ;;  %v6287_v45 = vadd.f32 %v6214_v15, %v2012_v2  ;;  %v6290_v46 = vadd.f32 %v6214_v15, %v2014_v32  ;;  %v6293_v47 = vadd.f32 %v6214_v15, %v2016_v4 }
 0x444   : > { %v6296_v48 = vadd.f32 %v6214_v15, %v2018_v5  ;;  %v6299_v49 = vadd.f32 %v6214_v15, %v2020_v7  ;;  %v6302_v50 = vadd.f32 %v6214_v15, %v2022_v10  ;;  %v6305_v51 = vadd.f32 %v6214_v15, %v2024_v11  ;;  %v2030_v52 = vpop.xlane.xlu1 %2029 }
 0x445   : > { %v6308_v53 = vadd.f32 %v6214_v15, %v2026_v13  ;;  %v6311_v54 = vadd.f32 %v6214_v15, %v2028_v35  ;;  %v6314_v55 = vadd.f32 %v6214_v15, %v2030_v52  ;;  %v2150_v56 = vrot.slane %v2052_v24, %v5949_v3 }
 0x446   : > { %v2154_v57 = vrot.slane %v2052_v24, %v5946_v28  ;;  %v2158_v58 = vrot.slane %v2052_v24, %v6217_v16  ;;  %v2162_v59 = vrot.slane %v2052_v24, %v6220_v17  ;;  %v2166_v60 = vrot.slane %v2052_v24, %v6223_v18 }
 0x447   : > { %v2170_v61 = vrot.slane %v2052_v24, %v6226_v19  ;;  %v2174_v33 = vrot.slane %v2052_v24, %v6229_v20  ;;  %v2178_v62 = vrot.slane %v2052_v24, %v6232_v21  ;;  %v2118_v63 = vrot.slane %v6238_v23, %v5949_v3 }
 0x448   : > { %v2032_v0 = vpop.xlane.xlu1 %2031  ;;  %v3188_v1 = vcombine.low %v2150_v56, %v2154_v57  ;;  %v3189_v2 = vcombine.low %v2158_v58, %v2162_v59  ;;  %v2122_v32 = vrot.slane %v6238_v23, %v5946_v28  ;;  %v2126_v4 = vrot.slane %v6238_v23, %v6217_v16 }
 0x449   : > { %v6331_v5 = vadd.f32 %v6214_v15, %v2032_v0  ;;  %v3190_v7 = vcombine.low %v2166_v60, %v2170_v61  ;;  %v3191_v8 = vcombine.low %v2174_v33, %v2178_v62  ;;  %v2130_v9 = vrot.slane %v6238_v23, %v6220_v17 }
 0x44a   : > { %v3198_v10 = vrot.slane %v3188_v1, %v6235_v22  ;;  %v3205_v11 = vrot.slane %v3189_v2, %v6235_v22  ;;  %v2134_v12 = vrot.slane %v6238_v23, %v6223_v18  ;;  %v2138_v13 = vrot.slane %v6238_v23, %v6226_v19 }
 0x44b   : > { %v3212_v14 = vrot.slane %v3190_v7, %v6235_v22  ;;  %v3219_v24 = vrot.slane %v3191_v8, %v6235_v22  ;;  %v2142_v35 = vrot.slane %v6238_v23, %v6229_v20  ;;  %v2146_v52 = vrot.slane %v6238_v23, %v6232_v21 }
 0x44c   : > { %v2034_v56 = vpop.xlane.xlu1 %2033  ;;  %v3220_v57 = vcombine.low %v3198_v10, %v3205_v11  ;;  %v3139_v58 = vcombine.low %v2118_v63, %v2122_v32  ;;  %v3140_v59 = vcombine.low %v2126_v4, %v2130_v9  ;;  %v3141_v60 = vcombine.low %v2134_v12, %v2138_v13 }
 0x44d   : > { %v6348_v61 = vadd.f32 %v6214_v15, %v2034_v56  ;;  %v3221_v33 = vcombine.low %v3212_v14, %v3219_v24  ;;  %v3142_v62 = vcombine.low %v2142_v35, %v2146_v52  ;;  %v2182_v0 = vrot.slane %v6242_v27, %v5949_v3 }
 0x44e   : > { %v3228_v1 = vrot.slane %v3220_v57, %v6235_v22  ;;  %v3149_v2 = vrot.slane %v3139_v58, %v6235_v22  ;;  %v3156_v7 = vrot.slane %v3140_v59, %v6235_v22  ;;  %v3163_v23 = vrot.slane %v3141_v60, %v6235_v22 }
 0x44f   : > { %v3235_v63 = vrot.slane %v3221_v33, %v6235_v22  ;;  %v3170_v32 = vrot.slane %v3142_v62, %v6235_v22  ;;  %v2186_v4 = vrot.slane %v6242_v27, %v5946_v28  ;;  %v2190_v8 = vrot.slane %v6242_v27, %v6217_v16 }
 0x450   : > { %v3171_v9 = vcombine.low %v3149_v2, %v3156_v7  ;;  %v2036_v10 = vpop.xlane.xlu1 %2035  ;;  %v2194_v11 = vrot.slane %v6242_v27, %v6220_v17  ;;  %v2198_v12 = vrot.slane %v6242_v27, %v6223_v18  ;;  %v2202_v13 = vrot.slane %v6242_v27, %v6226_v19 }
 0x451   : > { %v3236_v14 = vcombine.low %v3228_v1, %v3235_v63  ;;  %v3172_v24 = vcombine.low %v3163_v23, %v3170_v32  ;;  %v6369_v35 = vadd.f32 %v6214_v15, %v2036_v10  ;;  %v2206_v52 = vrot.slane %v6242_v27, %v6229_v20 }
 0x452   : > { %v3179_v56 = vrot.slane %v3171_v9, %v6235_v22  ;;  %v2210_v57 = vrot.slane %v6242_v27, %v6232_v21  ;;  %v3237_v58 = vcombine.low %v2182_v0, %v2186_v4  ;;  %v3238_v59 = vcombine.low %v2190_v8, %v2194_v11 }
 0x453   : > { %4711 = vperm.xlu0 %5409, %v3236_v14   ;;  %v3186_v60 = vrot.slane %v3172_v24, %v6235_v22  ;;  %v3239_v33 = vcombine.low %v2198_v12, %v2202_v13  ;;  %v2630_v62 = vrot.slane %v6284_v44, %v5949_v3  ;;  %v2634_v1 = vrot.slane %v6284_v44, %v5946_v28 }
 0x454   : > { %v3240_v2 = vcombine.low %v2206_v52, %v2210_v57  ;;  %v3247_v7 = vrot.slane %v3237_v58, %v6235_v22  ;;  %v3254_v23 = vrot.slane %v3238_v59, %v6235_v22  ;;  %v2638_v27 = vrot.slane %v6284_v44, %v6217_v16  ;;  %v2038_v0 = vpop.xlane.xlu1 %2037 }
 0x455   : > { %v3187_v63 = vcombine.low %v3179_v56, %v3186_v60  ;;  %v3261_v32 = vrot.slane %v3239_v33, %v6235_v22  ;;  %v2642_v4 = vrot.slane %v6284_v44, %v6220_v17  ;;  %v2646_v8 = vrot.slane %v6284_v44, %v6223_v18 }
 0x456   : > { %v3268_v9 = vrot.slane %v3240_v2, %v6235_v22  ;;  %v3269_v10 = vcombine.low %v3247_v7, %v3254_v23  ;;  %v2650_v11 = vrot.slane %v6284_v44, %v6226_v19  ;;  %v2654_v12 = vrot.slane %v6284_v44, %v6229_v20 }
 0x457   : > { %4708 = vperm.xlu1 %5410, %v3187_v63   ;;  %v2658_v13 = vrot.slane %v6284_v44, %v6232_v21  ;;  %v3923_v14 = vcombine.low %v2630_v62, %v2634_v1  ;;  %v3924_v24 = vcombine.low %v2638_v27, %v2642_v4  ;;  %v6398_v52 = vadd.f32 %v6214_v15, %v2038_v0 }
 0x458   : > { %v3270_v56 = vcombine.low %v3261_v32, %v3268_v9  ;;  %v3277_v57 = vrot.slane %v3269_v10, %v6235_v22  ;;  %v3925_v58 = vcombine.low %v2646_v8, %v2650_v11  ;;  %v2214_v59 = vrot.slane %v6245_v6, %v5949_v3 }
 0x459   : > { %v3926_v60 = vcombine.low %v2654_v12, %v2658_v13  ;;  %v3933_v33 = vrot.slane %v3923_v14, %v6235_v22  ;;  %v3940_v2 = vrot.slane %v3924_v24, %v6235_v22  ;;  %v2218_v44 = vrot.slane %v6245_v6, %v5946_v28 }
 0x45a   : > { %v3284_v62 = vrot.slane %v3270_v56, %v6235_v22  ;;  %v3947_v1 = vrot.slane %v3925_v58, %v6235_v22  ;;  %v2222_v7 = vrot.slane %v6245_v6, %v6217_v16  ;;  %v2226_v23 = vrot.slane %v6245_v6, %v6220_v17 }
 0x45b   : > { %v3954_v27 = vrot.slane %v3926_v60, %v6235_v22  ;;  %v3955_v0 = vcombine.low %v3933_v33, %v3940_v2  ;;  %v2230_v63 = vrot.slane %v6245_v6, %v6223_v18  ;;  %v2234_v32 = vrot.slane %v6245_v6, %v6226_v19 }
 0x45c   : > { %v3285_v4 = vcombine.low %v3277_v57, %v3284_v62  ;;  %v2238_v8 = vrot.slane %v6245_v6, %v6229_v20  ;;  %v2242_v9 = vrot.slane %v6245_v6, %v6232_v21  ;;  %v3286_v10 = vcombine.low %v2214_v59, %v2218_v44 }
 0x45d   : > { %v3956_v11 = vcombine.low %v3947_v1, %v3954_v27  ;;  %v3963_v12 = vrot.slane %v3955_v0, %v6235_v22  ;;  %v3287_v13 = vcombine.low %v2222_v7, %v2226_v23  ;;  %v3288_v14 = vcombine.low %v2230_v63, %v2234_v32  ;;  %v2040_v7 = vpop.xlane.xlu1 %2039 }
 0x45e   : > { %4714 = vperm.xlu0 %5409, %v3285_v4   ;;  %v3289_v24 = vcombine.low %v2238_v8, %v2242_v9  ;;  %v3296_v56 = vrot.slane %v3286_v10, %v6235_v22  ;;  %v2694_v58 = vrot.slane %v6290_v46, %v5949_v3  ;;  %v2698_v57 = vrot.slane %v6290_v46, %v5946_v28 }
 0x45f   : > { %v3970_v60 = vrot.slane %v3956_v11, %v6235_v22  ;;  %v3303_v6 = vrot.slane %v3287_v13, %v6235_v22  ;;  %v3310_v59 = vrot.slane %v3288_v14, %v6235_v22  ;;  %v2702_v33 = vrot.slane %v6290_v46, %v6217_v16 }
 0x460   : > { %v3317_v2 = vrot.slane %v3289_v24, %v6235_v22  ;;  %v2706_v44 = vrot.slane %v6290_v46, %v6220_v17  ;;  %v2710_v62 = vrot.slane %v6290_v46, %v6223_v18  ;;  %v2714_v1 = vrot.slane %v6290_v46, %v6226_v19 }
 0x461   : > { %v3971_v23 = vcombine.low %v3963_v12, %v3970_v60  ;;  %v3318_v27 = vcombine.low %v3296_v56, %v3303_v6  ;;  %v2718_v0 = vrot.slane %v6290_v46, %v6229_v20  ;;  %v2722_v63 = vrot.slane %v6290_v46, %v6232_v21 }
 0x462   : > { %v3319_v32 = vcombine.low %v3310_v59, %v3317_v2  ;;  %v4021_v4 = vcombine.low %v2694_v58, %v2698_v57  ;;  %v4022_v8 = vcombine.low %v2702_v33, %v2706_v44  ;;  %v4023_v9 = vcombine.low %v2710_v62, %v2714_v1 }
 0x463   : > { %4756 = vperm.xlu1 %5410, %v3971_v23   ;;  %v3326_v10 = vrot.slane %v3318_v27, %v6235_v22  ;;  %v4024_v11 = vcombine.low %v2718_v0, %v2722_v63  ;;  %v6446_v13 = vadd.f32 %v6214_v15, %v2040_v7  ;;  %v2246_v12 = vrot.slane %v6248_v29, %v5949_v3 }
 0x464   : > { %v3333_v14 = vrot.slane %v3319_v32, %v6235_v22  ;;  %v4031_v24 = vrot.slane %v4021_v4, %v6235_v22  ;;  %v4038_v46 = vrot.slane %v4022_v8, %v6235_v22  ;;  %v4045_v56 = vrot.slane %v4023_v9, %v6235_v22 }
 0x465   : > { %v4052_v58 = vrot.slane %v4024_v11, %v6235_v22  ;;  %v2250_v57 = vrot.slane %v6248_v29, %v5946_v28  ;;  %v2254_v15 = vrot.slane %v6248_v29, %v6217_v16  ;;  %v2258_v60 = vrot.slane %v6248_v29, %v6220_v17 }
 0x466   : > { %v3334_v6 = vcombine.low %v3326_v10, %v3333_v14  ;;  %v4053_v59 = vcombine.low %v4031_v24, %v4038_v46  ;;  %v2262_v33 = vrot.slane %v6248_v29, %v6223_v18  ;;  %v2266_v2 = vrot.slane %v6248_v29, %v6226_v19 }
 0x467   : > { %v4054_v44 = vcombine.low %v4045_v56, %v4052_v58  ;;  %v2270_v62 = vrot.slane %v6248_v29, %v6229_v20  ;;  %v2274_v1 = vrot.slane %v6248_v29, %v6232_v21  ;;  %v3335_v7 = vcombine.low %v2246_v12, %v2250_v57 }
 0x468   : > { %4717 = vperm.xlu0 %5409, %v3334_v6   ;;  %v4061_v23 = vrot.slane %v4053_v59, %v6235_v22  ;;  %v3336_v27 = vcombine.low %v2254_v15, %v2258_v60  ;;  %v3337_v0 = vcombine.low %v2262_v33, %v2266_v2  ;;  %v2726_v63 = vrot.slane %v6293_v47, %v5949_v3 }
 0x469   : > { %v4068_v32 = vrot.slane %v4054_v44, %v6235_v22  ;;  %v3338_v4 = vcombine.low %v2270_v62, %v2274_v1  ;;  %v3345_v8 = vrot.slane %v3335_v7, %v6235_v22  ;;  %v2730_v9 = vrot.slane %v6293_v47, %v5946_v28 }
 0x46a   : > { %v3352_v10 = vrot.slane %v3336_v27, %v6235_v22  ;;  %v3359_v29 = vrot.slane %v3337_v0, %v6235_v22  ;;  %v2734_v11 = vrot.slane %v6293_v47, %v6217_v16  ;;  %v2738_v12 = vrot.slane %v6293_v47, %v6220_v17 }
 0x46b   : > { %v4069_v14 = vcombine.low %v4061_v23, %v4068_v32  ;;  %v3366_v24 = vrot.slane %v3338_v4, %v6235_v22  ;;  %v2742_v46 = vrot.slane %v6293_v47, %v6223_v18  ;;  %v2746_v56 = vrot.slane %v6293_v47, %v6226_v19 }
 0x46c   : > { %v3367_v58 = vcombine.low %v3345_v8, %v3352_v10  ;;  %v2750_v57 = vrot.slane %v6293_v47, %v6229_v20  ;;  %v2754_v15 = vrot.slane %v6293_v47, %v6232_v21  ;;  %v4070_v60 = vcombine.low %v2726_v63, %v2730_v9 }
 0x46d   : > { %4762 = vperm.xlu1 %5410, %v4069_v14   ;;  %v3368_v6 = vcombine.low %v3359_v29, %v3366_v24  ;;  %v4071_v59 = vcombine.low %v2734_v11, %v2738_v12  ;;  %v4072_v33 = vcombine.low %v2742_v46, %v2746_v56  ;;  %v2278_v2 = vrot.slane %v6251_v30, %v5949_v3 }
 0x46e   : > { %v3375_v44 = vrot.slane %v3367_v58, %v6235_v22  ;;  %v4073_v62 = vcombine.low %v2750_v57, %v2754_v15  ;;  %v4080_v1 = vrot.slane %v4070_v60, %v6235_v22  ;;  %v2282_v7 = vrot.slane %v6251_v30, %v5946_v28 }
 0x46f   : > { %v3382_v23 = vrot.slane %v3368_v6, %v6235_v22  ;;  %v4087_v47 = vrot.slane %v4071_v59, %v6235_v22  ;;  %v4094_v27 = vrot.slane %v4072_v33, %v6235_v22  ;;  %v2286_v0 = vrot.slane %v6251_v30, %v6217_v16 }
 0x470   : > { %v4101_v63 = vrot.slane %v4073_v62, %v6235_v22  ;;  %v2290_v32 = vrot.slane %v6251_v30, %v6220_v17  ;;  %v2294_v4 = vrot.slane %v6251_v30, %v6223_v18  ;;  %v2298_v8 = vrot.slane %v6251_v30, %v6226_v19 }
 0x471   : > { %v3383_v9 = vcombine.low %v3375_v44, %v3382_v23  ;;  %v4102_v10 = vcombine.low %v4080_v1, %v4087_v47  ;;  %v2302_v29 = vrot.slane %v6251_v30, %v6229_v20  ;;  %v2306_v11 = vrot.slane %v6251_v30, %v6232_v21 }
 0x472   : > { %v4103_v12 = vcombine.low %v4094_v27, %v4101_v63  ;;  %v3384_v14 = vcombine.low %v2278_v2, %v2282_v7  ;;  %v3385_v24 = vcombine.low %v2286_v0, %v2290_v32  ;;  %v3386_v46 = vcombine.low %v2294_v4, %v2298_v8 }
 0x473   : > { %4720 = vperm.xlu0 %5409, %v3383_v9   ;;  %v4110_v56 = vrot.slane %v4102_v10, %v6235_v22  ;;  %v3387_v58 = vcombine.low %v2302_v29, %v2306_v11  ;;  %v2758_v57 = vrot.slane %v6296_v48, %v5949_v3  ;;  %v2762_v15 = vrot.slane %v6296_v48, %v5946_v28 }
 0x474   : > { %v4117_v60 = vrot.slane %v4103_v12, %v6235_v22  ;;  %v3394_v6 = vrot.slane %v3384_v14, %v6235_v22  ;;  %v3401_v30 = vrot.slane %v3385_v24, %v6235_v22  ;;  %v3408_v59 = vrot.slane %v3386_v46, %v6235_v22 }
 0x475   : > { %v3415_v33 = vrot.slane %v3387_v58, %v6235_v22  ;;  %v2766_v2 = vrot.slane %v6296_v48, %v6217_v16  ;;  %v2770_v44 = vrot.slane %v6296_v48, %v6220_v17  ;;  %v2774_v62 = vrot.slane %v6296_v48, %v6223_v18 }
 0x476   : > { %v4118_v1 = vcombine.low %v4110_v56, %v4117_v60  ;;  %v3416_v7 = vcombine.low %v3394_v6, %v3401_v30  ;;  %v2778_v23 = vrot.slane %v6296_v48, %v6226_v19  ;;  %v2782_v47 = vrot.slane %v6296_v48, %v6229_v20 }
 0x477   : > { %v3417_v27 = vcombine.low %v3408_v59, %v3415_v33  ;;  %v2786_v0 = vrot.slane %v6296_v48, %v6232_v21  ;;  %v4119_v63 = vcombine.low %v2758_v57, %v2762_v15  ;;  %v4120_v32 = vcombine.low %v2766_v2, %v2770_v44 }
 0x478   : > { %4765 = vperm.xlu1 %5410, %v4118_v1   ;;  %v3424_v4 = vrot.slane %v3416_v7, %v6235_v22  ;;  %v4121_v8 = vcombine.low %v2774_v62, %v2778_v23  ;;  %v2310_v9 = vrot.slane %v6254_v40, %v5949_v3  ;;  %v2314_v10 = vrot.slane %v6254_v40, %v5946_v28 }
 0x479   : > { %v3431_v29 = vrot.slane %v3417_v27, %v6235_v22  ;;  %v4122_v11 = vcombine.low %v2782_v47, %v2786_v0  ;;  %v4129_v12 = vrot.slane %v4119_v63, %v6235_v22  ;;  %v4136_v14 = vrot.slane %v4120_v32, %v6235_v22 }
 0x47a   : > { %v4143_v48 = vrot.slane %v4121_v8, %v6235_v22  ;;  %v2318_v24 = vrot.slane %v6254_v40, %v6217_v16  ;;  %v2322_v46 = vrot.slane %v6254_v40, %v6220_v17  ;;  %v2326_v56 = vrot.slane %v6254_v40, %v6223_v18 }
 0x47b   : > { %v3432_v58 = vcombine.low %v3424_v4, %v3431_v29  ;;  %v4150_v57 = vrot.slane %v4122_v11, %v6235_v22  ;;  %v4151_v15 = vcombine.low %v4129_v12, %v4136_v14  ;;  %v2330_v60 = vrot.slane %v6254_v40, %v6226_v19 }
 0x47c   : > { %v2334_v6 = vrot.slane %v6254_v40, %v6229_v20  ;;  %v2338_v30 = vrot.slane %v6254_v40, %v6232_v21  ;;  %v3433_v59 = vcombine.low %v2310_v9, %v2314_v10  ;;  %v3434_v33 = vcombine.low %v2318_v24, %v2322_v46 }
 0x47d   : > { %4723 = vperm.xlu0 %5409, %v3432_v58   ;;  %v4152_v2 = vcombine.low %v4143_v48, %v4150_v57  ;;  %v4159_v44 = vrot.slane %v4151_v15, %v6235_v22  ;;  %v3435_v62 = vcombine.low %v2326_v56, %v2330_v60  ;;  %v2790_v1 = vrot.slane %v6299_v49, %v5949_v3 }
 0x47e   : > { %v3436_v7 = vcombine.low %v2334_v6, %v2338_v30  ;;  %v3443_v23 = vrot.slane %v3433_v59, %v6235_v22  ;;  %v3450_v47 = vrot.slane %v3434_v33, %v6235_v22  ;;  %v2794_v27 = vrot.slane %v6299_v49, %v5946_v28 }
 0x47f   : > { %v4166_v40 = vrot.slane %v4152_v2, %v6235_v22  ;;  %v3457_v0 = vrot.slane %v3435_v62, %v6235_v22  ;;  %v2798_v63 = vrot.slane %v6299_v49, %v6217_v16  ;;  %v2802_v32 = vrot.slane %v6299_v49, %v6220_v17 }
 0x480   : > { %v3464_v4 = vrot.slane %v3436_v7, %v6235_v22  ;;  %v3465_v8 = vcombine.low %v3443_v23, %v3450_v47  ;;  %v2806_v9 = vrot.slane %v6299_v49, %v6223_v18  ;;  %v2810_v10 = vrot.slane %v6299_v49, %v6226_v19 }
 0x481   : > { %v4167_v29 = vcombine.low %v4159_v44, %v4166_v40  ;;  %v2814_v11 = vrot.slane %v6299_v49, %v6229_v20  ;;  %v2818_v12 = vrot.slane %v6299_v49, %v6232_v21  ;;  %v4168_v14 = vcombine.low %v2790_v1, %v2794_v27 }
 0x482   : > { %v3466_v48 = vcombine.low %v3457_v0, %v3464_v4  ;;  %v3473_v24 = vrot.slane %v3465_v8, %v6235_v22  ;;  %v4169_v46 = vcombine.low %v2798_v63, %v2802_v32  ;;  %v4170_v56 = vcombine.low %v2806_v9, %v2810_v10 }
 0x483   : > { %4768 = vperm.xlu1 %5410, %v4167_v29   ;;  %v4171_v58 = vcombine.low %v2814_v11, %v2818_v12  ;;  %v4178_v57 = vrot.slane %v4168_v14, %v6235_v22  ;;  %v2342_v15 = vrot.slane %v6257_v34, %v5949_v3  ;;  %v2346_v60 = vrot.slane %v6257_v34, %v5946_v28 }
 0x484   : > { %v3480_v6 = vrot.slane %v3466_v48, %v6235_v22  ;;  %v4185_v49 = vrot.slane %v4169_v46, %v6235_v22  ;;  %v4192_v30 = vrot.slane %v4170_v56, %v6235_v22  ;;  %v2350_v59 = vrot.slane %v6257_v34, %v6217_v16 }
 0x485   : > { %v4199_v33 = vrot.slane %v4171_v58, %v6235_v22  ;;  %v2354_v2 = vrot.slane %v6257_v34, %v6220_v17  ;;  %v2358_v44 = vrot.slane %v6257_v34, %v6223_v18  ;;  %v2362_v62 = vrot.slane %v6257_v34, %v6226_v19 }
 0x486   : > { %v3481_v1 = vcombine.low %v3473_v24, %v3480_v6  ;;  %v4200_v7 = vcombine.low %v4178_v57, %v4185_v49  ;;  %v2366_v23 = vrot.slane %v6257_v34, %v6229_v20  ;;  %v2370_v47 = vrot.slane %v6257_v34, %v6232_v21 }
 0x487   : > { %v4201_v27 = vcombine.low %v4192_v30, %v4199_v33  ;;  %v3482_v40 = vcombine.low %v2342_v15, %v2346_v60  ;;  %v3483_v0 = vcombine.low %v2350_v59, %v2354_v2  ;;  %v3484_v63 = vcombine.low %v2358_v44, %v2362_v62 }
 0x488   : > { %4726 = vperm.xlu0 %5409, %v3481_v1   ;;  %v4208_v32 = vrot.slane %v4200_v7, %v6235_v22  ;;  %v3485_v4 = vcombine.low %v2366_v23, %v2370_v47  ;;  %v2822_v8 = vrot.slane %v6302_v50, %v5949_v3  ;;  %v2826_v9 = vrot.slane %v6302_v50, %v5946_v28 }
 0x489   : > { %v4215_v10 = vrot.slane %v4201_v27, %v6235_v22  ;;  %v3492_v29 = vrot.slane %v3482_v40, %v6235_v22  ;;  %v3499_v34 = vrot.slane %v3483_v0, %v6235_v22  ;;  %v3506_v11 = vrot.slane %v3484_v63, %v6235_v22 }
 0x48a   : > { %v3513_v12 = vrot.slane %v3485_v4, %v6235_v22  ;;  %v2830_v14 = vrot.slane %v6302_v50, %v6217_v16  ;;  %v2834_v48 = vrot.slane %v6302_v50, %v6220_v17  ;;  %v2838_v24 = vrot.slane %v6302_v50, %v6223_v18 }
 0x48b   : > { %v4216_v46 = vcombine.low %v4208_v32, %v4215_v10  ;;  %v3514_v56 = vcombine.low %v3492_v29, %v3499_v34  ;;  %v2842_v58 = vrot.slane %v6302_v50, %v6226_v19  ;;  %v2846_v57 = vrot.slane %v6302_v50, %v6229_v20 }
 0x48c   : > { %v3515_v15 = vcombine.low %v3506_v11, %v3513_v12  ;;  %v2850_v60 = vrot.slane %v6302_v50, %v6232_v21  ;;  %v4217_v6 = vcombine.low %v2822_v8, %v2826_v9  ;;  %v4218_v49 = vcombine.low %v2830_v14, %v2834_v48 }
 0x48d   : > { %4771 = vperm.xlu1 %5410, %v4216_v46   ;;  %v3522_v30 = vrot.slane %v3514_v56, %v6235_v22  ;;  %v4219_v59 = vcombine.low %v2838_v24, %v2842_v58  ;;  %v2374_v33 = vrot.slane %v6260_v36, %v5949_v3  ;;  %v2378_v2 = vrot.slane %v6260_v36, %v5946_v28 }
 0x48e   : > { %v3529_v44 = vrot.slane %v3515_v15, %v6235_v22  ;;  %v4220_v62 = vcombine.low %v2846_v57, %v2850_v60  ;;  %v4227_v1 = vrot.slane %v4217_v6, %v6235_v22  ;;  %v4234_v7 = vrot.slane %v4218_v49, %v6235_v22 }
 0x48f   : > { %v4241_v50 = vrot.slane %v4219_v59, %v6235_v22  ;;  %v2382_v23 = vrot.slane %v6260_v36, %v6217_v16  ;;  %v2386_v47 = vrot.slane %v6260_v36, %v6220_v17  ;;  %v2390_v27 = vrot.slane %v6260_v36, %v6223_v18 }
 0x490   : > { %v3530_v40 = vcombine.low %v3522_v30, %v3529_v44  ;;  %v4248_v0 = vrot.slane %v4220_v62, %v6235_v22  ;;  %v4249_v63 = vcombine.low %v4227_v1, %v4234_v7  ;;  %v2394_v32 = vrot.slane %v6260_v36, %v6226_v19 }
 0x491   : > { %v2398_v4 = vrot.slane %v6260_v36, %v6229_v20  ;;  %v2402_v8 = vrot.slane %v6260_v36, %v6232_v21  ;;  %v3531_v9 = vcombine.low %v2374_v33, %v2378_v2  ;;  %v3532_v10 = vcombine.low %v2382_v23, %v2386_v47 }
 0x492   : > { %4729 = vperm.xlu0 %5409, %v3530_v40   ;;  %v4250_v29 = vcombine.low %v4241_v50, %v4248_v0  ;;  %v4257_v34 = vrot.slane %v4249_v63, %v6235_v22  ;;  %v3533_v11 = vcombine.low %v2390_v27, %v2394_v32  ;;  %v2854_v12 = vrot.slane %v6305_v51, %v5949_v3 }
 0x493   : > { %v3534_v14 = vcombine.low %v2398_v4, %v2402_v8  ;;  %v3541_v48 = vrot.slane %v3531_v9, %v6235_v22  ;;  %v3548_v24 = vrot.slane %v3532_v10, %v6235_v22  ;;  %v2858_v46 = vrot.slane %v6305_v51, %v5946_v28 }
 0x494   : > { %v4264_v36 = vrot.slane %v4250_v29, %v6235_v22  ;;  %v3555_v56 = vrot.slane %v3533_v11, %v6235_v22  ;;  %v2862_v58 = vrot.slane %v6305_v51, %v6217_v16  ;;  %v2866_v57 = vrot.slane %v6305_v51, %v6220_v17 }
 0x495   : > { %v3562_v15 = vrot.slane %v3534_v14, %v6235_v22  ;;  %v3563_v60 = vcombine.low %v3541_v48, %v3548_v24  ;;  %v2870_v6 = vrot.slane %v6305_v51, %v6223_v18  ;;  %v2874_v49 = vrot.slane %v6305_v51, %v6226_v19 }
 0x496   : > { %v4265_v30 = vcombine.low %v4257_v34, %v4264_v36  ;;  %v2878_v59 = vrot.slane %v6305_v51, %v6229_v20  ;;  %v2882_v33 = vrot.slane %v6305_v51, %v6232_v21  ;;  %v4266_v2 = vcombine.low %v2854_v12, %v2858_v46 }
 0x497   : > { %v3564_v44 = vcombine.low %v3555_v56, %v3562_v15  ;;  %v3571_v62 = vrot.slane %v3563_v60, %v6235_v22  ;;  %v4267_v1 = vcombine.low %v2862_v58, %v2866_v57  ;;  %v4268_v7 = vcombine.low %v2870_v6, %v2874_v49 }
 0x498   : > { %4774 = vperm.xlu1 %5410, %v4265_v30   ;;  %v4269_v50 = vcombine.low %v2878_v59, %v2882_v33  ;;  %v4276_v23 = vrot.slane %v4266_v2, %v6235_v22  ;;  %v2406_v47 = vrot.slane %v6263_v37, %v5949_v3  ;;  %v2410_v27 = vrot.slane %v6263_v37, %v5946_v28 }
 0x499   : > { %v3578_v40 = vrot.slane %v3564_v44, %v6235_v22  ;;  %v4283_v51 = vrot.slane %v4267_v1, %v6235_v22  ;;  %v4290_v0 = vrot.slane %v4268_v7, %v6235_v22  ;;  %v2414_v63 = vrot.slane %v6263_v37, %v6217_v16 }
 0x49a   : > { %v4297_v32 = vrot.slane %v4269_v50, %v6235_v22  ;;  %v2418_v4 = vrot.slane %v6263_v37, %v6220_v17  ;;  %v2422_v8 = vrot.slane %v6263_v37, %v6223_v18  ;;  %v2426_v9 = vrot.slane %v6263_v37, %v6226_v19 }
 0x49b   : > { %v3579_v10 = vcombine.low %v3571_v62, %v3578_v40  ;;  %v4298_v29 = vcombine.low %v4276_v23, %v4283_v51  ;;  %v2430_v34 = vrot.slane %v6263_v37, %v6229_v20  ;;  %v2434_v11 = vrot.slane %v6263_v37, %v6232_v21 }
 0x49c   : > { %v4299_v12 = vcombine.low %v4290_v0, %v4297_v32  ;;  %v3580_v14 = vcombine.low %v2406_v47, %v2410_v27  ;;  %v3581_v48 = vcombine.low %v2414_v63, %v2418_v4  ;;  %v3582_v24 = vcombine.low %v2422_v8, %v2426_v9 }
 0x49d   : > { %4732 = vperm.xlu0 %5409, %v3579_v10   ;;  %v4306_v46 = vrot.slane %v4298_v29, %v6235_v22  ;;  %v3583_v36 = vcombine.low %v2430_v34, %v2434_v11  ;;  %v2886_v56 = vrot.slane %v6308_v53, %v5949_v3  ;;  %v2890_v58 = vrot.slane %v6308_v53, %v5946_v28 }
 0x49e   : > { %v4313_v57 = vrot.slane %v4299_v12, %v6235_v22  ;;  %v3590_v15 = vrot.slane %v3580_v14, %v6235_v22  ;;  %v3597_v37 = vrot.slane %v3581_v48, %v6235_v22  ;;  %v3604_v60 = vrot.slane %v3582_v24, %v6235_v22 }
 0x49f   : > { %v3611_v6 = vrot.slane %v3583_v36, %v6235_v22  ;;  %v2894_v49 = vrot.slane %v6308_v53, %v6217_v16  ;;  %v2898_v30 = vrot.slane %v6308_v53, %v6220_v17  ;;  %v2902_v59 = vrot.slane %v6308_v53, %v6223_v18 }
 0x4a0   : > { %v4314_v33 = vcombine.low %v4306_v46, %v4313_v57  ;;  %v3612_v2 = vcombine.low %v3590_v15, %v3597_v37  ;;  %v2906_v44 = vrot.slane %v6308_v53, %v6226_v19  ;;  %v2910_v62 = vrot.slane %v6308_v53, %v6229_v20 }
 0x4a1   : > { %v3613_v1 = vcombine.low %v3604_v60, %v3611_v6  ;;  %v2914_v7 = vrot.slane %v6308_v53, %v6232_v21  ;;  %v4315_v50 = vcombine.low %v2886_v56, %v2890_v58  ;;  %v4316_v23 = vcombine.low %v2894_v49, %v2898_v30 }
 0x4a2   : > { %4777 = vperm.xlu1 %5410, %v4314_v33   ;;  %v3620_v47 = vrot.slane %v3612_v2, %v6235_v22  ;;  %v4317_v27 = vcombine.low %v2902_v59, %v2906_v44  ;;  %v2438_v40 = vrot.slane %v6266_v38, %v5949_v3  ;;  %v2442_v51 = vrot.slane %v6266_v38, %v5946_v28 }
 0x4a3   : > { %v3627_v0 = vrot.slane %v3613_v1, %v6235_v22  ;;  %v4318_v63 = vcombine.low %v2910_v62, %v2914_v7  ;;  %v4325_v32 = vrot.slane %v4315_v50, %v6235_v22  ;;  %v4332_v4 = vrot.slane %v4316_v23, %v6235_v22 }
 0x4a4   : > { %v4339_v53 = vrot.slane %v4317_v27, %v6235_v22  ;;  %v2446_v8 = vrot.slane %v6266_v38, %v6217_v16  ;;  %v2450_v9 = vrot.slane %v6266_v38, %v6220_v17  ;;  %v2454_v10 = vrot.slane %v6266_v38, %v6223_v18 }
 0x4a5   : > { %v3628_v29 = vcombine.low %v3620_v47, %v3627_v0  ;;  %v4346_v34 = vrot.slane %v4318_v63, %v6235_v22  ;;  %v4347_v11 = vcombine.low %v4325_v32, %v4332_v4  ;;  %v2458_v12 = vrot.slane %v6266_v38, %v6226_v19 }
 0x4a6   : > { %v2462_v14 = vrot.slane %v6266_v38, %v6229_v20  ;;  %v2466_v48 = vrot.slane %v6266_v38, %v6232_v21  ;;  %v3629_v24 = vcombine.low %v2438_v40, %v2442_v51  ;;  %v3630_v46 = vcombine.low %v2446_v8, %v2450_v9 }
 0x4a7   : > { %4735 = vperm.xlu0 %5409, %v3628_v29   ;;  %v4348_v36 = vcombine.low %v4339_v53, %v4346_v34  ;;  %v4355_v56 = vrot.slane %v4347_v11, %v6235_v22  ;;  %v3631_v58 = vcombine.low %v2454_v10, %v2458_v12  ;;  %v2918_v57 = vrot.slane %v6311_v54, %v5949_v3 }
 0x4a8   : > { %v3632_v15 = vcombine.low %v2462_v14, %v2466_v48  ;;  %v3639_v37 = vrot.slane %v3629_v24, %v6235_v22  ;;  %v3646_v60 = vrot.slane %v3630_v46, %v6235_v22  ;;  %v2922_v6 = vrot.slane %v6311_v54, %v5946_v28 }
 0x4a9   : > { %v4362_v38 = vrot.slane %v4348_v36, %v6235_v22  ;;  %v3653_v49 = vrot.slane %v3631_v58, %v6235_v22  ;;  %v2926_v30 = vrot.slane %v6311_v54, %v6217_v16  ;;  %v2930_v59 = vrot.slane %v6311_v54, %v6220_v17 }
 0x4aa   : > { %v3660_v33 = vrot.slane %v3632_v15, %v6235_v22  ;;  %v3661_v2 = vcombine.low %v3639_v37, %v3646_v60  ;;  %v2934_v44 = vrot.slane %v6311_v54, %v6223_v18  ;;  %v2938_v62 = vrot.slane %v6311_v54, %v6226_v19 }
 0x4ab   : > { %v4363_v1 = vcombine.low %v4355_v56, %v4362_v38  ;;  %v2942_v7 = vrot.slane %v6311_v54, %v6229_v20  ;;  %v2946_v50 = vrot.slane %v6311_v54, %v6232_v21  ;;  %v4364_v23 = vcombine.low %v2918_v57, %v2922_v6 }
 0x4ac   : > { %v3662_v47 = vcombine.low %v3653_v49, %v3660_v33  ;;  %v3669_v27 = vrot.slane %v3661_v2, %v6235_v22  ;;  %v4365_v40 = vcombine.low %v2926_v30, %v2930_v59  ;;  %v4366_v51 = vcombine.low %v2934_v44, %v2938_v62 }
 0x4ad   : > { %4780 = vperm.xlu1 %5410, %v4363_v1   ;;  %v4367_v0 = vcombine.low %v2942_v7, %v2946_v50  ;;  %v4374_v63 = vrot.slane %v4364_v23, %v6235_v22  ;;  %v2470_v32 = vrot.slane %v6269_v39, %v5949_v3  ;;  %v2474_v4 = vrot.slane %v6269_v39, %v5946_v28 }
 0x4ae   : > { %v3676_v53 = vrot.slane %v3662_v47, %v6235_v22  ;;  %v4381_v54 = vrot.slane %v4365_v40, %v6235_v22  ;;  %v4388_v8 = vrot.slane %v4366_v51, %v6235_v22  ;;  %v2478_v9 = vrot.slane %v6269_v39, %v6217_v16 }
 0x4af   : > { %v4395_v10 = vrot.slane %v4367_v0, %v6235_v22  ;;  %v2482_v29 = vrot.slane %v6269_v39, %v6220_v17  ;;  %v2486_v34 = vrot.slane %v6269_v39, %v6223_v18  ;;  %v2490_v11 = vrot.slane %v6269_v39, %v6226_v19 }
 0x4b0   : > { %v3677_v12 = vcombine.low %v3669_v27, %v3676_v53  ;;  %v4396_v14 = vcombine.low %v4374_v63, %v4381_v54  ;;  %v2494_v48 = vrot.slane %v6269_v39, %v6229_v20  ;;  %v2498_v24 = vrot.slane %v6269_v39, %v6232_v21 }
 0x4b1   : > { %v4397_v46 = vcombine.low %v4388_v8, %v4395_v10  ;;  %v3678_v36 = vcombine.low %v2470_v32, %v2474_v4  ;;  %v3679_v56 = vcombine.low %v2478_v9, %v2482_v29  ;;  %v3680_v58 = vcombine.low %v2486_v34, %v2490_v11 }
 0x4b2   : > { %4738 = vperm.xlu0 %5409, %v3677_v12   ;;  %v4404_v57 = vrot.slane %v4396_v14, %v6235_v22  ;;  %v3681_v15 = vcombine.low %v2494_v48, %v2498_v24  ;;  %v2950_v37 = vrot.slane %v6314_v55, %v5949_v3  ;;  %v2954_v60 = vrot.slane %v6314_v55, %v5946_v28 }
 0x4b3   : > { %v4411_v6 = vrot.slane %v4397_v46, %v6235_v22  ;;  %v3688_v38 = vrot.slane %v3678_v36, %v6235_v22  ;;  %v3695_v39 = vrot.slane %v3679_v56, %v6235_v22  ;;  %v3702_v49 = vrot.slane %v3680_v58, %v6235_v22 }
 0x4b4   : > { %v3709_v30 = vrot.slane %v3681_v15, %v6235_v22  ;;  %v2958_v59 = vrot.slane %v6314_v55, %v6217_v16  ;;  %v2962_v33 = vrot.slane %v6314_v55, %v6220_v17  ;;  %v2966_v2 = vrot.slane %v6314_v55, %v6223_v18 }
 0x4b5   : > { %v4412_v44 = vcombine.low %v4404_v57, %v4411_v6  ;;  %v3710_v62 = vcombine.low %v3688_v38, %v3695_v39  ;;  %v2970_v1 = vrot.slane %v6314_v55, %v6226_v19  ;;  %v2974_v7 = vrot.slane %v6314_v55, %v6229_v20 }
 0x4b6   : > { %v3711_v50 = vcombine.low %v3702_v49, %v3709_v30  ;;  %v2978_v23 = vrot.slane %v6314_v55, %v6232_v21  ;;  %v4413_v47 = vcombine.low %v2950_v37, %v2954_v60  ;;  %v4414_v27 = vcombine.low %v2958_v59, %v2962_v33 }
 0x4b7   : > { %4783 = vperm.xlu1 %5410, %v4412_v44   ;;  %v3718_v40 = vrot.slane %v3710_v62, %v6235_v22  ;;  %v4415_v51 = vcombine.low %v2966_v2, %v2970_v1  ;;  %v2662_v0 = vrot.slane %v6287_v45, %v5949_v3  ;;  %v2666_v63 = vrot.slane %v6287_v45, %v5946_v28 }
 0x4b8   : > { %v3725_v32 = vrot.slane %v3711_v50, %v6235_v22  ;;  %v4416_v4 = vcombine.low %v2974_v7, %v2978_v23  ;;  %v4423_v53 = vrot.slane %v4413_v47, %v6235_v22  ;;  %v4430_v54 = vrot.slane %v4414_v27, %v6235_v22 }
 0x4b9   : > { %v4437_v55 = vrot.slane %v4415_v51, %v6235_v22  ;;  %v2670_v8 = vrot.slane %v6287_v45, %v6217_v16  ;;  %v2674_v9 = vrot.slane %v6287_v45, %v6220_v17  ;;  %v2678_v10 = vrot.slane %v6287_v45, %v6223_v18 }
 0x4ba   : > { %v3726_v29 = vcombine.low %v3718_v40, %v3725_v32  ;;  %v4444_v34 = vrot.slane %v4416_v4, %v6235_v22  ;;  %v4445_v11 = vcombine.low %v4423_v53, %v4430_v54  ;;  %v2682_v12 = vrot.slane %v6287_v45, %v6226_v19 }
 0x4bb   : > { %v2686_v14 = vrot.slane %v6287_v45, %v6229_v20  ;;  %v2690_v48 = vrot.slane %v6287_v45, %v6232_v21  ;;  %v3972_v24 = vcombine.low %v2662_v0, %v2666_v63  ;;  %v3973_v46 = vcombine.low %v2670_v8, %v2674_v9 }
 0x4bc   : > { %4741 = vperm.xlu0 %5409, %v3726_v29   ;;  %v4446_v36 = vcombine.low %v4437_v55, %v4444_v34  ;;  %v4453_v56 = vrot.slane %v4445_v11, %v6235_v22  ;;  %v3974_v58 = vcombine.low %v2678_v10, %v2682_v12  ;;  %v2982_v57 = vrot.slane %v6331_v5, %v5949_v3 }
 0x4bd   : > { %v3975_v15 = vcombine.low %v2686_v14, %v2690_v48  ;;  %v3982_v37 = vrot.slane %v3972_v24, %v6235_v22  ;;  %v3989_v60 = vrot.slane %v3973_v46, %v6235_v22  ;;  %v2986_v6 = vrot.slane %v6331_v5, %v5946_v28 }
 0x4be   : > { %v4460_v45 = vrot.slane %v4446_v36, %v6235_v22  ;;  %v3996_v38 = vrot.slane %v3974_v58, %v6235_v22  ;;  %v2990_v39 = vrot.slane %v6331_v5, %v6217_v16  ;;  %v2994_v49 = vrot.slane %v6331_v5, %v6220_v17 }
 0x4bf   : > { %v4003_v30 = vrot.slane %v3975_v15, %v6235_v22  ;;  %v4004_v59 = vcombine.low %v3982_v37, %v3989_v60  ;;  %v2998_v33 = vrot.slane %v6331_v5, %v6223_v18  ;;  %v3002_v2 = vrot.slane %v6331_v5, %v6226_v19 }
 0x4c0   : > { %v4461_v44 = vcombine.low %v4453_v56, %v4460_v45  ;;  %v3006_v62 = vrot.slane %v6331_v5, %v6229_v20  ;;  %v3010_v1 = vrot.slane %v6331_v5, %v6232_v21  ;;  %v4462_v7 = vcombine.low %v2982_v57, %v2986_v6 }
 0x4c1   : > { %v4005_v50 = vcombine.low %v3996_v38, %v4003_v30  ;;  %v4012_v23 = vrot.slane %v4004_v59, %v6235_v22  ;;  %v4463_v47 = vcombine.low %v2990_v39, %v2994_v49  ;;  %v4464_v27 = vcombine.low %v2998_v33, %v3002_v2 }
 0x4c2   : > { %4786 = vperm.xlu1 %5410, %v4461_v44   ;;  %v4465_v40 = vcombine.low %v3006_v62, %v3010_v1  ;;  %v4472_v51 = vrot.slane %v4462_v7, %v6235_v22  ;;  %v2502_v0 = vrot.slane %v6272_v41, %v5949_v3  ;;  %v2506_v63 = vrot.slane %v6272_v41, %v5946_v28 }
 0x4c3   : > { %v4019_v32 = vrot.slane %v4005_v50, %v6235_v22  ;;  %v4479_v5 = vrot.slane %v4463_v47, %v6235_v22  ;;  %v4486_v4 = vrot.slane %v4464_v27, %v6235_v22  ;;  %v2510_v53 = vrot.slane %v6272_v41, %v6217_v16 }
 0x4c4   : > { %v4493_v54 = vrot.slane %v4465_v40, %v6235_v22  ;;  %v2514_v55 = vrot.slane %v6272_v41, %v6220_v17  ;;  %v2518_v8 = vrot.slane %v6272_v41, %v6223_v18  ;;  %v2522_v9 = vrot.slane %v6272_v41, %v6226_v19 }
 0x4c5   : > { %v4020_v10 = vcombine.low %v4012_v23, %v4019_v32  ;;  %v4494_v29 = vcombine.low %v4472_v51, %v4479_v5  ;;  %v2526_v34 = vrot.slane %v6272_v41, %v6229_v20  ;;  %v2530_v11 = vrot.slane %v6272_v41, %v6232_v21 }
 0x4c6   : > { %v4495_v12 = vcombine.low %v4486_v4, %v4493_v54  ;;  %v3727_v14 = vcombine.low %v2502_v0, %v2506_v63  ;;  %v3728_v48 = vcombine.low %v2510_v53, %v2514_v55  ;;  %v3729_v24 = vcombine.low %v2518_v8, %v2522_v9 }
 0x4c7   : > { %4759 = vperm.xlu0 %5409, %v4020_v10   ;;  %v4502_v46 = vrot.slane %v4494_v29, %v6235_v22  ;;  %v3730_v36 = vcombine.low %v2526_v34, %v2530_v11  ;;  %v3014_v56 = vrot.slane %v6348_v61, %v5949_v3  ;;  %v3018_v58 = vrot.slane %v6348_v61, %v5946_v28 }
 0x4c8   : > { %v4509_v57 = vrot.slane %v4495_v12, %v6235_v22  ;;  %v3737_v15 = vrot.slane %v3727_v14, %v6235_v22  ;;  %v3744_v41 = vrot.slane %v3728_v48, %v6235_v22  ;;  %v3751_v37 = vrot.slane %v3729_v24, %v6235_v22 }
 0x4c9   : > { %v3758_v60 = vrot.slane %v3730_v36, %v6235_v22  ;;  %v3022_v6 = vrot.slane %v6348_v61, %v6217_v16  ;;  %v3026_v45 = vrot.slane %v6348_v61, %v6220_v17  ;;  %v3030_v38 = vrot.slane %v6348_v61, %v6223_v18 }
 0x4ca   : > { %v4510_v39 = vcombine.low %v4502_v46, %v4509_v57  ;;  %v3759_v49 = vcombine.low %v3737_v15, %v3744_v41  ;;  %v3034_v30 = vrot.slane %v6348_v61, %v6226_v19  ;;  %v3038_v59 = vrot.slane %v6348_v61, %v6229_v20 }
 0x4cb   : > { %v3760_v33 = vcombine.low %v3751_v37, %v3758_v60  ;;  %v3042_v2 = vrot.slane %v6348_v61, %v6232_v21  ;;  %v4511_v44 = vcombine.low %v3014_v56, %v3018_v58  ;;  %v4512_v62 = vcombine.low %v3022_v6, %v3026_v45 }
 0x4cc   : > { %4789 = vperm.xlu1 %5410, %v4510_v39   ;;  %v3767_v1 = vrot.slane %v3759_v49, %v6235_v22  ;;  %v4513_v7 = vcombine.low %v3030_v38, %v3034_v30  ;;  %v2534_v50 = vrot.slane %v6275_v42, %v5949_v3  ;;  %v2538_v23 = vrot.slane %v6275_v42, %v5946_v28 }
 0x4cd   : > { %v3774_v47 = vrot.slane %v3760_v33, %v6235_v22  ;;  %v4514_v27 = vcombine.low %v3038_v59, %v3042_v2  ;;  %v4521_v40 = vrot.slane %v4511_v44, %v6235_v22  ;;  %v4528_v51 = vrot.slane %v4512_v62, %v6235_v22 }
 0x4ce   : > { %v4535_v61 = vrot.slane %v4513_v7, %v6235_v22  ;;  %v2542_v0 = vrot.slane %v6275_v42, %v6217_v16  ;;  %v2546_v63 = vrot.slane %v6275_v42, %v6220_v17  ;;  %v2550_v32 = vrot.slane %v6275_v42, %v6223_v18 }
 0x4cf   : > { %v3775_v5 = vcombine.low %v3767_v1, %v3774_v47  ;;  %v4542_v4 = vrot.slane %v4514_v27, %v6235_v22  ;;  %v4543_v53 = vcombine.low %v4521_v40, %v4528_v51  ;;  %v2554_v54 = vrot.slane %v6275_v42, %v6226_v19 }
 0x4d0   : > { %v2558_v55 = vrot.slane %v6275_v42, %v6229_v20  ;;  %v2562_v8 = vrot.slane %v6275_v42, %v6232_v21  ;;  %v3776_v9 = vcombine.low %v2534_v50, %v2538_v23  ;;  %v3777_v10 = vcombine.low %v2542_v0, %v2546_v63 }
 0x4d1   : > { %4744 = vperm.xlu0 %5409, %v3775_v5   ;;  %v4544_v29 = vcombine.low %v4535_v61, %v4542_v4  ;;  %v4551_v34 = vrot.slane %v4543_v53, %v6235_v22  ;;  %v3778_v11 = vcombine.low %v2550_v32, %v2554_v54  ;;  %v3046_v12 = vrot.slane %v6369_v35, %v5949_v3 }
 0x4d2   : > { %v3779_v14 = vcombine.low %v2558_v55, %v2562_v8  ;;  %v3786_v48 = vrot.slane %v3776_v9, %v6235_v22  ;;  %v3793_v24 = vrot.slane %v3777_v10, %v6235_v22  ;;  %v3050_v46 = vrot.slane %v6369_v35, %v5946_v28 }
 0x4d3   : > { %v4558_v42 = vrot.slane %v4544_v29, %v6235_v22  ;;  %v3800_v36 = vrot.slane %v3778_v11, %v6235_v22  ;;  %v3054_v56 = vrot.slane %v6369_v35, %v6217_v16  ;;  %v3058_v58 = vrot.slane %v6369_v35, %v6220_v17 }
 0x4d4   : > { %v3807_v57 = vrot.slane %v3779_v14, %v6235_v22  ;;  %v3808_v15 = vcombine.low %v3786_v48, %v3793_v24  ;;  %v3062_v41 = vrot.slane %v6369_v35, %v6223_v18  ;;  %v3066_v37 = vrot.slane %v6369_v35, %v6226_v19 }
 0x4d5   : > { %v4559_v60 = vcombine.low %v4551_v34, %v4558_v42  ;;  %v3070_v6 = vrot.slane %v6369_v35, %v6229_v20  ;;  %v3074_v45 = vrot.slane %v6369_v35, %v6232_v21  ;;  %v4560_v38 = vcombine.low %v3046_v12, %v3050_v46 }
 0x4d6   : > { %v3809_v39 = vcombine.low %v3800_v36, %v3807_v57  ;;  %v3816_v49 = vrot.slane %v3808_v15, %v6235_v22  ;;  %v4561_v30 = vcombine.low %v3054_v56, %v3058_v58  ;;  %v4562_v59 = vcombine.low %v3062_v41, %v3066_v37 }
 0x4d7   : > { %4792 = vperm.xlu1 %5410, %v4559_v60   ;;  %v4563_v33 = vcombine.low %v3070_v6, %v3074_v45  ;;  %v4570_v2 = vrot.slane %v4560_v38, %v6235_v22  ;;  %v2566_v44 = vrot.slane %v6278_v31, %v5949_v3  ;;  %v2570_v62 = vrot.slane %v6278_v31, %v5946_v28 }
 0x4d8   : > { %v3823_v1 = vrot.slane %v3809_v39, %v6235_v22  ;;  %v4577_v35 = vrot.slane %v4561_v30, %v6235_v22  ;;  %v4584_v7 = vrot.slane %v4562_v59, %v6235_v22  ;;  %v2574_v50 = vrot.slane %v6278_v31, %v6217_v16 }
 0x4d9   : > { %v4591_v23 = vrot.slane %v4563_v33, %v6235_v22  ;;  %v2578_v47 = vrot.slane %v6278_v31, %v6220_v17  ;;  %v2582_v27 = vrot.slane %v6278_v31, %v6223_v18  ;;  %v2586_v40 = vrot.slane %v6278_v31, %v6226_v19 }
 0x4da   : > { %v3824_v51 = vcombine.low %v3816_v49, %v3823_v1  ;;  %v4592_v61 = vcombine.low %v4570_v2, %v4577_v35  ;;  %v2590_v0 = vrot.slane %v6278_v31, %v6229_v20  ;;  %v2594_v63 = vrot.slane %v6278_v31, %v6232_v21 }
 0x4db   : > { %v4593_v32 = vcombine.low %v4584_v7, %v4591_v23  ;;  %v3825_v5 = vcombine.low %v2566_v44, %v2570_v62  ;;  %v3826_v4 = vcombine.low %v2574_v50, %v2578_v47  ;;  %v3827_v53 = vcombine.low %v2582_v27, %v2586_v40 }
 0x4dc   : > { %4747 = vperm.xlu0 %5409, %v3824_v51   ;;  %v4600_v54 = vrot.slane %v4592_v61, %v6235_v22  ;;  %v3828_v55 = vcombine.low %v2590_v0, %v2594_v63  ;;  %v3078_v8 = vrot.slane %v6398_v52, %v5949_v3  ;;  %v3082_v9 = vrot.slane %v6398_v52, %v5946_v28 }
 0x4dd   : > { %v4607_v10 = vrot.slane %v4593_v32, %v6235_v22  ;;  %v3835_v29 = vrot.slane %v3825_v5, %v6235_v22  ;;  %v3842_v31 = vrot.slane %v3826_v4, %v6235_v22  ;;  %v3849_v34 = vrot.slane %v3827_v53, %v6235_v22 }
 0x4de   : > { %v3856_v11 = vrot.slane %v3828_v55, %v6235_v22  ;;  %v3086_v12 = vrot.slane %v6398_v52, %v6217_v16  ;;  %v3090_v14 = vrot.slane %v6398_v52, %v6220_v17  ;;  %v3094_v48 = vrot.slane %v6398_v52, %v6223_v18 }
 0x4df   : > { %v4608_v24 = vcombine.low %v4600_v54, %v4607_v10  ;;  %v3857_v46 = vcombine.low %v3835_v29, %v3842_v31  ;;  %v3098_v42 = vrot.slane %v6398_v52, %v6226_v19  ;;  %v3102_v36 = vrot.slane %v6398_v52, %v6229_v20 }
 0x4e0   : > { %v3858_v56 = vcombine.low %v3849_v34, %v3856_v11  ;;  %v3106_v58 = vrot.slane %v6398_v52, %v6232_v21  ;;  %v4609_v57 = vcombine.low %v3078_v8, %v3082_v9  ;;  %v4610_v15 = vcombine.low %v3086_v12, %v3090_v14 }
 0x4e1   : > { %4795 = vperm.xlu1 %5410, %v4608_v24   ;;  %v3865_v41 = vrot.slane %v3857_v46, %v6235_v22  ;;  %v4611_v37 = vcombine.low %v3094_v48, %v3098_v42  ;;  %v2598_v60 = vrot.slane %v6281_v43, %v5949_v3  ;;  %v2602_v6 = vrot.slane %v6281_v43, %v5946_v28 }
 0x4e2   : > { %v3872_v45 = vrot.slane %v3858_v56, %v6235_v22  ;;  %v4612_v38 = vcombine.low %v3102_v36, %v3106_v58  ;;  %v4619_v39 = vrot.slane %v4609_v57, %v6235_v22  ;;  %v4626_v49 = vrot.slane %v4610_v15, %v6235_v22  ;;  %v7027_v36 = vpop.permute.xlu0 %4711  ;;  %v7035_v15 = vpop.permute.xlu1 %4708 }
 0x4e3   : > { %v4633_v52 = vrot.slane %v4611_v37, %v6235_v22  ;;  %v2606_v30 = vrot.slane %v6281_v43, %v6217_v16  ;;  %v2610_v59 = vrot.slane %v6281_v43, %v6220_v17  ;;  %v2614_v33 = vrot.slane %v6281_v43, %v6223_v18 }
 0x4e4   : > { %v3873_v2 = vcombine.low %v3865_v41, %v3872_v45  ;;  %v4640_v44 = vrot.slane %v4612_v38, %v6235_v22  ;;  %v4641_v62 = vcombine.low %v4619_v39, %v4626_v49  ;;  %v2618_v1 = vrot.slane %v6281_v43, %v6226_v19 }
 0x4e5   : > { %v2622_v35 = vrot.slane %v6281_v43, %v6229_v20  ;;  %v2626_v7 = vrot.slane %v6281_v43, %v6232_v21  ;;  %v3874_v50 = vcombine.low %v2598_v60, %v2602_v6  ;;  %v3875_v23 = vcombine.low %v2606_v30, %v2610_v59 }
 0x4e6   : > { %4750 = vperm.xlu0 %5409, %v3873_v2   ;;  %v4642_v47 = vcombine.low %v4633_v52, %v4640_v44  ;;  %v4649_v27 = vrot.slane %v4641_v62, %v6235_v22  ;;  %v3876_v40 = vcombine.low %v2614_v33, %v2618_v1  ;;  %v3110_v51 = vrot.slane %v6446_v13, %v5949_v3  ;;  %v7029_v56 = vpop.permute.xlu0 %4714  ;;  %v4757_v37 = vpop.permute.xlu1 %4756 }
 0x4e7   : > { %v3877_v61 = vcombine.low %v2622_v35, %v2626_v7  ;;  %v3884_v0 = vrot.slane %v3874_v50, %v6235_v22  ;;  %v3891_v63 = vrot.slane %v3875_v23, %v6235_v22  ;;  %v3114_v32 = vrot.slane %v6446_v13, %v5946_v28 }
 0x4e8   : > { %v4656_v43 = vrot.slane %v4642_v47, %v6235_v22  ;;  %v3898_v5 = vrot.slane %v3876_v40, %v6235_v22  ;;  %v3118_v4 = vrot.slane %v6446_v13, %v6217_v16  ;;  %v3122_v53 = vrot.slane %v6446_v13, %v6220_v17 }
 0x4e9   : > { %v3905_v3 = vrot.slane %v3877_v61, %v6235_v22  ;;  %v3906_v54 = vcombine.low %v3884_v0, %v3891_v63  ;;  %v3126_v55 = vrot.slane %v6446_v13, %v6223_v18  ;;  %v3130_v8 = vrot.slane %v6446_v13, %v6226_v19 }
 0x4ea   : > { %v4657_v28 = vcombine.low %v4649_v27, %v4656_v43  ;;  %v3134_v9 = vrot.slane %v6446_v13, %v6229_v20  ;;  %v3138_v10 = vrot.slane %v6446_v13, %v6232_v21  ;;  %v4658_v16 = vcombine.low %v3110_v51, %v3114_v32  ;;  %v7031_v58 = vpop.permute.xlu0 %4717  ;;  %v4763_v6 = vpop.permute.xlu1 %4762 }
 0x4eb   : > { %v3907_v29 = vcombine.low %v3898_v5, %v3905_v3  ;;  %v3914_v17 = vrot.slane %v3906_v54, %v6235_v22  ;;  %v4659_v31 = vcombine.low %v3118_v4, %v3122_v53  ;;  %v4660_v34 = vcombine.low %v3126_v55, %v3130_v8 }
 0x4ec   : > { %4798 = vperm.xlu1 %5410, %v4657_v28   ;;  %v4661_v11 = vcombine.low %v3134_v9, %v3138_v10  ;;  %v4668_v18 = vrot.slane %v4658_v16, %v6235_v22  ;;  %v7050_v2 = vand.u32 127, %v738_v25 }
 0x4ed   : > { %v3921_v12 = vrot.slane %v3907_v29, %v6235_v22  ;;  %v4675_v19 = vrot.slane %v4659_v31, %v6235_v22  ;;  %v4682_v14 = vrot.slane %v4660_v34, %v6235_v22 }
 0x4ee   : > { %v4689_v20 = vrot.slane %v4661_v11, %v6235_v22  ;;  %v7033_v57 = vpop.permute.xlu0 %4720  ;;  %v4809_v1 = vadd.s32 4294967288, %v7050_v2  ;;  %v4816_v50 = vadd.s32 4294967280, %v7050_v2  ;;  %v4807_v47 = vsub.s32 %v7050_v2, %v5937_v26 }
 0x4ef   : > { %v3922_v48 = vcombine.low %v3914_v17, %v3921_v12  ;;  %v4690_v21 = vcombine.low %v4668_v18, %v4675_v19  ;;  %v4823_v51 = vadd.s32 4294967272, %v7050_v2  ;;  %v4830_v32 = vadd.s32 4294967264, %v7050_v2 }
 0x4f0   : > { %v4691_v13 = vcombine.low %v4682_v14, %v4689_v20  ;;  %v4812_v7 = vsub.s32 %v4809_v1, %v5937_v26  ;;  %v4917_v40 = vrot.slane %v4757_v37, %v4807_v47  ;;  %v4819_v61 = vsub.s32 %v4816_v50, %v5937_v26 }
 0x4f1   : > { %4753 = vperm.xlu0 %5409, %v3922_v48   ;;  %v4698_v24 = vrot.slane %v4690_v21, %v6235_v22  ;;  %v4826_v5 = vsub.s32 %v4823_v51, %v5937_v26  ;;  %v4837_v3 = vadd.s32 4294967256, %v7050_v2  ;;  %v4833_v54 = vsub.s32 %v4830_v32, %v5937_v26 }
 0x4f2   : > { %v4705_v46 = vrot.slane %v4691_v13, %v6235_v22  ;;  %v4926_v63 = vrot.slane %v4763_v6, %v4819_v61  ;;  %v4844_v28 = vadd.s32 4294967248, %v7050_v2  ;;  %v4851_v17 = vadd.s32 4294967240, %v7050_v2 }
 0x4f3   : > { %v4766_v38 = vpop.permute.xlu1 %4765  ;;  %v4840_v10 = vsub.s32 %v4837_v3, %v5937_v26  ;;  %v4858_v18 = vadd.s32 4294967232, %v7050_v2  ;;  %v4865_v21 = vadd.s32 4294967224, %v7050_v2  ;;  %v4872_v6 = vadd.s32 4294967216, %v7050_v2 }
 0x4f4   : > { %v4706_v42 = vcombine.low %v4698_v24, %v4705_v46  ;;  %v4931_v53 = vrot.slane %v4766_v38, %v4826_v5  ;;  %v4847_v31 = vsub.s32 %v4844_v28, %v5937_v26  ;;  %v4854_v19 = vsub.s32 %v4851_v17, %v5937_v26 }
 0x4f5   : > { %v4861_v13 = vsub.s32 %v4858_v18, %v5937_v26  ;;  %v4813_v24 = vrot.slane %v7027_v36, %v4812_v7  ;;  %v4808_v46 = vrot.slane %v7035_v15, %v4807_v47  ;;  %v4879_v15 = vadd.s32 4294967208, %v7050_v2 }
 0x4f6   : > { %4801 = vperm.xlu1 %5410, %v4706_v42   ;;  %v4875_v50 = vsub.s32 %v4872_v6, %v5937_v26 }
 0x4f7   : > { %v4815_v36 = vsel %vm4814_vm1, %v4813_v24, %v4808_v46  ;;  %v4882_v32 = vsub.s32 %v4879_v15, %v5937_v26 }
 0x4f8   : > { %v7037_v41 = vpop.permute.xlu0 %4723 }
 0x4f9   : > { %v4841_v47 = vrot.slane %v7037_v41, %v4840_v10  ;;  %v4907_v41 = vadd.s32 4294967176, %v7050_v2 }
 0x4fe   : > { %v4769_v49 = vpop.permute.xlu1 %4768 }
 0x4ff   : > { %v4936_v8 = vrot.slane %v4769_v49, %v4833_v54  ;;  %v4820_v49 = vrot.slane %v7029_v56, %v4819_v61  ;;  %v4886_v56 = vadd.s32 4294967200, %v7050_v2 }
 0x503   : > { %v7039_v60 = vpop.permute.xlu0 %4726 }
 0x504   : > { %v4848_v51 = vrot.slane %v7039_v60, %v4847_v31  ;;  %v4889_v60 = vsub.s32 %v4886_v56, %v5937_v26 }
 0x508   : > { %v4772_v30 = vpop.permute.xlu1 %4771 }
 0x509   : > { %v4941_v29 = vrot.slane %v4772_v30, %v4840_v10  ;;  %v4868_v30 = vsub.s32 %v4865_v21, %v5937_v26 }
 0x50d   : > { %v7041_v45 = vpop.permute.xlu0 %4729 }
 0x513   : > { %v4775_v33 = vpop.permute.xlu1 %4774 }
 0x514   : > { %v4946_v11 = vrot.slane %v4775_v33, %v4847_v31 }
 0x518   : > { %v7043_v39 = vpop.permute.xlu0 %4732 }
 0x51d   : > { %v4778_v62 = vpop.permute.xlu1 %4777 }
 0x51e   : > { %v4951_v48 = vrot.slane %v4778_v62, %v4854_v19  ;;  %v4827_v62 = vrot.slane %v7031_v58, %v4826_v5 }
 0x522   : > { %v7045_v52 = vpop.permute.xlu0 %4735 }
 0x528   : > { %v4781_v23 = vpop.permute.xlu1 %4780 }
 0x529   : > { %v4956_v37 = vrot.slane %v4781_v23, %v4861_v13  ;;  %v4822_v23 = vsel %vm4821_vm2, %v4820_v49, %v4815_v36 }
 0x52d   : > { %v7047_v59 = vpop.permute.xlu0 %4738 }
 0x52e   : > { %v4876_v28 = vrot.slane %v7047_v59, %v4875_v50 }
 0x532   : > { %v4784_v43 = vpop.permute.xlu1 %4783 }
 0x537   : > { %v7052_v44 = vpop.permute.xlu0 %4741 }
 0x53d   : > { %v4787_v9 = vpop.permute.xlu1 %4786 }
 0x53e   : > { %v4966_v61 = vrot.slane %v4787_v9, %v4875_v50  ;;  %v4883_v9 = vrot.slane %v7052_v44, %v4882_v32 }
 0x542   : > { %v4760_v35 = vpop.permute.xlu0 %4759 }
 0x543   : > { %v4921_v27 = vrot.slane %v4760_v35, %v4812_v7  ;;  %v4961_v35 = vrot.slane %v4784_v43, %v4868_v30  ;;  %v4834_v7 = vrot.slane %v7033_v57, %v4833_v54  ;;  %v4900_v57 = vadd.s32 4294967184, %v7050_v2 }
 0x544   : > { %v4869_v54 = vrot.slane %v7045_v52, %v4868_v30 }
 0x545   : > { %v4922_v0 = vsel %vm4814_vm1, %v4921_v27, %v4917_v40  ;;  %v4893_v27 = vadd.s32 4294967192, %v7050_v2  ;;  %v4829_v40 = vsel %vm4828_vm3, %v4827_v62, %v4822_v23  ;;  %v4903_v2 = vsub.s32 %v4900_v57, %v5937_v26 }
 0x546   : > { %v4927_v4 = vsel %vm4821_vm2, %v4926_v63, %v4922_v0  ;;  %v4855_v63 = vrot.slane %v7041_v45, %v4854_v19  ;;  %v4836_v5 = vsel %vm4835_vm4, %v4834_v7, %v4829_v40 }
 0x547   : > { %v4932_v55 = vsel %vm4828_vm3, %v4931_v53, %v4927_v4  ;;  %v4790_v12 = vpop.permute.xlu1 %4789  ;;  %v4862_v4 = vrot.slane %v7043_v39, %v4861_v13  ;;  %v4843_v3 = vsel %vm4842_vm5, %v4841_v47, %v4836_v5  ;;  %v4896_v45 = vsub.s32 %v4893_v27, %v5937_v26 }
 0x548   : > { %v4937_v16 = vsel %vm4835_vm4, %v4936_v8, %v4932_v55  ;;  %v4971_v55 = vrot.slane %v4790_v12, %v4882_v32  ;;  %v4850_v8 = vsel %vm4849_vm6, %v4848_v51, %v4843_v3 }
 0x549   : > { %v4942_v34 = vsel %vm4842_vm5, %v4941_v29, %v4937_v16  ;;  %v4857_v39 = vsel %vm4856_vm7, %v4855_v63, %v4850_v8  ;;  %v4910_v16 = vsub.s32 %v4907_v41, %v5937_v26 }
 0x54a   : > { %v4947_v20 = vsel %vm4849_vm6, %v4946_v11, %v4942_v34  ;;  %v4864_v52 = vsel %vm4863_vm8, %v4862_v4, %v4857_v39 }
 0x54b   : > { %v4952_v42 = vsel %vm4856_vm7, %v4951_v48, %v4947_v20  ;;  %v4871_v59 = vsel %vm4870_vm9, %v4869_v54, %v4864_v52 }
 0x54c   : > { %v7076_v14 = vpop.permute.xlu0 %4744  ;;  %v4957_v1 = vsel %vm4863_vm8, %v4956_v37, %v4952_v42  ;;  %v4878_v18 = vsel %vm4877_vm10, %v4876_v28, %v4871_v59 }
 0x54d   : > { %v4962_v58 = vsel %vm4870_vm9, %v4961_v35, %v4957_v1  ;;  %v4890_v29 = vrot.slane %v7076_v14, %v4889_v60  ;;  %v4885_v19 = vsel %vm4884_vm11, %v4883_v9, %v4878_v18 }
 0x54e   : > { %v4967_v53 = vsel %vm4877_vm10, %v4966_v61, %v4962_v58 }
 0x54f   : > { %v4972_v10 = vsel %vm4884_vm11, %v4971_v55, %v4967_v53  ;;  %v4892_v48 = vsel %vm4891_vm12, %v4890_v29, %v4885_v19 }
 0x552   : > { %v4793_v38 = vpop.permute.xlu1 %4792 }
 0x553   : > { %v4976_v17 = vrot.slane %v4793_v38, %v4889_v60 }
 0x555   : > { %v4977_v12 = vsel %vm4891_vm12, %v4976_v17, %v4972_v10 }
 0x557   : > { %v4748_v33 = vpop.permute.xlu0 %4747 }
 0x558   : > { %v4897_v34 = vrot.slane %v4748_v33, %v4896_v45 }
 0x55a   : > { %v4899_v21 = vsel %vm4898_vm13, %v4897_v34, %v4892_v48 }
 0x55c   : > { %v4796_v0 = vpop.permute.xlu1 %4795 }
 0x55d   : > { %v4981_v26 = vrot.slane %v4796_v0, %v4896_v45 }
 0x55f   : > { %v4982_v13 = vsel %vm4898_vm13, %v4981_v26, %v4977_v12 }
 0x561   : > { %v4751_v43 = vpop.permute.xlu0 %4750 }
 0x562   : > { %v4904_v44 = vrot.slane %v4751_v43, %v4903_v2 }
 0x564   : > { %v4906_v24 = vsel %vm4905_vm14, %v4904_v44, %v4899_v21 }
 0x567   : > { %v4799_v31 = vpop.permute.xlu1 %4798 }
 0x568   : > { %v4986_v14 = vrot.slane %v4799_v31, %v4903_v2 }
 0x56a   : > { %v4987_v6 = vsel %vm4905_vm14, %v4986_v14, %v4982_v13 }
 0x56c   : > { %v4754_v11 = vpop.permute.xlu0 %4753 }
 0x56d   : > { %v4911_v20 = vrot.slane %v4754_v11, %v4910_v16 }
 0x56f   : > { %v4913_v42 = vsel %vm4912_vm15, %v4911_v20, %v4906_v24 }
 0x571   : > { %v4802_v46 = vpop.permute.xlu1 %4801 }
 0x572   : > { %v4991_v37 = vrot.slane %v4802_v46, %v4910_v16 }
 0x574   : > { %v4992_v38 = vsel %vm4912_vm15, %v4991_v37, %v4987_v6 }
 0x575   : > { %v4993_v49 = vcombine.low %v4913_v42, %v4992_v38 }
 0x577   : > { %v5000_v30 = vrot.slane %v4993_v49, %v6235_v22 }
 0x579   : > { %v5007_v33 = vrot.slane %v5000_v30, %v6235_v22 }
 0x57b   : > { %5013 = vst.msk [vmem:[%s382_s25] sm:$0x3] %vm5011_vm0, %v5007_v33 }
 0x57c   : > { %5514 = shalt.err (!%p5511_p3)
}
 0x57d   : > { %s5515_s0 = scalar_lea.hbm %s5027_s30, 32  ;;  %s5519_s25 = scalar_lea.hbm %s7171_s11, 64 }
 0x57e   : > { %p5516_p4 = scmp.ne.s32.totalorder %s5027_s30, %s5515_s0  ;;  %p5520_p9 = scmp.lt.s32.totalorder %s5027_s30, %s7171_s11 }
 0x57f   : > { %p5521_p10 = scmp.lt.s32.totalorder %s5519_s25, %s5515_s0 }
 0x580   : > { %p5517_p7 = pnand %p5516_p4, %p5664_p5 }
 0x581   : > { %p5522_p11 = por %p5521_p10, %p5520_p9 }
 0x582   : > { %p5518_p8 = pneg %p5517_p7 }
 0x584   : > { %p5523_p12 = pnand %p5522_p11, %p5518_p8 }
 0x586   : > { %5526 = shalt.err (!%p5523_p12)
}
 0x587   : > { %5368 = dma.vmem_to_hbm [thread:$0]  (%p5664_p5), %s5030_s18, 32, %s5027_s30, %s5015_s12  }
 0x588 PF: > { %p5374_p13 = scmp.ge.s32.totalorder %s5561_s22, 2  ;;  %s5041_s14 = sand.u32 1, %s5549_s19  }
 0x589   : > { %s5042_s15 = scalar_lea.sflag [#allocation4], %s5041_s14 }
 0x58a   : > { %p5371_p0 = pnand %p5374_p13, %p5668_p6 }
 0x58c   : > { %p5372_p1 = pneg %p5371_p0 }
 0x58e   : > { %5544 = dma.done.wait (%p5372_p1), %s5042_s15, 32  }
 0x58f   : > { %5546 = vsyncadd (%p5372_p1), %s5042_s15, 4294967264  ;;  %p23_p2 = scmp.ge.s32.totalorder %s5652_s24, 4   ;;  %s7176_s19 = smov %s5553_s20 }
 0x590   : > { %s7177_s20 = smov %s5557_s21  ;;  %s7178_s21 = smov %s5662_s27 }
 0x591   : > { %s7179_s22 = smov %s5652_s24  ;;  %25 = sbr.rel (!%p23_p2) target bundleno = 6 (0x6), region = 99 }
 0x596   :  { %5047 = vsyncpa [#allocation4], 1 }
 0x597   :  { %5049 = vsyncpa [#allocation4 + $0x1], 1 }

</bundles_post_ra>
